<compile_context>
chip_gen: v7x
topology: tpu7x:2x2x1
jax: 0.10.0
libtpu: 0.0.40
codegen_flags: <defaults>
</compile_context>

<pallas_src>
import functools

import numpy as np
import jax
import jax.numpy as jnp
from jax.experimental import pallas as pl
from jax.experimental.pallas import tpu as pltpu

CIFAR_MEAN = (0.4914, 0.4822, 0.4465)
CIFAR_STD = (0.2507, 0.2507, 0.2507)


# ----------------------------------------------------------------------------
# Host-side construction of per-layer S (row-select) and T (banded weight)
# matrices.
#   input activation layout : rows = h, cols = part*W*cw + w*cw + ci
#   conv output layout      : rows = oh, cols = group*Wo*half + ow*half + co
# with group 0 = even output channels, group 1 = odd output channels.
# ----------------------------------------------------------------------------
def _build_layer_mats(w, b, k, s, H, W, part_idx):
    p = k // 2
    Ho = (H + 2 * p - k) // s + 1
    Wo = (W + 2 * p - k) // s + 1
    cout = w.shape[-1]
    half = cout // 2
    groups = [np.arange(0, cout, 2), np.arange(1, cout, 2)]   # adjacent pairing
    P = len(part_idx)
    cw = len(part_idx[0])
    No = Wo * half

    S = np.zeros((k, Ho, H), np.float32)
    for di in range(k):
        for oh in range(Ho):
            h = s * oh + di - p
            if 0 <= h < H:
                S[di, oh, h] = 1.0

    T = np.zeros((k, P * W * cw, 2 * No), np.float32)
    for di in range(k):
        for pi, cidx in enumerate(part_idx):
            base_r = pi * W * cw
            for gi, gidx in enumerate(groups):
                wsl = w[di][:, cidx, :][:, :, gidx]           # (k, cw, half)
                base_c = gi * No
                for ow in range(Wo):
                    for dj in range(k):
                        wc = s * ow + dj - p
                        if 0 <= wc < W:
                            T[di,
                              base_r + wc * cw:base_r + (wc + 1) * cw,
                              base_c + ow * half:base_c + (ow + 1) * half] = wsl[dj]

    bias = np.zeros((1, 2 * No), np.float32)
    bias[0, :No] = np.tile(b[groups[0]], Wo)
    bias[0, No:] = np.tile(b[groups[1]], Wo)
    return S, T, bias, Ho, Wo


def init_params(key, init_channels=8, num_classes=10, input_size=32):
    c = init_channels
    # (kernel, stride, cin, cout, epilogue)
    layer_defs = [
        (3, 1, 3, c, "maxmin"),             # init_layer (downsample=False -> act)
        (3, 2, c, 4 * c, "maxpool"),        # block1
        (3, 2, 2 * c, 8 * c, "maxpool"),    # block2
        (3, 2, 4 * c, 16 * c, "maxpool"),   # block3
        (3, 2, 8 * c, 32 * c, "maxpool"),   # block4
        (1, 2, 16 * c, 64 * c, "maxpool"),  # block5 (kernel_size=1, is_last)
    ]
    H = W = input_size
    rows_in = input_size                    # padded row count of current activation
    part_idx = [np.arange(3)]
    layers, raw_convs = [], []
    for (k, s, cin, cout, act) in layer_defs:
        key, wk, bk = jax.random.split(key, 3)
        w = np.asarray(jax.random.normal(wk, (k, k, cin, cout), jnp.float32))
        w = w / np.sqrt(k * k * cin)
        b = np.asarray(0.01 * jax.random.normal(bk, (cout,), jnp.float32))
        raw_convs.append((w.astype(np.float32), b.astype(np.float32), k, s, act))

        S, T, bias, Ho, Wo = _build_layer_mats(w, b, k, s, H, W, part_idx)
        # Pad output rows to >= 8 so every matmul has a comfortable sublane dim.
        Ho_p = max(Ho, 8)
        S_p = np.zeros((k, Ho_p, rows_in), np.float32)
        S_p[:, :Ho, :H] = S
        layers.append(dict(S=jnp.asarray(S_p, jnp.float32),
                           T=jnp.asarray(T, jnp.bfloat16),
                           b=jnp.asarray(bias, jnp.float32),
                           act=act))
        H, W = Ho, Wo
        rows_in = Ho_p
        if act == "maxmin":   # (max|min) halves -> even/odd channel identities
            part_idx = [np.arange(0, cout, 2), np.arange(1, cout, 2)]
        else:                 # pooled channels are a fresh channel space
            part_idx = [np.arange(cout // 2)]

    feat_ch = layer_defs[-1][3] // 2
    key, wk, bk = jax.random.split(key, 3)
    wl = np.asarray(jax.random.normal(wk, (feat_ch, num_classes), jnp.float32))
    wl = wl / np.sqrt(feat_ch)
    bl = np.asarray(0.01 * jax.random.normal(bk, (1, num_classes), jnp.float32))

    norm = np.zeros((2, 1, input_size * 3), np.float32)
    norm[0] = np.tile(np.asarray(CIFAR_MEAN, np.float32), input_size)
    norm[1] = np.tile(1.0 / np.asarray(CIFAR_STD, np.float32), input_size)

    params = dict(layers=layers,
                  wl=jnp.asarray(wl, jnp.bfloat16),
                  bl=jnp.asarray(bl, jnp.float32),
                  norm=jnp.asarray(norm, jnp.float32))
    return params, (raw_convs, wl.astype(np.float32), bl.astype(np.float32))


# ----------------------------------------------------------------------------
# The fused whole-network kernel (one image per grid step).
# ----------------------------------------------------------------------------
def _make_kernel(acts, n_layers):
    def kernel(*refs):
        x_ref, norm_ref = refs[0], refs[1]
        wl_ref = refs[2 + 3 * n_layers]
        bl_ref = refs[3 + 3 * n_layers]
        out_ref = refs[-1]

        x = x_ref[...].astype(jnp.float32)
        a = (x - norm_ref[0]) * norm_ref[1]          # f32, (H, W*3)

        for li in range(n_layers):
            S_ref = refs[2 + 3 * li]                 # (k, Ho_p, Hin_p)   f32
            T_ref = refs[3 + 3 * li]                 # (k, In, 2*No)      bf16
            b_ref = refs[4 + 3 * li]                 # (1, 2*No)          f32
            k = S_ref.shape[0]
            acc = None
            for di in range(k):
                # H-axis tap/stride/pad selection: exact f32 matmul with a 0/1 matrix.
                bm = jnp.dot(S_ref[di], a, preferred_element_type=jnp.float32)
                bm = bm.astype(jnp.bfloat16)         # exact: rows are copies of `a`
                # W-axis taps + channel mixing, even|odd outputs packed side by side.
                ctb = jnp.dot(bm, T_ref[di], preferred_element_type=jnp.float32)
                acc = ctb if acc is None else acc + ctb
            y = acc + b_ref[...]
            no = y.shape[1] // 2
            ya, yb = y[:, :no], y[:, no:]            # 128-aligned lane slices
            if acts[li] == "maxmin":
                a = jnp.concatenate([jnp.maximum(ya, yb), jnp.minimum(ya, yb)],
                                    axis=-1)
            else:                                    # channel max-pool over pairs
                a = jnp.maximum(ya, yb)

        feats = a.astype(jnp.bfloat16)               # (rows_p, feat_ch); row 0 real
        logits = jnp.dot(feats, wl_ref[...], preferred_element_type=jnp.float32)
        out_ref[...] = (logits[0:1, :] + bl_ref[...]).astype(out_ref.dtype)

    return kernel


def _full_spec(a):
    r = a.ndim
    return pl.BlockSpec(a.shape, lambda i, _r=r: (0,) * _r)


def lipconvnet_forward(params, x_nchw):
    N, C, H, W = x_nchw.shape
    # NCHW -> per-image (h) x (w*C + c) layout expected by the kernel.
    x = jnp.transpose(x_nchw, (0, 2, 3, 1)).astype(jnp.float32).reshape(N, H, W * C)

    layers = params["layers"]
    acts = [l["act"] for l in layers]
    num_classes = params["wl"].shape[1]

    operands = [x, params["norm"]]
    in_specs = [pl.BlockSpec((None, H, W * C), lambda i: (i, 0, 0)),
                _full_spec(params["norm"])]
    for l in layers:
        for nm in ("S", "T", "b"):
            operands.append(l[nm])
            in_specs.append(_full_spec(l[nm]))
    operands += [params["wl"], params["bl"]]
    in_specs += [_full_spec(params["wl"]), _full_spec(params["bl"])]

    out = pl.pallas_call(
        _make_kernel(acts, len(layers)),
        grid=(N,),
        in_specs=in_specs,
        out_specs=pl.BlockSpec((None, 1, num_classes), lambda i: (i, 0, 0)),
        out_shape=jax.ShapeDtypeStruct((N, 1, num_classes), jnp.float32),
        compiler_params=pltpu.CompilerParams(dimension_semantics=("parallel",)),
    )(*operands)
    return out.reshape(N, num_classes)


# ----------------------------------------------------------------------------
# Pure-JAX reference (bf16-rounded weights/activations to mirror the kernel).
# ----------------------------------------------------------------------------
def reference_forward(raw, x_nchw):
    raw_convs, wl, bl = raw
    mean = jnp.asarray(CIFAR_MEAN, jnp.float32)
    inv_std = jnp.asarray(1.0 / np.asarray(CIFAR_STD, np.float32))
    x = jnp.transpose(x_nchw, (0, 2, 3, 1)).astype(jnp.float32)
    x = (x - mean) * inv_std
    x = x.astype(jnp.bfloat16).astype(jnp.float32)
    for (w, b, k, s, act) in raw_convs:
        wq = jnp.asarray(w).astype(jnp.bfloat16).astype(jnp.float32)
        y = jax.lax.conv_general_dilated(
            x, wq, (s, s), [(k // 2, k // 2)] * 2,
            dimension_numbers=("NHWC", "HWIO", "NHWC"))
        y = y + jnp.asarray(b, jnp.float32)
        Cc = y.shape[-1]
        yr = y.reshape(y.shape[:-1] + (Cc // 2, 2))
        if act == "maxmin":
            y = jnp.stack([yr.max(-1), yr.min(-1)], axis=-1).reshape(y.shape)
        else:
            y = yr.max(-1)
        x = y.astype(jnp.bfloat16).astype(jnp.float32)
    feats = x.reshape(x.shape[0], -1)
    wq = jnp.asarray(wl).astype(jnp.bfloat16).astype(jnp.float32)
    return feats @ wq + jnp.asarray(bl, jnp.float32)


if __name__ == "__main__":
    key = jax.random.PRNGKey(0)
    pkey, xkey = jax.random.split(key)

    params, raw = init_params(pkey, init_channels=8, num_classes=10, input_size=32)
    # CIFAR-like input: batch=2, 3 channels, 32x32 spatial (NCHW).
    x = jax.random.uniform(xkey, (2, 3, 32, 32), jnp.float32)

    fwd = jax.jit(functools.partial(lipconvnet_forward, params))
    logits = fwd(x)
    jax.block_until_ready(logits)

    assert logits.shape == (2, 10), logits.shape
    assert bool(jnp.all(jnp.isfinite(logits)))

    ref = jax.jit(functools.partial(reference_forward, raw))(x)
    jax.block_until_ready(ref)
    err = float(jnp.max(jnp.abs(logits - ref)))
    assert err < 5e-2, err

    print("KERNEL_OK")
</pallas_src>

<mosaic_0001>
module attributes {stable_mosaic.version = 11 : i64} {
  func.func @kernel(%arg0: i32, %arg1: memref<1x32x96xf32, #tpu.memory_space<vmem>>, %arg2: memref<2x1x96xf32, #tpu.memory_space<vmem>>, %arg3: memref<3x32x32xf32, #tpu.memory_space<vmem>>, %arg4: memref<3x96x256xbf16, #tpu.memory_space<vmem>>, %arg5: memref<1x256xf32, #tpu.memory_space<vmem>>, %arg6: memref<3x16x32xf32, #tpu.memory_space<vmem>>, %arg7: memref<3x256x512xbf16, #tpu.memory_space<vmem>>, %arg8: memref<1x512xf32, #tpu.memory_space<vmem>>, %arg9: memref<3x8x16xf32, #tpu.memory_space<vmem>>, %arg10: memref<3x256x512xbf16, #tpu.memory_space<vmem>>, %arg11: memref<1x512xf32, #tpu.memory_space<vmem>>, %arg12: memref<3x8x8xf32, #tpu.memory_space<vmem>>, %arg13: memref<3x256x512xbf16, #tpu.memory_space<vmem>>, %arg14: memref<1x512xf32, #tpu.memory_space<vmem>>, %arg15: memref<3x8x8xf32, #tpu.memory_space<vmem>>, %arg16: memref<3x256x512xbf16, #tpu.memory_space<vmem>>, %arg17: memref<1x512xf32, #tpu.memory_space<vmem>>, %arg18: memref<1x8x8xf32, #tpu.memory_space<vmem>>, %arg19: memref<1x256x512xbf16, #tpu.memory_space<vmem>>, %arg20: memref<1x512xf32, #tpu.memory_space<vmem>>, %arg21: memref<256x10xbf16, #tpu.memory_space<vmem>>, %arg22: memref<1x10xf32, #tpu.memory_space<vmem>>, %arg23: memref<1x1x10xf32, #tpu.memory_space<vmem>>) attributes {dimension_semantics = [#tpu.dimension_semantics<parallel>], iteration_bounds = array<i64: 2>, scalar_prefetch = 0 : i64, scratch_operands = 0 : i64, tpu.core_type = #tpu.core_type<tc>, window_params = [{transform_indices = @transform_0, window_bounds = array<i64: 1, 32, 96>}, {pipeline_mode = #tpu.pipeline_mode<synchronous>, transform_indices = @transform_1, window_bounds = array<i64: 2, 1, 96>}, {pipeline_mode = #tpu.pipeline_mode<synchronous>, transform_indices = @transform_2, window_bounds = array<i64: 3, 32, 32>}, {pipeline_mode = #tpu.pipeline_mode<synchronous>, transform_indices = @transform_3, window_bounds = array<i64: 3, 96, 256>}, {pipeline_mode = #tpu.pipeline_mode<synchronous>, transform_indices = @transform_4, window_bounds = array<i64: 1, 256>}, {pipeline_mode = #tpu.pipeline_mode<synchronous>, transform_indices = @transform_5, window_bounds = array<i64: 3, 16, 32>}, {pipeline_mode = #tpu.pipeline_mode<synchronous>, transform_indices = @transform_6, window_bounds = array<i64: 3, 256, 512>}, {pipeline_mode = #tpu.pipeline_mode<synchronous>, transform_indices = @transform_7, window_bounds = array<i64: 1, 512>}, {pipeline_mode = #tpu.pipeline_mode<synchronous>, transform_indices = @transform_8, window_bounds = array<i64: 3, 8, 16>}, {pipeline_mode = #tpu.pipeline_mode<synchronous>, transform_indices = @transform_9, window_bounds = array<i64: 3, 256, 512>}, {pipeline_mode = #tpu.pipeline_mode<synchronous>, transform_indices = @transform_10, window_bounds = array<i64: 1, 512>}, {pipeline_mode = #tpu.pipeline_mode<synchronous>, transform_indices = @transform_11, window_bounds = array<i64: 3, 8, 8>}, {pipeline_mode = #tpu.pipeline_mode<synchronous>, transform_indices = @transform_12, window_bounds = array<i64: 3, 256, 512>}, {pipeline_mode = #tpu.pipeline_mode<synchronous>, transform_indices = @transform_13, window_bounds = array<i64: 1, 512>}, {pipeline_mode = #tpu.pipeline_mode<synchronous>, transform_indices = @transform_14, window_bounds = array<i64: 3, 8, 8>}, {pipeline_mode = #tpu.pipeline_mode<synchronous>, transform_indices = @transform_15, window_bounds = array<i64: 3, 256, 512>}, {pipeline_mode = #tpu.pipeline_mode<synchronous>, transform_indices = @transform_16, window_bounds = array<i64: 1, 512>}, {pipeline_mode = #tpu.pipeline_mode<synchronous>, transform_indices = @transform_17, window_bounds = array<i64: 1, 8, 8>}, {pipeline_mode = #tpu.pipeline_mode<synchronous>, transform_indices = @transform_18, window_bounds = array<i64: 1, 256, 512>}, {pipeline_mode = #tpu.pipeline_mode<synchronous>, transform_indices = @transform_19, window_bounds = array<i64: 1, 512>}, {pipeline_mode = #tpu.pipeline_mode<synchronous>, transform_indices = @transform_20, window_bounds = array<i64: 256, 10>}, {pipeline_mode = #tpu.pipeline_mode<synchronous>, transform_indices = @transform_21, window_bounds = array<i64: 1, 10>}, {transform_indices = @transform_22, window_bounds = array<i64: 1, 1, 10>}]} {
    %c0 = arith.constant 0 : index
    %c0_0 = arith.constant 0 : index
    %c0_1 = arith.constant 0 : index
    %0 = vector.load %arg1[%c0, %c0_0, %c0_1] : memref<1x32x96xf32, #tpu.memory_space<vmem>>, vector<1x32x96xf32>
    %1 = vector.shape_cast %0 : vector<1x32x96xf32> to vector<32x96xf32>
    %c0_2 = arith.constant 0 : index
    %c0_3 = arith.constant 0 : index
    %c0_4 = arith.constant 0 : index
    %2 = vector.load %arg2[%c0_2, %c0_3, %c0_4] : memref<2x1x96xf32, #tpu.memory_space<vmem>>, vector<1x1x96xf32>
    %3 = vector.shape_cast %2 : vector<1x1x96xf32> to vector<1x96xf32>
    %4 = vector.broadcast %3 : vector<1x96xf32> to vector<32x96xf32>
    %5 = arith.subf %1, %4 : vector<32x96xf32>
    %c1 = arith.constant 1 : index
    %c0_5 = arith.constant 0 : index
    %c0_6 = arith.constant 0 : index
    %6 = vector.load %arg2[%c1, %c0_5, %c0_6] : memref<2x1x96xf32, #tpu.memory_space<vmem>>, vector<1x1x96xf32>
    %7 = vector.shape_cast %6 : vector<1x1x96xf32> to vector<1x96xf32>
    %8 = vector.broadcast %7 : vector<1x96xf32> to vector<32x96xf32>
    %9 = arith.mulf %5, %8 : vector<32x96xf32>
    %c0_7 = arith.constant 0 : index
    %c0_8 = arith.constant 0 : index
    %c0_9 = arith.constant 0 : index
    %10 = vector.load %arg3[%c0_7, %c0_8, %c0_9] : memref<3x32x32xf32, #tpu.memory_space<vmem>>, vector<1x32x32xf32>
    %11 = vector.shape_cast %10 : vector<1x32x32xf32> to vector<32x32xf32>
    %cst = arith.constant dense<0.000000e+00> : vector<32x96xf32>
    %12 = tpu.matmul %11, %9, %cst {dimension_numbers = #tpu.dot_dimension_numbers<[1], [0], [0], [1], [0, 0, 1, 1], [], []>} : vector<32x32xf32>, vector<32x96xf32>, vector<32x96xf32> -> vector<32x96xf32>
    %13 = arith.truncf %12 : vector<32x96xf32> to vector<32x96xbf16>
    %c0_10 = arith.constant 0 : index
    %c0_11 = arith.constant 0 : index
    %c0_12 = arith.constant 0 : index
    %14 = vector.load %arg4[%c0_10, %c0_11, %c0_12] : memref<3x96x256xbf16, #tpu.memory_space<vmem>>, vector<1x96x256xbf16>
    %15 = vector.shape_cast %14 : vector<1x96x256xbf16> to vector<96x256xbf16>
    %cst_13 = arith.constant dense<0.000000e+00> : vector<32x256xf32>
    %16 = tpu.matmul %13, %15, %cst_13 {dimension_numbers = #tpu.dot_dimension_numbers<[1], [0], [0], [1], [0, 0, 1, 1], [], []>} : vector<32x96xbf16>, vector<96x256xbf16>, vector<32x256xf32> -> vector<32x256xf32>
    %c1_14 = arith.constant 1 : index
    %c0_15 = arith.constant 0 : index
    %c0_16 = arith.constant 0 : index
    %17 = vector.load %arg3[%c1_14, %c0_15, %c0_16] : memref<3x32x32xf32, #tpu.memory_space<vmem>>, vector<1x32x32xf32>
    %18 = vector.shape_cast %17 : vector<1x32x32xf32> to vector<32x32xf32>
    %cst_17 = arith.constant dense<0.000000e+00> : vector<32x96xf32>
    %19 = tpu.matmul %18, %9, %cst_17 {dimension_numbers = #tpu.dot_dimension_numbers<[1], [0], [0], [1], [0, 0, 1, 1], [], []>} : vector<32x32xf32>, vector<32x96xf32>, vector<32x96xf32> -> vector<32x96xf32>
    %20 = arith.truncf %19 : vector<32x96xf32> to vector<32x96xbf16>
    %c1_18 = arith.constant 1 : index
    %c0_19 = arith.constant 0 : index
    %c0_20 = arith.constant 0 : index
    %21 = vector.load %arg4[%c1_18, %c0_19, %c0_20] : memref<3x96x256xbf16, #tpu.memory_space<vmem>>, vector<1x96x256xbf16>
    %22 = vector.shape_cast %21 : vector<1x96x256xbf16> to vector<96x256xbf16>
    %cst_21 = arith.constant dense<0.000000e+00> : vector<32x256xf32>
    %23 = tpu.matmul %20, %22, %cst_21 {dimension_numbers = #tpu.dot_dimension_numbers<[1], [0], [0], [1], [0, 0, 1, 1], [], []>} : vector<32x96xbf16>, vector<96x256xbf16>, vector<32x256xf32> -> vector<32x256xf32>
    %24 = arith.addf %16, %23 : vector<32x256xf32>
    %c2 = arith.constant 2 : index
    %c0_22 = arith.constant 0 : index
    %c0_23 = arith.constant 0 : index
    %25 = vector.load %arg3[%c2, %c0_22, %c0_23] : memref<3x32x32xf32, #tpu.memory_space<vmem>>, vector<1x32x32xf32>
    %26 = vector.shape_cast %25 : vector<1x32x32xf32> to vector<32x32xf32>
    %cst_24 = arith.constant dense<0.000000e+00> : vector<32x96xf32>
    %27 = tpu.matmul %26, %9, %cst_24 {dimension_numbers = #tpu.dot_dimension_numbers<[1], [0], [0], [1], [0, 0, 1, 1], [], []>} : vector<32x32xf32>, vector<32x96xf32>, vector<32x96xf32> -> vector<32x96xf32>
    %28 = arith.truncf %27 : vector<32x96xf32> to vector<32x96xbf16>
    %c2_25 = arith.constant 2 : index
    %c0_26 = arith.constant 0 : index
    %c0_27 = arith.constant 0 : index
    %29 = vector.load %arg4[%c2_25, %c0_26, %c0_27] : memref<3x96x256xbf16, #tpu.memory_space<vmem>>, vector<1x96x256xbf16>
    %30 = vector.shape_cast %29 : vector<1x96x256xbf16> to vector<96x256xbf16>
    %cst_28 = arith.constant dense<0.000000e+00> : vector<32x256xf32>
    %31 = tpu.matmul %28, %30, %cst_28 {dimension_numbers = #tpu.dot_dimension_numbers<[1], [0], [0], [1], [0, 0, 1, 1], [], []>} : vector<32x96xbf16>, vector<96x256xbf16>, vector<32x256xf32> -> vector<32x256xf32>
    %32 = arith.addf %24, %31 : vector<32x256xf32>
    %c0_29 = arith.constant 0 : index
    %c0_30 = arith.constant 0 : index
    %33 = vector.load %arg5[%c0_29, %c0_30] : memref<1x256xf32, #tpu.memory_space<vmem>>, vector<1x256xf32>
    %34 = vector.broadcast %33 : vector<1x256xf32> to vector<32x256xf32>
    %35 = arith.addf %32, %34 : vector<32x256xf32>
    %36 = vector.extract_strided_slice %35 {offsets = [0, 0], sizes = [32, 128], strides = [1, 1]} : vector<32x256xf32> to vector<32x128xf32>
    %37 = vector.extract_strided_slice %35 {offsets = [0, 128], sizes = [32, 128], strides = [1, 1]} : vector<32x256xf32> to vector<32x128xf32>
    %38 = arith.maximumf %36, %37 : vector<32x128xf32>
    %39 = arith.minimumf %36, %37 : vector<32x128xf32>
    %40 = tpu.concatenate %38, %39 in 1 : vector<32x128xf32>, vector<32x128xf32> -> vector<32x256xf32>
    %c0_31 = arith.constant 0 : index
    %c0_32 = arith.constant 0 : index
    %c0_33 = arith.constant 0 : index
    %41 = vector.load %arg6[%c0_31, %c0_32, %c0_33] : memref<3x16x32xf32, #tpu.memory_space<vmem>>, vector<1x16x32xf32>
    %42 = vector.shape_cast %41 : vector<1x16x32xf32> to vector<16x32xf32>
    %cst_34 = arith.constant dense<0.000000e+00> : vector<16x256xf32>
    %43 = tpu.matmul %42, %40, %cst_34 {dimension_numbers = #tpu.dot_dimension_numbers<[1], [0], [0], [1], [0, 0, 1, 1], [], []>} : vector<16x32xf32>, vector<32x256xf32>, vector<16x256xf32> -> vector<16x256xf32>
    %44 = arith.truncf %43 : vector<16x256xf32> to vector<16x256xbf16>
    %c0_35 = arith.constant 0 : index
    %c0_36 = arith.constant 0 : index
    %c0_37 = arith.constant 0 : index
    %45 = vector.load %arg7[%c0_35, %c0_36, %c0_37] : memref<3x256x512xbf16, #tpu.memory_space<vmem>>, vector<1x256x512xbf16>
    %46 = vector.shape_cast %45 : vector<1x256x512xbf16> to vector<256x512xbf16>
    %cst_38 = arith.constant dense<0.000000e+00> : vector<16x512xf32>
    %47 = tpu.matmul %44, %46, %cst_38 {dimension_numbers = #tpu.dot_dimension_numbers<[1], [0], [0], [1], [0, 0, 1, 1], [], []>} : vector<16x256xbf16>, vector<256x512xbf16>, vector<16x512xf32> -> vector<16x512xf32>
    %c1_39 = arith.constant 1 : index
    %c0_40 = arith.constant 0 : index
    %c0_41 = arith.constant 0 : index
    %48 = vector.load %arg6[%c1_39, %c0_40, %c0_41] : memref<3x16x32xf32, #tpu.memory_space<vmem>>, vector<1x16x32xf32>
    %49 = vector.shape_cast %48 : vector<1x16x32xf32> to vector<16x32xf32>
    %cst_42 = arith.constant dense<0.000000e+00> : vector<16x256xf32>
    %50 = tpu.matmul %49, %40, %cst_42 {dimension_numbers = #tpu.dot_dimension_numbers<[1], [0], [0], [1], [0, 0, 1, 1], [], []>} : vector<16x32xf32>, vector<32x256xf32>, vector<16x256xf32> -> vector<16x256xf32>
    %51 = arith.truncf %50 : vector<16x256xf32> to vector<16x256xbf16>
    %c1_43 = arith.constant 1 : index
    %c0_44 = arith.constant 0 : index
    %c0_45 = arith.constant 0 : index
    %52 = vector.load %arg7[%c1_43, %c0_44, %c0_45] : memref<3x256x512xbf16, #tpu.memory_space<vmem>>, vector<1x256x512xbf16>
    %53 = vector.shape_cast %52 : vector<1x256x512xbf16> to vector<256x512xbf16>
    %cst_46 = arith.constant dense<0.000000e+00> : vector<16x512xf32>
    %54 = tpu.matmul %51, %53, %cst_46 {dimension_numbers = #tpu.dot_dimension_numbers<[1], [0], [0], [1], [0, 0, 1, 1], [], []>} : vector<16x256xbf16>, vector<256x512xbf16>, vector<16x512xf32> -> vector<16x512xf32>
    %55 = arith.addf %47, %54 : vector<16x512xf32>
    %c2_47 = arith.constant 2 : index
    %c0_48 = arith.constant 0 : index
    %c0_49 = arith.constant 0 : index
    %56 = vector.load %arg6[%c2_47, %c0_48, %c0_49] : memref<3x16x32xf32, #tpu.memory_space<vmem>>, vector<1x16x32xf32>
    %57 = vector.shape_cast %56 : vector<1x16x32xf32> to vector<16x32xf32>
    %cst_50 = arith.constant dense<0.000000e+00> : vector<16x256xf32>
    %58 = tpu.matmul %57, %40, %cst_50 {dimension_numbers = #tpu.dot_dimension_numbers<[1], [0], [0], [1], [0, 0, 1, 1], [], []>} : vector<16x32xf32>, vector<32x256xf32>, vector<16x256xf32> -> vector<16x256xf32>
    %59 = arith.truncf %58 : vector<16x256xf32> to vector<16x256xbf16>
    %c2_51 = arith.constant 2 : index
    %c0_52 = arith.constant 0 : index
    %c0_53 = arith.constant 0 : index
    %60 = vector.load %arg7[%c2_51, %c0_52, %c0_53] : memref<3x256x512xbf16, #tpu.memory_space<vmem>>, vector<1x256x512xbf16>
    %61 = vector.shape_cast %60 : vector<1x256x512xbf16> to vector<256x512xbf16>
    %cst_54 = arith.constant dense<0.000000e+00> : vector<16x512xf32>
    %62 = tpu.matmul %59, %61, %cst_54 {dimension_numbers = #tpu.dot_dimension_numbers<[1], [0], [0], [1], [0, 0, 1, 1], [], []>} : vector<16x256xbf16>, vector<256x512xbf16>, vector<16x512xf32> -> vector<16x512xf32>
    %63 = arith.addf %55, %62 : vector<16x512xf32>
    %c0_55 = arith.constant 0 : index
    %c0_56 = arith.constant 0 : index
    %64 = vector.load %arg8[%c0_55, %c0_56] : memref<1x512xf32, #tpu.memory_space<vmem>>, vector<1x512xf32>
    %65 = vector.broadcast %64 : vector<1x512xf32> to vector<16x512xf32>
    %66 = arith.addf %63, %65 : vector<16x512xf32>
    %67 = vector.extract_strided_slice %66 {offsets = [0, 0], sizes = [16, 256], strides = [1, 1]} : vector<16x512xf32> to vector<16x256xf32>
    %68 = vector.extract_strided_slice %66 {offsets = [0, 256], sizes = [16, 256], strides = [1, 1]} : vector<16x512xf32> to vector<16x256xf32>
    %69 = arith.maximumf %67, %68 : vector<16x256xf32>
    %c0_57 = arith.constant 0 : index
    %c0_58 = arith.constant 0 : index
    %c0_59 = arith.constant 0 : index
    %70 = vector.load %arg9[%c0_57, %c0_58, %c0_59] : memref<3x8x16xf32, #tpu.memory_space<vmem>>, vector<1x8x16xf32>
    %71 = vector.shape_cast %70 : vector<1x8x16xf32> to vector<8x16xf32>
    %cst_60 = arith.constant dense<0.000000e+00> : vector<8x256xf32>
    %72 = tpu.matmul %71, %69, %cst_60 {dimension_numbers = #tpu.dot_dimension_numbers<[1], [0], [0], [1], [0, 0, 1, 1], [], []>} : vector<8x16xf32>, vector<16x256xf32>, vector<8x256xf32> -> vector<8x256xf32>
    %73 = arith.truncf %72 : vector<8x256xf32> to vector<8x256xbf16>
    %c0_61 = arith.constant 0 : index
    %c0_62 = arith.constant 0 : index
    %c0_63 = arith.constant 0 : index
    %74 = vector.load %arg10[%c0_61, %c0_62, %c0_63] : memref<3x256x512xbf16, #tpu.memory_space<vmem>>, vector<1x256x512xbf16>
    %75 = vector.shape_cast %74 : vector<1x256x512xbf16> to vector<256x512xbf16>
    %cst_64 = arith.constant dense<0.000000e+00> : vector<8x512xf32>
    %76 = tpu.matmul %73, %75, %cst_64 {dimension_numbers = #tpu.dot_dimension_numbers<[1], [0], [0], [1], [0, 0, 1, 1], [], []>} : vector<8x256xbf16>, vector<256x512xbf16>, vector<8x512xf32> -> vector<8x512xf32>
    %c1_65 = arith.constant 1 : index
    %c0_66 = arith.constant 0 : index
    %c0_67 = arith.constant 0 : index
    %77 = vector.load %arg9[%c1_65, %c0_66, %c0_67] : memref<3x8x16xf32, #tpu.memory_space<vmem>>, vector<1x8x16xf32>
    %78 = vector.shape_cast %77 : vector<1x8x16xf32> to vector<8x16xf32>
    %cst_68 = arith.constant dense<0.000000e+00> : vector<8x256xf32>
    %79 = tpu.matmul %78, %69, %cst_68 {dimension_numbers = #tpu.dot_dimension_numbers<[1], [0], [0], [1], [0, 0, 1, 1], [], []>} : vector<8x16xf32>, vector<16x256xf32>, vector<8x256xf32> -> vector<8x256xf32>
    %80 = arith.truncf %79 : vector<8x256xf32> to vector<8x256xbf16>
    %c1_69 = arith.constant 1 : index
    %c0_70 = arith.constant 0 : index
    %c0_71 = arith.constant 0 : index
    %81 = vector.load %arg10[%c1_69, %c0_70, %c0_71] : memref<3x256x512xbf16, #tpu.memory_space<vmem>>, vector<1x256x512xbf16>
    %82 = vector.shape_cast %81 : vector<1x256x512xbf16> to vector<256x512xbf16>
    %cst_72 = arith.constant dense<0.000000e+00> : vector<8x512xf32>
    %83 = tpu.matmul %80, %82, %cst_72 {dimension_numbers = #tpu.dot_dimension_numbers<[1], [0], [0], [1], [0, 0, 1, 1], [], []>} : vector<8x256xbf16>, vector<256x512xbf16>, vector<8x512xf32> -> vector<8x512xf32>
    %84 = arith.addf %76, %83 : vector<8x512xf32>
    %c2_73 = arith.constant 2 : index
    %c0_74 = arith.constant 0 : index
    %c0_75 = arith.constant 0 : index
    %85 = vector.load %arg9[%c2_73, %c0_74, %c0_75] : memref<3x8x16xf32, #tpu.memory_space<vmem>>, vector<1x8x16xf32>
    %86 = vector.shape_cast %85 : vector<1x8x16xf32> to vector<8x16xf32>
    %cst_76 = arith.constant dense<0.000000e+00> : vector<8x256xf32>
    %87 = tpu.matmul %86, %69, %cst_76 {dimension_numbers = #tpu.dot_dimension_numbers<[1], [0], [0], [1], [0, 0, 1, 1], [], []>} : vector<8x16xf32>, vector<16x256xf32>, vector<8x256xf32> -> vector<8x256xf32>
    %88 = arith.truncf %87 : vector<8x256xf32> to vector<8x256xbf16>
    %c2_77 = arith.constant 2 : index
    %c0_78 = arith.constant 0 : index
    %c0_79 = arith.constant 0 : index
    %89 = vector.load %arg10[%c2_77, %c0_78, %c0_79] : memref<3x256x512xbf16, #tpu.memory_space<vmem>>, vector<1x256x512xbf16>
    %90 = vector.shape_cast %89 : vector<1x256x512xbf16> to vector<256x512xbf16>
    %cst_80 = arith.constant dense<0.000000e+00> : vector<8x512xf32>
    %91 = tpu.matmul %88, %90, %cst_80 {dimension_numbers = #tpu.dot_dimension_numbers<[1], [0], [0], [1], [0, 0, 1, 1], [], []>} : vector<8x256xbf16>, vector<256x512xbf16>, vector<8x512xf32> -> vector<8x512xf32>
    %92 = arith.addf %84, %91 : vector<8x512xf32>
    %c0_81 = arith.constant 0 : index
    %c0_82 = arith.constant 0 : index
    %93 = vector.load %arg11[%c0_81, %c0_82] : memref<1x512xf32, #tpu.memory_space<vmem>>, vector<1x512xf32>
    %94 = vector.broadcast %93 : vector<1x512xf32> to vector<8x512xf32>
    %95 = arith.addf %92, %94 : vector<8x512xf32>
    %96 = vector.extract_strided_slice %95 {offsets = [0, 0], sizes = [8, 256], strides = [1, 1]} : vector<8x512xf32> to vector<8x256xf32>
    %97 = vector.extract_strided_slice %95 {offsets = [0, 256], sizes = [8, 256], strides = [1, 1]} : vector<8x512xf32> to vector<8x256xf32>
    %98 = arith.maximumf %96, %97 : vector<8x256xf32>
    %c0_83 = arith.constant 0 : index
    %c0_84 = arith.constant 0 : index
    %c0_85 = arith.constant 0 : index
    %99 = vector.load %arg12[%c0_83, %c0_84, %c0_85] : memref<3x8x8xf32, #tpu.memory_space<vmem>>, vector<1x8x8xf32>
    %100 = vector.shape_cast %99 : vector<1x8x8xf32> to vector<8x8xf32>
    %cst_86 = arith.constant dense<0.000000e+00> : vector<8x256xf32>
    %101 = tpu.matmul %100, %98, %cst_86 {dimension_numbers = #tpu.dot_dimension_numbers<[1], [0], [0], [1], [0, 0, 1, 1], [], []>} : vector<8x8xf32>, vector<8x256xf32>, vector<8x256xf32> -> vector<8x256xf32>
    %102 = arith.truncf %101 : vector<8x256xf32> to vector<8x256xbf16>
    %c0_87 = arith.constant 0 : index
    %c0_88 = arith.constant 0 : index
    %c0_89 = arith.constant 0 : index
    %103 = vector.load %arg13[%c0_87, %c0_88, %c0_89] : memref<3x256x512xbf16, #tpu.memory_space<vmem>>, vector<1x256x512xbf16>
    %104 = vector.shape_cast %103 : vector<1x256x512xbf16> to vector<256x512xbf16>
    %cst_90 = arith.constant dense<0.000000e+00> : vector<8x512xf32>
    %105 = tpu.matmul %102, %104, %cst_90 {dimension_numbers = #tpu.dot_dimension_numbers<[1], [0], [0], [1], [0, 0, 1, 1], [], []>} : vector<8x256xbf16>, vector<256x512xbf16>, vector<8x512xf32> -> vector<8x512xf32>
    %c1_91 = arith.constant 1 : index
    %c0_92 = arith.constant 0 : index
    %c0_93 = arith.constant 0 : index
    %106 = vector.load %arg12[%c1_91, %c0_92, %c0_93] : memref<3x8x8xf32, #tpu.memory_space<vmem>>, vector<1x8x8xf32>
    %107 = vector.shape_cast %106 : vector<1x8x8xf32> to vector<8x8xf32>
    %cst_94 = arith.constant dense<0.000000e+00> : vector<8x256xf32>
    %108 = tpu.matmul %107, %98, %cst_94 {dimension_numbers = #tpu.dot_dimension_numbers<[1], [0], [0], [1], [0, 0, 1, 1], [], []>} : vector<8x8xf32>, vector<8x256xf32>, vector<8x256xf32> -> vector<8x256xf32>
    %109 = arith.truncf %108 : vector<8x256xf32> to vector<8x256xbf16>
    %c1_95 = arith.constant 1 : index
    %c0_96 = arith.constant 0 : index
    %c0_97 = arith.constant 0 : index
    %110 = vector.load %arg13[%c1_95, %c0_96, %c0_97] : memref<3x256x512xbf16, #tpu.memory_space<vmem>>, vector<1x256x512xbf16>
    %111 = vector.shape_cast %110 : vector<1x256x512xbf16> to vector<256x512xbf16>
    %cst_98 = arith.constant dense<0.000000e+00> : vector<8x512xf32>
    %112 = tpu.matmul %109, %111, %cst_98 {dimension_numbers = #tpu.dot_dimension_numbers<[1], [0], [0], [1], [0, 0, 1, 1], [], []>} : vector<8x256xbf16>, vector<256x512xbf16>, vector<8x512xf32> -> vector<8x512xf32>
    %113 = arith.addf %105, %112 : vector<8x512xf32>
    %c2_99 = arith.constant 2 : index
    %c0_100 = arith.constant 0 : index
    %c0_101 = arith.constant 0 : index
    %114 = vector.load %arg12[%c2_99, %c0_100, %c0_101] : memref<3x8x8xf32, #tpu.memory_space<vmem>>, vector<1x8x8xf32>
    %115 = vector.shape_cast %114 : vector<1x8x8xf32> to vector<8x8xf32>
    %cst_102 = arith.constant dense<0.000000e+00> : vector<8x256xf32>
    %116 = tpu.matmul %115, %98, %cst_102 {dimension_numbers = #tpu.dot_dimension_numbers<[1], [0], [0], [1], [0, 0, 1, 1], [], []>} : vector<8x8xf32>, vector<8x256xf32>, vector<8x256xf32> -> vector<8x256xf32>
    %117 = arith.truncf %116 : vector<8x256xf32> to vector<8x256xbf16>
    %c2_103 = arith.constant 2 : index
    %c0_104 = arith.constant 0 : index
    %c0_105 = arith.constant 0 : index
    %118 = vector.load %arg13[%c2_103, %c0_104, %c0_105] : memref<3x256x512xbf16, #tpu.memory_space<vmem>>, vector<1x256x512xbf16>
    %119 = vector.shape_cast %118 : vector<1x256x512xbf16> to vector<256x512xbf16>
    %cst_106 = arith.constant dense<0.000000e+00> : vector<8x512xf32>
    %120 = tpu.matmul %117, %119, %cst_106 {dimension_numbers = #tpu.dot_dimension_numbers<[1], [0], [0], [1], [0, 0, 1, 1], [], []>} : vector<8x256xbf16>, vector<256x512xbf16>, vector<8x512xf32> -> vector<8x512xf32>
    %121 = arith.addf %113, %120 : vector<8x512xf32>
    %c0_107 = arith.constant 0 : index
    %c0_108 = arith.constant 0 : index
    %122 = vector.load %arg14[%c0_107, %c0_108] : memref<1x512xf32, #tpu.memory_space<vmem>>, vector<1x512xf32>
    %123 = vector.broadcast %122 : vector<1x512xf32> to vector<8x512xf32>
    %124 = arith.addf %121, %123 : vector<8x512xf32>
    %125 = vector.extract_strided_slice %124 {offsets = [0, 0], sizes = [8, 256], strides = [1, 1]} : vector<8x512xf32> to vector<8x256xf32>
    %126 = vector.extract_strided_slice %124 {offsets = [0, 256], sizes = [8, 256], strides = [1, 1]} : vector<8x512xf32> to vector<8x256xf32>
    %127 = arith.maximumf %125, %126 : vector<8x256xf32>
    %c0_109 = arith.constant 0 : index
    %c0_110 = arith.constant 0 : index
    %c0_111 = arith.constant 0 : index
    %128 = vector.load %arg15[%c0_109, %c0_110, %c0_111] : memref<3x8x8xf32, #tpu.memory_space<vmem>>, vector<1x8x8xf32>
    %129 = vector.shape_cast %128 : vector<1x8x8xf32> to vector<8x8xf32>
    %cst_112 = arith.constant dense<0.000000e+00> : vector<8x256xf32>
    %130 = tpu.matmul %129, %127, %cst_112 {dimension_numbers = #tpu.dot_dimension_numbers<[1], [0], [0], [1], [0, 0, 1, 1], [], []>} : vector<8x8xf32>, vector<8x256xf32>, vector<8x256xf32> -> vector<8x256xf32>
    %131 = arith.truncf %130 : vector<8x256xf32> to vector<8x256xbf16>
    %c0_113 = arith.constant 0 : index
    %c0_114 = arith.constant 0 : index
    %c0_115 = arith.constant 0 : index
    %132 = vector.load %arg16[%c0_113, %c0_114, %c0_115] : memref<3x256x512xbf16, #tpu.memory_space<vmem>>, vector<1x256x512xbf16>
    %133 = vector.shape_cast %132 : vector<1x256x512xbf16> to vector<256x512xbf16>
    %cst_116 = arith.constant dense<0.000000e+00> : vector<8x512xf32>
    %134 = tpu.matmul %131, %133, %cst_116 {dimension_numbers = #tpu.dot_dimension_numbers<[1], [0], [0], [1], [0, 0, 1, 1], [], []>} : vector<8x256xbf16>, vector<256x512xbf16>, vector<8x512xf32> -> vector<8x512xf32>
    %c1_117 = arith.constant 1 : index
    %c0_118 = arith.constant 0 : index
    %c0_119 = arith.constant 0 : index
    %135 = vector.load %arg15[%c1_117, %c0_118, %c0_119] : memref<3x8x8xf32, #tpu.memory_space<vmem>>, vector<1x8x8xf32>
    %136 = vector.shape_cast %135 : vector<1x8x8xf32> to vector<8x8xf32>
    %cst_120 = arith.constant dense<0.000000e+00> : vector<8x256xf32>
    %137 = tpu.matmul %136, %127, %cst_120 {dimension_numbers = #tpu.dot_dimension_numbers<[1], [0], [0], [1], [0, 0, 1, 1], [], []>} : vector<8x8xf32>, vector<8x256xf32>, vector<8x256xf32> -> vector<8x256xf32>
    %138 = arith.truncf %137 : vector<8x256xf32> to vector<8x256xbf16>
    %c1_121 = arith.constant 1 : index
    %c0_122 = arith.constant 0 : index
    %c0_123 = arith.constant 0 : index
    %139 = vector.load %arg16[%c1_121, %c0_122, %c0_123] : memref<3x256x512xbf16, #tpu.memory_space<vmem>>, vector<1x256x512xbf16>
    %140 = vector.shape_cast %139 : vector<1x256x512xbf16> to vector<256x512xbf16>
    %cst_124 = arith.constant dense<0.000000e+00> : vector<8x512xf32>
    %141 = tpu.matmul %138, %140, %cst_124 {dimension_numbers = #tpu.dot_dimension_numbers<[1], [0], [0], [1], [0, 0, 1, 1], [], []>} : vector<8x256xbf16>, vector<256x512xbf16>, vector<8x512xf32> -> vector<8x512xf32>
    %142 = arith.addf %134, %141 : vector<8x512xf32>
    %c2_125 = arith.constant 2 : index
    %c0_126 = arith.constant 0 : index
    %c0_127 = arith.constant 0 : index
    %143 = vector.load %arg15[%c2_125, %c0_126, %c0_127] : memref<3x8x8xf32, #tpu.memory_space<vmem>>, vector<1x8x8xf32>
    %144 = vector.shape_cast %143 : vector<1x8x8xf32> to vector<8x8xf32>
    %cst_128 = arith.constant dense<0.000000e+00> : vector<8x256xf32>
    %145 = tpu.matmul %144, %127, %cst_128 {dimension_numbers = #tpu.dot_dimension_numbers<[1], [0], [0], [1], [0, 0, 1, 1], [], []>} : vector<8x8xf32>, vector<8x256xf32>, vector<8x256xf32> -> vector<8x256xf32>
    %146 = arith.truncf %145 : vector<8x256xf32> to vector<8x256xbf16>
    %c2_129 = arith.constant 2 : index
    %c0_130 = arith.constant 0 : index
    %c0_131 = arith.constant 0 : index
    %147 = vector.load %arg16[%c2_129, %c0_130, %c0_131] : memref<3x256x512xbf16, #tpu.memory_space<vmem>>, vector<1x256x512xbf16>
    %148 = vector.shape_cast %147 : vector<1x256x512xbf16> to vector<256x512xbf16>
    %cst_132 = arith.constant dense<0.000000e+00> : vector<8x512xf32>
    %149 = tpu.matmul %146, %148, %cst_132 {dimension_numbers = #tpu.dot_dimension_numbers<[1], [0], [0], [1], [0, 0, 1, 1], [], []>} : vector<8x256xbf16>, vector<256x512xbf16>, vector<8x512xf32> -> vector<8x512xf32>
    %150 = arith.addf %142, %149 : vector<8x512xf32>
    %c0_133 = arith.constant 0 : index
    %c0_134 = arith.constant 0 : index
    %151 = vector.load %arg17[%c0_133, %c0_134] : memref<1x512xf32, #tpu.memory_space<vmem>>, vector<1x512xf32>
    %152 = vector.broadcast %151 : vector<1x512xf32> to vector<8x512xf32>
    %153 = arith.addf %150, %152 : vector<8x512xf32>
    %154 = vector.extract_strided_slice %153 {offsets = [0, 0], sizes = [8, 256], strides = [1, 1]} : vector<8x512xf32> to vector<8x256xf32>
    %155 = vector.extract_strided_slice %153 {offsets = [0, 256], sizes = [8, 256], strides = [1, 1]} : vector<8x512xf32> to vector<8x256xf32>
    %156 = arith.maximumf %154, %155 : vector<8x256xf32>
    %c0_135 = arith.constant 0 : index
    %c0_136 = arith.constant 0 : index
    %c0_137 = arith.constant 0 : index
    %157 = vector.load %arg18[%c0_135, %c0_136, %c0_137] : memref<1x8x8xf32, #tpu.memory_space<vmem>>, vector<1x8x8xf32>
    %158 = vector.shape_cast %157 : vector<1x8x8xf32> to vector<8x8xf32>
    %cst_138 = arith.constant dense<0.000000e+00> : vector<8x256xf32>
    %159 = tpu.matmul %158, %156, %cst_138 {dimension_numbers = #tpu.dot_dimension_numbers<[1], [0], [0], [1], [0, 0, 1, 1], [], []>} : vector<8x8xf32>, vector<8x256xf32>, vector<8x256xf32> -> vector<8x256xf32>
    %160 = arith.truncf %159 : vector<8x256xf32> to vector<8x256xbf16>
    %c0_139 = arith.constant 0 : index
    %c0_140 = arith.constant 0 : index
    %c0_141 = arith.constant 0 : index
    %161 = vector.load %arg19[%c0_139, %c0_140, %c0_141] : memref<1x256x512xbf16, #tpu.memory_space<vmem>>, vector<1x256x512xbf16>
    %162 = vector.shape_cast %161 : vector<1x256x512xbf16> to vector<256x512xbf16>
    %cst_142 = arith.constant dense<0.000000e+00> : vector<8x512xf32>
    %163 = tpu.matmul %160, %162, %cst_142 {dimension_numbers = #tpu.dot_dimension_numbers<[1], [0], [0], [1], [0, 0, 1, 1], [], []>} : vector<8x256xbf16>, vector<256x512xbf16>, vector<8x512xf32> -> vector<8x512xf32>
    %c0_143 = arith.constant 0 : index
    %c0_144 = arith.constant 0 : index
    %164 = vector.load %arg20[%c0_143, %c0_144] : memref<1x512xf32, #tpu.memory_space<vmem>>, vector<1x512xf32>
    %165 = vector.broadcast %164 : vector<1x512xf32> to vector<8x512xf32>
    %166 = arith.addf %163, %165 : vector<8x512xf32>
    %167 = vector.extract_strided_slice %166 {offsets = [0, 0], sizes = [8, 256], strides = [1, 1]} : vector<8x512xf32> to vector<8x256xf32>
    %168 = vector.extract_strided_slice %166 {offsets = [0, 256], sizes = [8, 256], strides = [1, 1]} : vector<8x512xf32> to vector<8x256xf32>
    %169 = arith.maximumf %167, %168 : vector<8x256xf32>
    %170 = arith.truncf %169 : vector<8x256xf32> to vector<8x256xbf16>
    %c0_145 = arith.constant 0 : index
    %c0_146 = arith.constant 0 : index
    %171 = vector.load %arg21[%c0_145, %c0_146] : memref<256x10xbf16, #tpu.memory_space<vmem>>, vector<256x10xbf16>
    %cst_147 = arith.constant dense<0.000000e+00> : vector<8x10xf32>
    %172 = tpu.matmul %170, %171, %cst_147 {dimension_numbers = #tpu.dot_dimension_numbers<[1], [0], [0], [1], [0, 0, 1, 1], [], []>} : vector<8x256xbf16>, vector<256x10xbf16>, vector<8x10xf32> -> vector<8x10xf32>
    %173 = vector.extract_strided_slice %172 {offsets = [0, 0], sizes = [1, 10], strides = [1, 1]} : vector<8x10xf32> to vector<1x10xf32>
    %c0_148 = arith.constant 0 : index
    %c0_149 = arith.constant 0 : index
    %174 = vector.load %arg22[%c0_148, %c0_149] : memref<1x10xf32, #tpu.memory_space<vmem>>, vector<1x10xf32>
    %175 = arith.addf %173, %174 : vector<1x10xf32>
    %c0_150 = arith.constant 0 : index
    %c0_151 = arith.constant 0 : index
    %c0_152 = arith.constant 0 : index
    %176 = vector.load %arg23[%c0_150, %c0_151, %c0_152] : memref<1x1x10xf32, #tpu.memory_space<vmem>>, vector<1x1x10xf32>
    %177 = vector.shape_cast %176 : vector<1x1x10xf32> to vector<1x10xf32>
    %178 = vector.shape_cast %175 : vector<1x10xf32> to vector<1x1x10xf32>
    tpu.vector_store %arg23[%c0_150, %c0_151, %c0_152], %178 {strides = array<i32>} : memref<1x1x10xf32, #tpu.memory_space<vmem>>, vector<1x1x10xf32>,
    return
  }
  func.func @transform_0(%arg0: i32) -> (i32, i32, i32) {
    %c0_i32 = arith.constant 0 : i32
    %c0_i32_0 = arith.constant 0 : i32
    %c0_i32_1 = arith.constant 0 : i32
    return %arg0, %c0_i32, %c0_i32_0 : i32, i32, i32
  }
  func.func @transform_1(%arg0: i32) -> (i32, i32, i32) {
    %c0_i32 = arith.constant 0 : i32
    %c0_i32_0 = arith.constant 0 : i32
    %c0_i32_1 = arith.constant 0 : i32
    %c0_i32_2 = arith.constant 0 : i32
    return %c0_i32, %c0_i32_0, %c0_i32_1 : i32, i32, i32
  }
  func.func @transform_2(%arg0: i32) -> (i32, i32, i32) {
    %c0_i32 = arith.constant 0 : i32
    %c0_i32_0 = arith.constant 0 : i32
    %c0_i32_1 = arith.constant 0 : i32
    %c0_i32_2 = arith.constant 0 : i32
    return %c0_i32, %c0_i32_0, %c0_i32_1 : i32, i32, i32
  }
  func.func @transform_3(%arg0: i32) -> (i32, i32, i32) {
    %c0_i32 = arith.constant 0 : i32
    %c0_i32_0 = arith.constant 0 : i32
    %c0_i32_1 = arith.constant 0 : i32
    %c0_i32_2 = arith.constant 0 : i32
    return %c0_i32, %c0_i32_0, %c0_i32_1 : i32, i32, i32
  }
  func.func @transform_4(%arg0: i32) -> (i32, i32) {
    %c0_i32 = arith.constant 0 : i32
    %c0_i32_0 = arith.constant 0 : i32
    %c0_i32_1 = arith.constant 0 : i32
    return %c0_i32, %c0_i32_0 : i32, i32
  }
  func.func @transform_5(%arg0: i32) -> (i32, i32, i32) {
    %c0_i32 = arith.constant 0 : i32
    %c0_i32_0 = arith.constant 0 : i32
    %c0_i32_1 = arith.constant 0 : i32
    %c0_i32_2 = arith.constant 0 : i32
    return %c0_i32, %c0_i32_0, %c0_i32_1 : i32, i32, i32
  }
  func.func @transform_6(%arg0: i32) -> (i32, i32, i32) {
    %c0_i32 = arith.constant 0 : i32
    %c0_i32_0 = arith.constant 0 : i32
    %c0_i32_1 = arith.constant 0 : i32
    %c0_i32_2 = arith.constant 0 : i32
    return %c0_i32, %c0_i32_0, %c0_i32_1 : i32, i32, i32
  }
  func.func @transform_7(%arg0: i32) -> (i32, i32) {
    %c0_i32 = arith.constant 0 : i32
    %c0_i32_0 = arith.constant 0 : i32
    %c0_i32_1 = arith.constant 0 : i32
    return %c0_i32, %c0_i32_0 : i32, i32
  }
  func.func @transform_8(%arg0: i32) -> (i32, i32, i32) {
    %c0_i32 = arith.constant 0 : i32
    %c0_i32_0 = arith.constant 0 : i32
    %c0_i32_1 = arith.constant 0 : i32
    %c0_i32_2 = arith.constant 0 : i32
    return %c0_i32, %c0_i32_0, %c0_i32_1 : i32, i32, i32
  }
  func.func @transform_9(%arg0: i32) -> (i32, i32, i32) {
    %c0_i32 = arith.constant 0 : i32
    %c0_i32_0 = arith.constant 0 : i32
    %c0_i32_1 = arith.constant 0 : i32
    %c0_i32_2 = arith.constant 0 : i32
    return %c0_i32, %c0_i32_0, %c0_i32_1 : i32, i32, i32
  }
  func.func @transform_10(%arg0: i32) -> (i32, i32) {
    %c0_i32 = arith.constant 0 : i32
    %c0_i32_0 = arith.constant 0 : i32
    %c0_i32_1 = arith.constant 0 : i32
    return %c0_i32, %c0_i32_0 : i32, i32
  }
  func.func @transform_11(%arg0: i32) -> (i32, i32, i32) {
    %c0_i32 = arith.constant 0 : i32
    %c0_i32_0 = arith.constant 0 : i32
    %c0_i32_1 = arith.constant 0 : i32
    %c0_i32_2 = arith.constant 0 : i32
    return %c0_i32, %c0_i32_0, %c0_i32_1 : i32, i32, i32
  }
  func.func @transform_12(%arg0: i32) -> (i32, i32, i32) {
    %c0_i32 = arith.constant 0 : i32
    %c0_i32_0 = arith.constant 0 : i32
    %c0_i32_1 = arith.constant 0 : i32
    %c0_i32_2 = arith.constant 0 : i32
    return %c0_i32, %c0_i32_0, %c0_i32_1 : i32, i32, i32
  }
  func.func @transform_13(%arg0: i32) -> (i32, i32) {
    %c0_i32 = arith.constant 0 : i32
    %c0_i32_0 = arith.constant 0 : i32
    %c0_i32_1 = arith.constant 0 : i32
    return %c0_i32, %c0_i32_0 : i32, i32
  }
  func.func @transform_14(%arg0: i32) -> (i32, i32, i32) {
    %c0_i32 = arith.constant 0 : i32
    %c0_i32_0 = arith.constant 0 : i32
    %c0_i32_1 = arith.constant 0 : i32
    %c0_i32_2 = arith.constant 0 : i32
    return %c0_i32, %c0_i32_0, %c0_i32_1 : i32, i32, i32
  }
  func.func @transform_15(%arg0: i32) -> (i32, i32, i32) {
    %c0_i32 = arith.constant 0 : i32
    %c0_i32_0 = arith.constant 0 : i32
    %c0_i32_1 = arith.constant 0 : i32
    %c0_i32_2 = arith.constant 0 : i32
    return %c0_i32, %c0_i32_0, %c0_i32_1 : i32, i32, i32
  }
  func.func @transform_16(%arg0: i32) -> (i32, i32) {
    %c0_i32 = arith.constant 0 : i32
    %c0_i32_0 = arith.constant 0 : i32
    %c0_i32_1 = arith.constant 0 : i32
    return %c0_i32, %c0_i32_0 : i32, i32
  }
  func.func @transform_17(%arg0: i32) -> (i32, i32, i32) {
    %c0_i32 = arith.constant 0 : i32
    %c0_i32_0 = arith.constant 0 : i32
    %c0_i32_1 = arith.constant 0 : i32
    %c0_i32_2 = arith.constant 0 : i32
    return %c0_i32, %c0_i32_0, %c0_i32_1 : i32, i32, i32
  }
  func.func @transform_18(%arg0: i32) -> (i32, i32, i32) {
    %c0_i32 = arith.constant 0 : i32
    %c0_i32_0 = arith.constant 0 : i32
    %c0_i32_1 = arith.constant 0 : i32
    %c0_i32_2 = arith.constant 0 : i32
    return %c0_i32, %c0_i32_0, %c0_i32_1 : i32, i32, i32
  }
  func.func @transform_19(%arg0: i32) -> (i32, i32) {
    %c0_i32 = arith.constant 0 : i32
    %c0_i32_0 = arith.constant 0 : i32
    %c0_i32_1 = arith.constant 0 : i32
    return %c0_i32, %c0_i32_0 : i32, i32
  }
  func.func @transform_20(%arg0: i32) -> (i32, i32) {
    %c0_i32 = arith.constant 0 : i32
    %c0_i32_0 = arith.constant 0 : i32
    %c0_i32_1 = arith.constant 0 : i32
    return %c0_i32, %c0_i32_0 : i32, i32
  }
  func.func @transform_21(%arg0: i32) -> (i32, i32) {
    %c0_i32 = arith.constant 0 : i32
    %c0_i32_0 = arith.constant 0 : i32
    %c0_i32_1 = arith.constant 0 : i32
    return %c0_i32, %c0_i32_0 : i32, i32
  }
  func.func @transform_22(%arg0: i32) -> (i32, i32, i32) {
    %c0_i32 = arith.constant 0 : i32
    %c0_i32_0 = arith.constant 0 : i32
    %c0_i32_1 = arith.constant 0 : i32
    return %arg0, %c0_i32, %c0_i32_0 : i32, i32, i32
  }
}

</mosaic_0001>

<bundles_post_ra>
// kernel: lipconvnet_forward.1
= control target key start
LH: loop header
LB: loop body
LE: loop exit
PB: predicated region body
PF: predicated region fallthrough
CT: control target
= control target key end

     0   :  { %s15239_s0 = inlined_call_operand.vmem [shape: f32[2,32,96], index: 0, kind: input, shape index: {}]   ;;  %s15240_s1 = inlined_call_operand.vmem [shape: f32[2,1,96], index: 1, kind: input, shape index: {}]   ;;  %s15241_s2 = inlined_call_operand.vmem [shape: f32[3,32,32], index: 2, kind: input, shape index: {}]   ;;  %s15242_s3 = inlined_call_operand.vmem [shape: bf16[3,96,256], index: 3, kind: input, shape index: {}]   ;;  %s15243_s4 = inlined_call_operand.vmem [shape: f32[1,256], index: 4, kind: input, shape index: {}]   ;;  %s15244_s5 = inlined_call_operand.vmem [shape: f32[3,16,32], index: 5, kind: input, shape index: {}]   ;;  %s15245_s6 = inlined_call_operand.vmem [shape: bf16[3,256,512], index: 6, kind: input, shape index: {}]   ;;  %s15246_s7 = inlined_call_operand.vmem [shape: f32[1,512], index: 7, kind: input, shape index: {}]   ;;  %s15247_s8 = inlined_call_operand.vmem [shape: f32[3,8,16], index: 8, kind: input, shape index: {}]   ;;  %s15248_s9 = inlined_call_operand.vmem [shape: bf16[3,256,512], index: 9, kind: input, shape index: {}]   ;;  %s15249_s10 = inlined_call_operand.vmem [shape: f32[1,512], index: 10, kind: input, shape index: {}]   ;;  %s15250_s11 = inlined_call_operand.vmem [shape: f32[3,8,8], index: 11, kind: input, shape index: {}]   ;;  %s15251_s12 = inlined_call_operand.vmem [shape: bf16[3,256,512], index: 12, kind: input, shape index: {}]   ;;  %s15252_s13 = inlined_call_operand.vmem [shape: f32[1,512], index: 13, kind: input, shape index: {}]   ;;  %s15253_s14 = inlined_call_operand.vmem [shape: f32[3,8,8], index: 14, kind: input, shape index: {}]   ;;  %s15254_s15 = inlined_call_operand.vmem [shape: bf16[3,256,512], index: 15, kind: input, shape index: {}]   ;;  %s15255_s16 = inlined_call_operand.vmem [shape: f32[1,512], index: 16, kind: input, shape index: {}]   ;;  %s15256_s17 = inlined_call_operand.vmem [shape: f32[1,8,8], index: 17, kind: input, shape index: {}]   ;;  %s15257_s18 = inlined_call_operand.vmem [shape: bf16[1,256,512], index: 18, kind: input, shape index: {}]   ;;  %s15258_s19 = inlined_call_operand.vmem [shape: f32[1,512], index: 19, kind: input, shape index: {}]   ;;  %s15259_s20 = inlined_call_operand.vmem [shape: bf16[256,10], index: 20, kind: input, shape index: {}]   ;;  %s15260_s21 = inlined_call_operand.vmem [shape: f32[1,10], index: 21, kind: input, shape index: {}]   ;;  %s15261_s22 = inlined_call_operand.hbm [shape: f32[2,1,10], index: 22, kind: output, shape index: {}]  }
   0x1   :  { %15279 = sst [smem:[#allocation14_spill]] %s15239_s0 }
   0x2   :  { %15280 = sst [smem:[#allocation15_spill]] %s15240_s1 }
   0x3   :  { %15281 = sst [smem:[#allocation16_spill]] %s15241_s2 }
   0x4   :  { %15282 = sst [smem:[#allocation17_spill]] %s15242_s3 }
   0x5   :  { %15283 = sst [smem:[#allocation18_spill]] %s15243_s4 }
   0x6   :  { %15284 = sst [smem:[#allocation19_spill]] %s15244_s5 }
   0x7   :  { %15285 = sst [smem:[#allocation20_spill]] %s15245_s6 }
   0x8   :  { %15286 = sst [smem:[#allocation21_spill]] %s15258_s19 }
   0x9   :  { %15287 = sst [smem:[#allocation22_spill]] %s15260_s21 }
   0xa   :  { %15288 = sst [smem:[#allocation23_spill]] %s15261_s22 }
   0xb   :  { %27 = vsyncpa [#allocation3], 0 }
   0xc   :  { %29 = vsyncpa [#allocation3 + $0x1], 0  ;;  %s12182_s3 = smov 0   ;;  %s12184_s28 = smov 0  }
   0xd   :  { %s12186_s29 = smov 0   ;;  %s12188_s30 = smov 0  }
   0xe LB: > { %15289 = sst [smem:[#allocation5_spill]] %s12050_s3  ;;  %s12203_s4 = sadd.s32 4294967295, %s12062_s30   ;;  %s12062_s30 = sphi %s12188_s30, %s15318_s30   ;;  %s12058_s29 = sphi %s12186_s29, %s15321_s29   ;;  %s12054_s28 = sphi %s12184_s28, %s15320_s28   ;;  %s12050_s3 = sphi %s12182_s3, %s15319_s3  }
   0xf   : > { %15290 = sst [smem:[#allocation6_spill]] %s12054_s28  ;;  %s8976_s0 = sadd.s32 4294967294, %s12062_s30  }
  0x10   : > { %15291 = sst [smem:[#allocation7_spill]] %s12058_s29  ;;  %s12207_s23 = sadd.s32 1, %s12062_s30  }
  0x11   : > { %15292 = sst [smem:[#allocation8_spill]] %s12062_s30  ;;  %s509_s1 = sadd.s32 1, %s12058_s29 }
  0x12   : > { %15293 = sst [smem:[#allocation9_spill]] %s12203_s4  ;;  %s506_s5 = ssub.s32 %s12062_s30, %s12207_s23 }
  0x13   : > { %15294 = sst [smem:[#allocation10_spill]] %s12207_s23  ;;  %p519_p0 = scmp.ne.s32.totalorder %s12058_s29, %s12054_s28 }
  0x14   : > { %p507_p1 = scmp.eq.s32.totalorder %s506_s5, 0  ;;  %p520_p2 = scmp.eq.s32.totalorder %s12203_s4, 1 }
  0x15   : > { %p525_p3 = scmp.ne.s32.totalorder %s12054_s28, %s12050_s3  ;;  %p526_p4 = scmp.eq.s32.totalorder %s8976_s0, 1 }
  0x16   : > { %s12218_s24 = scalar_select %p507_p1, %s12058_s29, %s509_s1  }
  0x17   : > { %p12220_p5 = por %p520_p2, %p519_p0  ;;  %p12224_p6 = por %p526_p4, %p525_p3 }
  0x18   : > { %15295 = sst [smem:[#allocation11_spill]] %s12218_s24  ;;  %p8979_p7 = scmp.ge.s32.totalorder %s12062_s30, 1 }
  0x19   : > { %s15296_s6 = scalar_select %p12220_p5, 1, 0 }
  0x1a   : > { %s15298_s25 = scalar_select %p12224_p6, 1, 0 }
  0x1b   : > { %15297 = sst [smem:[#allocation12_spill]] %s15296_s6  ;;  %p615_p8 = scmp.lt.s32.totalorder %s12062_s30, 3 }
  0x1c   : > { %15299 = sst [smem:[#allocation13_spill]] %s15298_s25 }
  0x1d   : > { %p616_p9 = pnand %p8979_p7, %p615_p8 }
  0x1e   : > { %p676_p10 = scmp.lt.s32.totalorder (!%p616_p9), %s12203_s4, 1  ;;  %s15300_s27 = sld [smem:[#allocation16_spill]] (!%p616_p9)  ;;  %vm713_vm0 = vcmask (!%p616_p9), 261120   ;;  %v12064_v41 = vmov (!%p616_p9), 0   ;;  %vm1002_vm1 = vcmask (!%p616_p9), 785408   ;;  %vm3171_vm2 = vcmask (!%p616_p9), 130048  }
  0x1f   : > { %619 = sbr.rel (%p616_p9) target bundleno = 4160 (0x1040), region = 108  ;;  %s15301_s29 = sld [smem:[#allocation15_spill]] (!%p616_p9)  ;;  %1041 = vmatprep.mubr.bf16.mxu0 (!%p616_p9), %v12064_v41  ;;  %vm4837_vm3 = vcmask (!%p616_p9), 64512   ;;  %vm8906_vm4 = vcmask (!%p616_p9), 73728  }
  0x20   : > { %s15303_s6 = sld [smem:[#allocation14_spill]] (!%p616_p9)  ;;  %s15304_s2 = sld [smem:[#allocation17_spill]] (!%p616_p9) }
  0x21   : > { %s15305_s28 = sld [smem:[#allocation20_spill]] (!%p616_p9)  ;;  %s15307_s25 = sld [smem:[#allocation18_spill]] (!%p616_p9) }
  0x22   : > { %s15308_s5 = sld [smem:[#allocation19_spill]] (!%p616_p9)  ;;  %s15311_s26 = sld [smem:[#allocation9_spill]] (!%p616_p9) }
  0x23   : > { %s12066_s3 = smov (!%p616_p9), [#allocation2]  }
  0x24   : > { %v709_v0 = vld [vmem:[%s15300_s27] sm:$0xff] (!%p616_p9)  ;;  %v710_v24 = vld [vmem:[%s15300_s27 + $0x8] sm:$0xff] (!%p616_p9)  ;;  %v711_v25 = vld [vmem:[%s15300_s27 + $0x10] sm:$0xff] (!%p616_p9) }
  0x25   : > { %10515 = vmatprep.mubr.msk.f32.mxu1 (!%p616_p9), %vm713_vm0, %v709_v0  ;;  %s15302_s23 = smov (!%p616_p9), %s15301_s29  ;;  %v8982_v1 = vld [vmem:[%s15301_s29] ss:$0 sm:$0xff] (!%p616_p9)  ;;  %v712_v26 = vld [vmem:[%s15300_s27 + $0x18] sm:$0xff] (!%p616_p9)  ;;  %v8990_v28 = vld [vmem:[%s15300_s27 + $0x28] sm:$0xff] (!%p616_p9)  ;;  %s15312_s29 = sld [smem:[#allocation22_spill]] (!%p616_p9) }
  0x26   : > { %s677_s0 = scalar_select %p676_p10, %s12203_s4, 1  ;;  %v8984_v2 = vld [vmem:[%s15302_s23 + $0x1] ss:$0 sm:$0xff]  ;;  %v10682_v3 = vld [vmem:[%s15304_s2 + $0x64] ss:$8 sps:$4 sm:$0xff]   ;;  %v8991_v29 = vld [vmem:[%s15300_s27 + $0x30] sm:$0xff] }
  0x27   : > { %v10684_v4 = vld [vmem:[%s15304_s2 + $0x60] ss:$8 sps:$4 sm:$0xff]   ;;  %1009 = vmatprep.subr.bf16.mxu0 %v10682_v3  ;;  %v10685_v13 = vld [vmem:[%s15304_s2 + $0x74] ss:$8 sps:$4 sm:$0xff]   ;;  %v10687_v14 = vld [vmem:[%s15304_s2 + $0x70] ss:$8 sps:$4 sm:$0xff]   ;;  %s15306_s19 = smov %s15305_s28 }
  0x28   : > { %s10460_s1 = sshll.u32 %s677_s0, 5  ;;  %1010 = vmatpush1.bf16.msra.mxu0 %v10684_v4  ;;  %v10688_v18 = vld [vmem:[%s15304_s2 + $0x84] ss:$8 sps:$4 sm:$0xff]   ;;  %v10690_v20 = vld [vmem:[%s15304_s2 + $0x80] ss:$8 sps:$4 sm:$0xff]   ;;  %v8992_v30 = vld [vmem:[%s15300_s27 + $0x38] sm:$0xff] }
  0x29   : > { %s680_s21 = scalar_lea.vmem %s15303_s6, %s10460_s1  ;;  %1011 = vmatprep.subr.bf16.mxu0 %v10685_v13  ;;  %v10691_v22 = vld [vmem:[%s15304_s2 + $0x94] ss:$8 sps:$4 sm:$0xff]   ;;  %v8989_v27 = vld [vmem:[%s15300_s27 + $0x20] sm:$0xff]  ;;  %v9038_v32 = vld [vmem:[%s15300_s27 + $0x48] sm:$0xff]  ;;  %s15309_s0 = sld [smem:[#allocation21_spill]] }
  0x2a   : > { %v682_v5 = vld [vmem:[%s680_s21] sm:$0xff]  ;;  %v683_v6 = vld [vmem:[%s680_s21 + $0x8] sm:$0xff]  ;;  %v684_v7 = vld [vmem:[%s680_s21 + $0x10] sm:$0xff]  ;;  %s15310_s1 = sld [smem:[#allocation6_spill]] }
  0x2b   : > { %v693_v8 = vsub.f32 %v682_v5, %v8982_v1  ;;  %v694_v9 = vsub.f32 %v683_v6, %v8982_v1  ;;  %v685_v10 = vld [vmem:[%s680_s21 + $0x18] sm:$0xff]  ;;  %v695_v11 = vsub.f32 %v684_v7, %v8982_v1  ;;  %v9037_v31 = vld [vmem:[%s15300_s27 + $0x40] sm:$0xff]  ;;  %v9039_v33 = vld [vmem:[%s15300_s27 + $0x50] sm:$0xff]  ;;  %s10457_s21 = sshll.u32 %s15311_s26, 4 }
  0x2c   : > { %v696_v12 = vsub.f32 %v685_v10, %v8982_v1  ;;  %1012 = vmatpush1.bf16.msra.mxu0 %v10687_v14  ;;  %v9040_v34 = vld [vmem:[%s15300_s27 + $0x58] sm:$0xff]  ;;  %v10694_v36 = vld [vmem:[%s15304_s2 + $0xa4] ss:$8 sps:$4 sm:$0xff]   ;;  %v10696_v37 = vld [vmem:[%s15304_s2 + $0xa0] ss:$8 sps:$4 sm:$0xff]  }
  0x2d   : > { %v705_v15 = vmul.f32 %v8984_v2, %v693_v8  ;;  %v706_v16 = vmul.f32 %v8984_v2, %v694_v9  ;;  %v707_v17 = vmul.f32 %v8984_v2, %v695_v11  ;;  %1013 = vmatprep.subr.bf16.mxu0 %v10688_v18  ;;  %v10693_v35 = vld [vmem:[%s15304_s2 + $0x90] ss:$8 sps:$4 sm:$0xff]   ;;  %v10697_v38 = vld [vmem:[%s15304_s2 + $0xb4] ss:$8 sps:$4 sm:$0xff]   ;;  %v10702_v40 = vld [vmem:[%s15304_s2 + $0x4] ss:$8 sps:$4 sm:$0xff]  }
  0x2e   : > { %v708_v19 = vmul.f32 %v8984_v2, %v696_v12  ;;  %v10699_v39 = vld [vmem:[%s15304_s2 + $0xb0] ss:$8 sps:$4 sm:$0xff]   ;;  %v10700_v48 = vld [vmem:[%s15304_s2] ss:$8 sps:$4 sm:$0xff]   ;;  %v10705_v50 = vld [vmem:[%s15304_s2 + $0x14] ss:$8 sps:$4 sm:$0xff]  }
  0x2f   : > { %v10549_v21 = vpack.c.bf16 %v706_v16, %v705_v15  ;;  %v10703_v53 = vld [vmem:[%s15304_s2 + $0x10] ss:$8 sps:$4 sm:$0xff]   ;;  %v10708_v54 = vld [vmem:[%s15304_s2 + $0x24] ss:$8 sps:$4 sm:$0xff]   ;;  %v10706_v58 = vld [vmem:[%s15304_s2 + $0x20] ss:$8 sps:$4 sm:$0xff]  }
  0x30   : > { %v10553_v23 = vpack.c.bf16 %v708_v19, %v707_v17  ;;  %1014 = vmatpush1.bf16.msra.mxu0 %v10690_v20  ;;  %v10711_v59 = vld [vmem:[%s15304_s2 + $0x34] ss:$8 sps:$4 sm:$0xff]   ;;  %v10709_v63 = vld [vmem:[%s15304_s2 + $0x30] ss:$8 sps:$4 sm:$0xff]   ;;  %v10714_v0 = vld [vmem:[%s15304_s2 + $0x44] ss:$8 sps:$4 sm:$0xff]  }
  0x31   : > { %10550 = vmatprep.subr.bf16.mxu1 %v10549_v21  ;;  %1015 = vmatprep.subr.bf16.mxu0 %v10691_v22  ;;  %v10712_v4 = vld [vmem:[%s15304_s2 + $0x40] ss:$8 sps:$4 sm:$0xff]   ;;  %v10717_v5 = vld [vmem:[%s15304_s2 + $0x54] ss:$8 sps:$4 sm:$0xff]   ;;  %v10715_v6 = vld [vmem:[%s15304_s2 + $0x50] ss:$8 sps:$4 sm:$0xff]  }
  0x32   : > { %10552 = vmatpush3.bf16.msra.mxu1 %v10549_v21  ;;  %v10720_v7 = vld [vmem:[%s15304_s2 + $0xc4] ss:$8 sps:$4 sm:$0xff]   ;;  %v10718_v8 = vld [vmem:[%s15304_s2 + $0xc0] ss:$8 sps:$4 sm:$0xff]   ;;  %v10723_v9 = vld [vmem:[%s15304_s2 + $0xd4] ss:$8 sps:$4 sm:$0xff]  }
  0x33   : > { %10554 = vmatprep.subr.bf16.mxu1 %v10553_v23  ;;  %v10721_v10 = vld [vmem:[%s15304_s2 + $0xd0] ss:$8 sps:$4 sm:$0xff]   ;;  %v10726_v11 = vld [vmem:[%s15304_s2 + $0xe4] ss:$8 sps:$4 sm:$0xff]   ;;  %v10724_v12 = vld [vmem:[%s15304_s2 + $0xe0] ss:$8 sps:$4 sm:$0xff]  }
  0x34   : > { %1016 = vmatpush1.bf16.msra.mxu0 %v10693_v35  ;;  %v10729_v13 = vld [vmem:[%s15304_s2 + $0xf4] ss:$8 sps:$4 sm:$0xff]   ;;  %v10727_v14 = vld [vmem:[%s15304_s2 + $0xf0] ss:$8 sps:$4 sm:$0xff]   ;;  %v10732_v15 = vld [vmem:[%s15304_s2 + $0x104] ss:$8 sps:$4 sm:$0xff]  }
  0x35   : > { %1017 = vmatprep.subr.bf16.mxu0 %v10694_v36  ;;  %v10730_v16 = vld [vmem:[%s15304_s2 + $0x100] ss:$8 sps:$4 sm:$0xff]   ;;  %v10735_v17 = vld [vmem:[%s15304_s2 + $0x114] ss:$8 sps:$4 sm:$0xff]   ;;  %v10733_v18 = vld [vmem:[%s15304_s2 + $0x110] ss:$8 sps:$4 sm:$0xff]  }
  0x36   : > { %10556 = vmatpush3.bf16.msra.mxu1 %v10553_v23  ;;  %v12065_v19 = vmov 0.0   ;;  %v10739_v20 = vld [vmem:[%s15305_s28 + $0x208] ss:$16 sps:$4 sm:$0xff]   ;;  %v10747_v22 = vld [vmem:[%s15306_s19 + $0x22c] ss:$16 sps:$4 sm:$0xff]   ;;  %s674_s22 = sand.u32 1, %s15310_s1  }
  0x37   : > { %10558 = vmatprep.subr.bf16.mxu1 %v10549_v21  ;;  %v10781_v35 = vld [vmem:[%s15306_s19 + $0x2e8] ss:$16 sps:$4 sm:$0xff]   ;;  %v10789_v36 = vld [vmem:[%s15306_s19 + $0x30c] ss:$16 sps:$4 sm:$0xff]   ;;  %s675_s4 = scalar_lea.vmem [#allocation2], %s674_s22  ;;  %s8909_s1 = scalar_lea.sflag [#allocation3], %s674_s22 }
  0x38   : > { %1018 = vmatpush1.bf16.msra.mxu0 %v10696_v37  ;;  %v10787_v37 = vld [vmem:[%s15306_s19 + $0x308] ss:$16 sps:$4 sm:$0xff]   ;;  %s8921_s24 = sshll.u32 %s675_s4, 4  ;;  %s12004_s28 = sshll.u32 %s12066_s3, 4  ;;  %s15199_s24 = int_to_ptr.vmem [resolvable:$true] %s8921_s24  ;;  %s12005_s28 = int_to_ptr.vmem [resolvable:$false] %s12004_s28 }
  0x39   : > { %10516 = vmatmul.mubr.msk.f32.vlgmr.msra.gmra.mrb[0].mxu1 %vm713_vm0, %v710_v24  ;;  %1019 = vmatprep.subr.bf16.mxu0 %v10697_v38  ;;  %v10753_v24 = vld [vmem:[%s15306_s19 + $0x24c] ss:$16 sps:$4 sm:$0xff]   ;;  %s12000_s26 = scalar_lea.vmem %s15199_s24, 16  ;;  %p12007_p0 = scmp.lt.s32.totalorder %s15199_s24, %s12005_s28 }
  0x3a   : > { %10560 = vmatpush3.bf16.msra.mxu1 %v10549_v21  ;;  %10518 = vmatprep.mubr.msk.f32.mxu1 %vm713_vm0, %v711_v25  ;;  %v10751_v25 = vld [vmem:[%s15306_s19 + $0x248] ss:$16 sps:$4 sm:$0xff]   ;;  %v10795_v38 = vld [vmem:[%s15306_s19 + $0x32c] ss:$16 sps:$4 sm:$0xff]   ;;  %p12001_p11 = scmp.ne.s32.totalorder %s15199_s24, %s12000_s26 }
  0x3b   : > { %10562 = vmatprep.subr.bf16.mxu1 %v10553_v23 }
  0x3c   : > { %1020 = vmatpush1.bf16.msra.mxu0 %v10699_v39  ;;  %v10793_v39 = vld [vmem:[%s15306_s19 + $0x328] ss:$16 sps:$4 sm:$0xff]   ;;  %p12002_p12 = pnand %p12001_p11, %p12220_p5 }
  0x3d   : > { %10519 = vmatmul.mubr.msk.f32.gmra.mrb[2].mxu1 %vm713_vm0, %v712_v26  ;;  %1128 = vmatprep.subr.bf16.mxu0 %v10702_v40  ;;  %v10759_v26 = vld [vmem:[%s15306_s19 + $0x26c] ss:$16 sps:$4 sm:$0xff]  }
  0x3e   : > { %10564 = vmatpush3.bf16.msra.mxu1 %v10553_v23  ;;  %10529 = vmatprep.mubr.msk.f32.mxu1 %vm713_vm0, %v8989_v27  ;;  %v10757_v27 = vld [vmem:[%s15306_s19 + $0x268] ss:$16 sps:$4 sm:$0xff]   ;;  %v10801_v40 = vld [vmem:[%s15306_s19 + $0x34c] ss:$16 sps:$4 sm:$0xff]   ;;  %p12003_p13 = pneg %p12002_p12 }
  0x3f   : > { %10566 = vmatprep.subr.bf16.mxu1 %v10549_v21 }
  0x41   : > { %10530 = vmatmul.mubr.msk.f32.vlgmr.msra.gmra.mrb[4].mxu1 %vm713_vm0, %v8990_v28  ;;  %v10765_v28 = vld [vmem:[%s15306_s19 + $0x28c] ss:$16 sps:$4 sm:$0xff]  }
  0x42   : > { %10532 = vmatprep.mubr.msk.f32.mxu1 %vm713_vm0, %v8991_v29  ;;  %10568 = vmatpush3.bf16.msra.mxu1 %v10549_v21  ;;  %v10741_v21 = vld [vmem:[%s15306_s19 + $0x20c] ss:$16 sps:$4 sm:$0xff]   ;;  %v10763_v29 = vld [vmem:[%s15306_s19 + $0x288] ss:$16 sps:$4 sm:$0xff]  }
  0x43   : > { %10570 = vmatprep.subr.bf16.mxu1 %v10553_v23 }
  0x45   : > { %10533 = vmatmul.mubr.msk.f32.gmra.mrb[6].mxu1 %vm713_vm0, %v8992_v30  ;;  %v10771_v30 = vld [vmem:[%s15306_s19 + $0x2ac] ss:$16 sps:$4 sm:$0xff]  }
  0x46   : > { %10572 = vmatpush3.bf16.msra.mxu1 %v10553_v23  ;;  %10543 = vmatprep.mubr.msk.f32.mxu1 %vm713_vm0, %v9037_v31  ;;  %v10745_v23 = vld [vmem:[%s15306_s19 + $0x228] ss:$16 sps:$4 sm:$0xff]  }
  0x47   : > { %v10769_v31 = vld [vmem:[%s15306_s19 + $0x2a8] ss:$16 sps:$4 sm:$0xff]  }
  0x49   : > { %10544 = vmatmul.mubr.msk.f32.vlgmr.msra.gmra.mrb[8].mxu1 %vm713_vm0, %v9038_v32  ;;  %v10777_v32 = vld [vmem:[%s15306_s19 + $0x2cc] ss:$16 sps:$4 sm:$0xff]  }
  0x4a   : > { %10546 = vmatprep.mubr.msk.f32.mxu1 %vm713_vm0, %v9039_v33  ;;  %v10775_v33 = vld [vmem:[%s15306_s19 + $0x2c8] ss:$16 sps:$4 sm:$0xff]  }
  0x4d   : > { %10547 = vmatmul.mubr.msk.f32.gmra.mrb[10].mxu1 %vm713_vm0, %v9040_v34  ;;  %v10783_v34 = vld [vmem:[%s15306_s19 + $0x2ec] ss:$16 sps:$4 sm:$0xff]  }
  0x4e   : > { %1525 = vmatprep.mubr.f32.mxu1 %v12065_v19 }
 0x10c   : > { %v10517_v42 = vpop.f32.mrb[0].mxu1 }
 0x10d   : > { %v792_v43 = vpop.f32.mrb[1].mxu1 }
 0x10e   : > { %v811_v44 = vpack.c.bf16 %v10517_v42, %v792_v43  ;;  %v10807_v42 = vld [vmem:[%s15306_s19 + $0x36c] ss:$16 sps:$4 sm:$0xff]   ;;  %v10805_v43 = vld [vmem:[%s15306_s19 + $0x368] ss:$16 sps:$4 sm:$0xff]  }
 0x110   : > { %v10520_v45 = vpop.f32.mrb[2].mxu1 }
 0x111   : > { %v802_v46 = vpop.f32.mrb[3].mxu1 }
 0x112   : > { %v812_v47 = vpack.c.bf16 %v10520_v45, %v802_v46 }
 0x114   : > { %v10531_v49 = vpop.f32.mrb[4].mxu1 }
 0x115   : > { %v908_v51 = vpop.f32.mrb[5].mxu1 }
 0x116   : > { %v927_v52 = vpack.c.bf16 %v10531_v49, %v908_v51 }
 0x118   : > { %9021 = vmatmul.mubr.msk.bf16.vlgmr.msra.gmra.mrb[0].mxu0 %vm1002_vm1, %v927_v52  ;;  %v10534_v55 = vpop.f32.mrb[6].mxu1 }
 0x119   : > { %1129 = vmatpush1.bf16.msra.mxu0 %v10700_v48  ;;  %v918_v56 = vpop.f32.mrb[7].mxu1  ;;  %1051 = vmatprep.mubr.bf16.mxu0 %v12064_v41 }
 0x11a   : > { %1130 = vmatprep.subr.bf16.mxu0 %v10705_v50  ;;  %v928_v57 = vpack.c.bf16 %v10534_v55, %v918_v56 }
 0x11c   : > { %v10545_v60 = vpop.f32.mrb[8].mxu1 }
 0x11d   : > { %1131 = vmatpush1.bf16.msra.mxu0 %v10703_v53  ;;  %v1264_v61 = vpop.f32.mrb[9].mxu1 }
 0x11e   : > { %1132 = vmatprep.subr.bf16.mxu0 %v10708_v54  ;;  %v1283_v62 = vpack.c.bf16 %v10545_v60, %v1264_v61 }
 0x120   : > { %9022 = vmatmul.mubr.msk.bf16.gmra.mrb[4].mxu0 %vm1002_vm1, %v928_v57  ;;  %v10548_v1 = vpop.f32.mrb[10].mxu1 }
 0x121   : > { %1133 = vmatpush1.bf16.msra.mxu0 %v10706_v58  ;;  %1160 = vmatprep.mubr.bf16.mxu0 %v12064_v41  ;;  %v1274_v2 = vpop.f32.mrb[11].mxu1 }
 0x122   : > { %1134 = vmatprep.subr.bf16.mxu0 %v10711_v59  ;;  %v1284_v3 = vpack.c.bf16 %v10548_v1, %v1274_v2 }
 0x125   : > { %1135 = vmatpush1.bf16.msra.mxu0 %v10709_v63 }
 0x126   : > { %1136 = vmatprep.subr.bf16.mxu0 %v10714_v0 }
 0x129   : > { %1137 = vmatpush1.bf16.msra.mxu0 %v10712_v4 }
 0x12a   : > { %1138 = vmatprep.subr.bf16.mxu0 %v10717_v5 }
 0x12d   : > { %1139 = vmatpush1.bf16.msra.mxu0 %v10715_v6 }
 0x12e   : > { %1364 = vmatprep.subr.bf16.mxu0 %v10720_v7 }
 0x130   : > { %9035 = vmatmul.mubr.msk.bf16.vlgmr.msra.gmra.mrb[0].mxu0 %vm1002_vm1, %v811_v44  ;;  %v1427_v44 = vlaneseq }
 0x131   : > { %1365 = vmatpush1.bf16.msra.mxu0 %v10718_v8  ;;  %1170 = vmatprep.mubr.bf16.mxu0 %v12064_v41 }
 0x132   : > { %1366 = vmatprep.subr.bf16.mxu0 %v10723_v9  ;;  %v12482_v45 = vshrl.u32 %v1427_v44, 7  ;;  %v10810_v44 = vld [vmem:[%s15306_s19 + $0x384] ss:$16 sps:$4 sm:$0xff]  }
 0x134   : > { %v12485_v46 = vsub.s32 0, %v12482_v45  ;;  %v12491_v48 = vsub.s32 1, %v12482_v45 }
 0x135   : > { %1367 = vmatpush1.bf16.msra.mxu0 %v10721_v10 }
 0x136   : > { %1368 = vmatprep.subr.bf16.mxu0 %v10726_v11 }
 0x138   : > { %9036 = vmatmul.mubr.msk.bf16.gmra.mrb[4].mxu0 %vm1002_vm1, %v812_v47  ;;  %v1425_v47 = vld [vmem:[%s15307_s25] sm:$0x3] }
 0x139   : > { %1369 = vmatpush1.bf16.msra.mxu0 %v10724_v12  ;;  %1396 = vmatprep.mubr.bf16.mxu0 %v12064_v41  ;;  %v1430_v49 = vrot.slane %v1425_v47, %v12485_v46  ;;  %v1434_v50 = vrot.slane %v1425_v47, %v12491_v48  ;;  %v10813_v47 = vld [vmem:[%s15306_s19 + $0x38c] ss:$16 sps:$4 sm:$0xff]  }
 0x13a   : > { %1370 = vmatprep.subr.bf16.mxu0 %v10729_v13 }
 0x13d   : > { %1371 = vmatpush1.bf16.msra.mxu0 %v10727_v14 }
 0x13e   : > { %1372 = vmatprep.subr.bf16.mxu0 %v10732_v15  ;;  %v1453_v15 = vld [vmem:[%s15308_s5] sm:$0xff] }
 0x141   : > { %1373 = vmatpush1.bf16.msra.mxu0 %v10730_v16  ;;  %v1454_v16 = vld [vmem:[%s15308_s5 + $0x8] sm:$0xff] }
 0x142   : > { %1374 = vmatprep.subr.bf16.mxu0 %v10735_v17  ;;  %v10738_v17 = vld [vmem:[%s15306_s19 + $0x204] ss:$16 sps:$4 sm:$0xff]  }
 0x145   : > { %1375 = vmatpush1.bf16.msra.mxu0 %v10733_v18  ;;  %v9073_v18 = vld [vmem:[%s15308_s5 + $0x10] sm:$0xff] }
 0x146   : > { %2120 = vmatprep.subr.bf16.mxu0 %v10741_v21  ;;  %v10744_v21 = vld [vmem:[%s15306_s19 + $0x224] ss:$16 sps:$4 sm:$0xff]  }
 0x148   : > { %9069 = vmatmul.mubr.msk.bf16.vlgmr.msra.gmra.mrb[0].mxu0 %vm1002_vm1, %v1283_v62 }
 0x149   : > { %1406 = vmatprep.mubr.bf16.mxu0 %v12064_v41  ;;  %2121 = vmatpush1.bf16.msra.mxu0 %v10739_v20  ;;  %v10799_v41 = vld [vmem:[%s15306_s19 + $0x348] ss:$16 sps:$4 sm:$0xff]   ;;  %v10736_v20 = vld [vmem:[%s15306_s19 + $0x200] ss:$16 sps:$4 sm:$0xff]  }
 0x14a   : > { %2122 = vmatprep.subr.bf16.mxu0 %v10747_v22  ;;  %v9074_v22 = vld [vmem:[%s15308_s5 + $0x18] sm:$0xff] }
 0x14d   : > { %2123 = vmatpush1.bf16.msra.mxu0 %v10745_v23  ;;  %v10742_v23 = vld [vmem:[%s15306_s19 + $0x220] ss:$16 sps:$4 sm:$0xff]  }
 0x14e   : > { %2124 = vmatprep.subr.bf16.mxu0 %v10753_v24  ;;  %v10750_v24 = vld [vmem:[%s15306_s19 + $0x244] ss:$16 sps:$4 sm:$0xff]  }
 0x150   : > { %9070 = vmatmul.mubr.msk.bf16.gmra.mrb[4].mxu0 %vm1002_vm1, %v1284_v3 }
 0x151   : > { %2125 = vmatpush1.bf16.msra.mxu0 %v10751_v25  ;;  %v10748_v25 = vld [vmem:[%s15306_s19 + $0x240] ss:$16 sps:$4 sm:$0xff]  }
 0x152   : > { %2126 = vmatprep.subr.bf16.mxu0 %v10759_v26  ;;  %v10756_v26 = vld [vmem:[%s15306_s19 + $0x264] ss:$16 sps:$4 sm:$0xff]  }
 0x155   : > { %2127 = vmatpush1.bf16.msra.mxu0 %v10757_v27  ;;  %v10754_v27 = vld [vmem:[%s15306_s19 + $0x260] ss:$16 sps:$4 sm:$0xff]  }
 0x156   : > { %2128 = vmatprep.subr.bf16.mxu0 %v10765_v28  ;;  %v10762_v28 = vld [vmem:[%s15306_s19 + $0x284] ss:$16 sps:$4 sm:$0xff]  }
 0x159   : > { %2129 = vmatpush1.bf16.msra.mxu0 %v10763_v29  ;;  %v10760_v29 = vld [vmem:[%s15306_s19 + $0x280] ss:$16 sps:$4 sm:$0xff]  }
 0x15a   : > { %2130 = vmatprep.subr.bf16.mxu0 %v10771_v30  ;;  %v10768_v30 = vld [vmem:[%s15306_s19 + $0x2a4] ss:$16 sps:$4 sm:$0xff]  }
 0x15d   : > { %2131 = vmatpush1.bf16.msra.mxu0 %v10769_v31  ;;  %v10766_v31 = vld [vmem:[%s15306_s19 + $0x2a0] ss:$16 sps:$4 sm:$0xff]  }
 0x15e   : > { %2132 = vmatprep.subr.bf16.mxu0 %v10777_v32  ;;  %v10774_v32 = vld [vmem:[%s15306_s19 + $0x2c4] ss:$16 sps:$4 sm:$0xff]  }
 0x161   : > { %2133 = vmatpush1.bf16.msra.mxu0 %v10775_v33  ;;  %v10772_v33 = vld [vmem:[%s15306_s19 + $0x2c0] ss:$16 sps:$4 sm:$0xff]  }
 0x162   : > { %2134 = vmatprep.subr.bf16.mxu0 %v10783_v34  ;;  %v10780_v34 = vld [vmem:[%s15306_s19 + $0x2e4] ss:$16 sps:$4 sm:$0xff]  }
 0x165   : > { %2135 = vmatpush1.bf16.msra.mxu0 %v10781_v35  ;;  %v10778_v35 = vld [vmem:[%s15306_s19 + $0x2e0] ss:$16 sps:$4 sm:$0xff]  }
 0x166   : > { %2136 = vmatprep.subr.bf16.mxu0 %v10789_v36  ;;  %v10786_v36 = vld [vmem:[%s15306_s19 + $0x304] ss:$16 sps:$4 sm:$0xff]  }
 0x169   : > { %2137 = vmatpush1.bf16.msra.mxu0 %v10787_v37  ;;  %v10784_v37 = vld [vmem:[%s15306_s19 + $0x300] ss:$16 sps:$4 sm:$0xff]  }
 0x16a   : > { %2138 = vmatprep.subr.bf16.mxu0 %v10795_v38  ;;  %v10792_v38 = vld [vmem:[%s15306_s19 + $0x324] ss:$16 sps:$4 sm:$0xff]  }
 0x16d   : > { %2139 = vmatpush1.bf16.msra.mxu0 %v10793_v39  ;;  %v10790_v39 = vld [vmem:[%s15306_s19 + $0x320] ss:$16 sps:$4 sm:$0xff]  }
 0x16e   : > { %2140 = vmatprep.subr.bf16.mxu0 %v10801_v40  ;;  %v10798_v40 = vld [vmem:[%s15306_s19 + $0x344] ss:$16 sps:$4 sm:$0xff]  }
 0x171   : > { %2141 = vmatpush1.bf16.msra.mxu0 %v10799_v41  ;;  %v10796_v41 = vld [vmem:[%s15306_s19 + $0x340] ss:$16 sps:$4 sm:$0xff]  }
 0x172   : > { %2142 = vmatprep.subr.bf16.mxu0 %v10807_v42  ;;  %v10804_v42 = vld [vmem:[%s15306_s19 + $0x364] ss:$16 sps:$4 sm:$0xff]  }
 0x175   : > { %2143 = vmatpush1.bf16.msra.mxu0 %v10805_v43  ;;  %v10802_v43 = vld [vmem:[%s15306_s19 + $0x360] ss:$16 sps:$4 sm:$0xff]  }
 0x176   : > { %2144 = vmatprep.subr.bf16.mxu0 %v10813_v47  ;;  %v10879_v47 = vld [vmem:[%s15306_s19 + $0xec] ss:$16 sps:$4 sm:$0xff]  }
 0x21b   : > { %v1398_v51 = vpop.f32.mrb[0].mxu0 }
 0x21c   : > { %v1437_v52 = vadd.f32 %v1430_v49, %v1398_v51  ;;  %v1400_v53 = vpop.f32.mrb[1].mxu0  ;;  %v10816_v51 = vld [vmem:[%s15306_s19 + $0x3a4] ss:$16 sps:$4 sm:$0xff]  }
 0x21d   : > { %v1438_v54 = vadd.f32 %v1434_v50, %v1400_v53  ;;  %v1402_v55 = vpop.f32.mrb[2].mxu0  ;;  %v10814_v53 = vld [vmem:[%s15306_s19 + $0x3a0] ss:$16 sps:$4 sm:$0xff]  }
 0x21e   : > { %v1439_v56 = vadd.f32 %v1430_v49, %v1402_v55  ;;  %v1404_v57 = vpop.f32.mrb[3].mxu0  ;;  %v10822_v55 = vld [vmem:[%s15306_s19 + $0x3c4] ss:$16 sps:$4 sm:$0xff]  }
 0x21f   : > { %v1445_v58 = vmax.f32 %v1437_v52, %v1438_v54  ;;  %v1449_v59 = vmin.f32 %v1437_v52, %v1438_v54  ;;  %v1440_v60 = vadd.f32 %v1434_v50, %v1404_v57  ;;  %v10819_v52 = vld [vmem:[%s15306_s19 + $0x3ac] ss:$16 sps:$4 sm:$0xff]   ;;  %v10817_v54 = vld [vmem:[%s15306_s19 + $0x3a8] ss:$16 sps:$4 sm:$0xff]   ;;  %v10820_v57 = vld [vmem:[%s15306_s19 + $0x3c0] ss:$16 sps:$4 sm:$0xff]  }
 0x221   : > { %v1446_v61 = vmax.f32 %v1439_v56, %v1440_v60  ;;  %v1450_v62 = vmin.f32 %v1439_v56, %v1440_v60  ;;  %v10825_v56 = vld [vmem:[%s15306_s19 + $0x3cc] ss:$16 sps:$4 sm:$0xff]  }
 0x222   : > { %v10831_v60 = vld [vmem:[%s15306_s19 + $0x3ec] ss:$16 sps:$4 sm:$0xff]  }
 0x223   : > { %v12495_v63 = vpack.c.bf16 %v1446_v61, %v1445_v58  ;;  %v1408_v0 = vpop.f32.mrb[4].mxu0  ;;  %v12497_v1 = vpack.c.bf16 %v1450_v62, %v1449_v59  ;;  %v10823_v58 = vld [vmem:[%s15306_s19 + $0x3c8] ss:$16 sps:$4 sm:$0xff]   ;;  %v10828_v59 = vld [vmem:[%s15306_s19 + $0x3e4] ss:$16 sps:$4 sm:$0xff]  }
 0x224   : > { %v1441_v2 = vadd.f32 %v1430_v49, %v1408_v0  ;;  %v1410_v3 = vpop.f32.mrb[5].mxu0  ;;  %v10826_v61 = vld [vmem:[%s15306_s19 + $0x3e0] ss:$16 sps:$4 sm:$0xff]   ;;  %v10829_v62 = vld [vmem:[%s15306_s19 + $0x3e8] ss:$16 sps:$4 sm:$0xff]  }
 0x225   : > { %v1442_v4 = vadd.f32 %v1434_v50, %v1410_v3  ;;  %v1412_v5 = vpop.f32.mrb[6].mxu0  ;;  %10574 = vmatprep.subr.bf16.mxu1 %v12497_v1  ;;  %v10834_v0 = vld [vmem:[%s15306_s19 + $0x4] ss:$16 sps:$4 sm:$0xff]  }
 0x226   : > { %v1443_v6 = vadd.f32 %v1430_v49, %v1412_v5  ;;  %v1414_v7 = vpop.f32.mrb[7].mxu0  ;;  %10576 = vmatpush1.bf16.msra.mxu1 %v12495_v63  ;;  %v10808_v49 = vld [vmem:[%s15306_s19 + $0x380] ss:$16 sps:$4 sm:$0xff]  }
 0x227   : > { %v1447_v8 = vmax.f32 %v1441_v2, %v1442_v4  ;;  %v1451_v9 = vmin.f32 %v1441_v2, %v1442_v4  ;;  %v1444_v10 = vadd.f32 %v1434_v50, %v1414_v7  ;;  %v10811_v50 = vld [vmem:[%s15306_s19 + $0x388] ss:$16 sps:$4 sm:$0xff]   ;;  %v10837_v2 = vld [vmem:[%s15306_s19 + $0xc] ss:$16 sps:$4 sm:$0xff]  }
 0x228   : > { %2145 = vmatpush1.bf16.msra.mxu0 %v10811_v50  ;;  %v10877_v50 = vld [vmem:[%s15306_s19 + $0xe8] ss:$16 sps:$4 sm:$0xff]  }
 0x229   : > { %v1448_v11 = vmax.f32 %v1443_v6, %v1444_v10  ;;  %v1452_v12 = vmin.f32 %v1443_v6, %v1444_v10  ;;  %2146 = vmatprep.subr.bf16.mxu0 %v10819_v52  ;;  %v10885_v52 = vld [vmem:[%s15306_s19 + $0x10c] ss:$16 sps:$4 sm:$0xff]  }
 0x22b   : > { %v12501_v13 = vpack.c.bf16 %v1448_v11, %v1447_v8  ;;  %v12503_v14 = vpack.c.bf16 %v1452_v12, %v1451_v9 }
 0x22c   : > { %2147 = vmatpush1.bf16.msra.mxu0 %v10817_v54  ;;  %v10883_v54 = vld [vmem:[%s15306_s19 + $0x108] ss:$16 sps:$4 sm:$0xff]  }
 0x22d   : > { %10578 = vmatprep.subr.bf16.mxu1 %v12503_v14  ;;  %2148 = vmatprep.subr.bf16.mxu0 %v10825_v56  ;;  %v10891_v56 = vld [vmem:[%s15306_s19 + $0x12c] ss:$16 sps:$4 sm:$0xff]  }
 0x22e   : > { %10580 = vmatpush1.bf16.msra.mxu1 %v12501_v13 }
 0x22f   : > { %10582 = vmatprep.subr.bf16.mxu1 %v12497_v1 }
 0x230   : > { %2149 = vmatpush1.bf16.msra.mxu0 %v10823_v58  ;;  %v10889_v58 = vld [vmem:[%s15306_s19 + $0x128] ss:$16 sps:$4 sm:$0xff]  }
 0x231   : > { %9071 = vmatmul.mubr.msk.f32.vlgmr.msra.gmra.mrb[12].mxu1 %vm713_vm0, %v1453_v15  ;;  %2150 = vmatprep.subr.bf16.mxu0 %v10831_v60  ;;  %v10897_v60 = vld [vmem:[%s15306_s19 + $0x14c] ss:$16 sps:$4 sm:$0xff]  }
 0x232   : > { %10584 = vmatpush1.bf16.msra.mxu1 %v12495_v63  ;;  %1531 = vmatprep.mubr.f32.mxu1 %v12065_v19 }
 0x233   : > { %10586 = vmatprep.subr.bf16.mxu1 %v12503_v14 }
 0x234   : > { %2151 = vmatpush1.bf16.msra.mxu0 %v10829_v62  ;;  %v10895_v62 = vld [vmem:[%s15306_s19 + $0x148] ss:$16 sps:$4 sm:$0xff]  }
 0x235   : > { %9072 = vmatmul.mubr.msk.f32.gmra.mrb[14].mxu1 %vm713_vm0, %v1454_v16  ;;  %2526 = vmatprep.subr.bf16.mxu0 %v10837_v2  ;;  %v10903_v2 = vld [vmem:[%s15306_s19 + $0x16c] ss:$16 sps:$4 sm:$0xff]  }
 0x236   : > { %10588 = vmatpush1.bf16.msra.mxu1 %v12501_v13  ;;  %1677 = vmatprep.mubr.f32.mxu1 %v12065_v19 }
 0x237   : > { %2077 = vmatprep.subr.bf16.mxu1 %v10738_v17  ;;  %v10832_v17 = vld [vmem:[%s15306_s19] ss:$16 sps:$4 sm:$0xff]  }
 0x239   : > { %9075 = vmatmul.mubr.msk.f32.vlgmr.msra.gmra.mrb[16].mxu1 %vm713_vm0, %v9073_v18  ;;  %v10835_v18 = vld [vmem:[%s15306_s19 + $0x8] ss:$16 sps:$4 sm:$0xff]  }
 0x23a   : > { %1683 = vmatprep.mubr.f32.mxu1 %v12065_v19  ;;  %2078 = vmatpush1.bf16.msra.mxu1 %v10736_v20  ;;  %v10840_v20 = vld [vmem:[%s15306_s19 + $0x24] ss:$16 sps:$4 sm:$0xff]  }
 0x23b   : > { %2079 = vmatprep.subr.bf16.mxu1 %v10744_v21  ;;  %v10843_v21 = vld [vmem:[%s15306_s19 + $0x2c] ss:$16 sps:$4 sm:$0xff]  }
 0x23d   : > { %9076 = vmatmul.mubr.msk.f32.gmra.mrb[18].mxu1 %vm713_vm0, %v9074_v22  ;;  %v10838_v22 = vld [vmem:[%s15306_s19 + $0x20] ss:$16 sps:$4 sm:$0xff]  }
 0x23e   : > { %2080 = vmatpush1.bf16.msra.mxu1 %v10742_v23  ;;  %v10841_v23 = vld [vmem:[%s15306_s19 + $0x28] ss:$16 sps:$4 sm:$0xff]  }
 0x23f   : > { %2081 = vmatprep.subr.bf16.mxu1 %v10750_v24  ;;  %v10846_v24 = vld [vmem:[%s15306_s19 + $0x44] ss:$16 sps:$4 sm:$0xff]  }
 0x242   : > { %2082 = vmatpush1.bf16.msra.mxu1 %v10748_v25  ;;  %v10849_v25 = vld [vmem:[%s15306_s19 + $0x4c] ss:$16 sps:$4 sm:$0xff]  }
 0x243   : > { %2083 = vmatprep.subr.bf16.mxu1 %v10756_v26  ;;  %v10844_v26 = vld [vmem:[%s15306_s19 + $0x40] ss:$16 sps:$4 sm:$0xff]  }
 0x246   : > { %2084 = vmatpush1.bf16.msra.mxu1 %v10754_v27  ;;  %v10847_v27 = vld [vmem:[%s15306_s19 + $0x48] ss:$16 sps:$4 sm:$0xff]  }
 0x247   : > { %2085 = vmatprep.subr.bf16.mxu1 %v10762_v28  ;;  %v10852_v28 = vld [vmem:[%s15306_s19 + $0x64] ss:$16 sps:$4 sm:$0xff]  }
 0x24a   : > { %2086 = vmatpush1.bf16.msra.mxu1 %v10760_v29  ;;  %v10855_v29 = vld [vmem:[%s15306_s19 + $0x6c] ss:$16 sps:$4 sm:$0xff]  }
 0x24b   : > { %2087 = vmatprep.subr.bf16.mxu1 %v10768_v30  ;;  %v10850_v30 = vld [vmem:[%s15306_s19 + $0x60] ss:$16 sps:$4 sm:$0xff]  }
 0x24e   : > { %2088 = vmatpush1.bf16.msra.mxu1 %v10766_v31  ;;  %v10853_v31 = vld [vmem:[%s15306_s19 + $0x68] ss:$16 sps:$4 sm:$0xff]  }
 0x24f   : > { %2089 = vmatprep.subr.bf16.mxu1 %v10774_v32  ;;  %v10858_v32 = vld [vmem:[%s15306_s19 + $0x84] ss:$16 sps:$4 sm:$0xff]  }
 0x252   : > { %2090 = vmatpush1.bf16.msra.mxu1 %v10772_v33  ;;  %v10861_v33 = vld [vmem:[%s15306_s19 + $0x8c] ss:$16 sps:$4 sm:$0xff]  }
 0x253   : > { %2091 = vmatprep.subr.bf16.mxu1 %v10780_v34  ;;  %v10856_v34 = vld [vmem:[%s15306_s19 + $0x80] ss:$16 sps:$4 sm:$0xff]  }
 0x256   : > { %2092 = vmatpush1.bf16.msra.mxu1 %v10778_v35  ;;  %v10859_v35 = vld [vmem:[%s15306_s19 + $0x88] ss:$16 sps:$4 sm:$0xff]  }
 0x257   : > { %2093 = vmatprep.subr.bf16.mxu1 %v10786_v36  ;;  %v10864_v36 = vld [vmem:[%s15306_s19 + $0xa4] ss:$16 sps:$4 sm:$0xff]  }
 0x25a   : > { %2094 = vmatpush1.bf16.msra.mxu1 %v10784_v37  ;;  %v10867_v37 = vld [vmem:[%s15306_s19 + $0xac] ss:$16 sps:$4 sm:$0xff]  }
 0x25b   : > { %2095 = vmatprep.subr.bf16.mxu1 %v10792_v38  ;;  %v10862_v38 = vld [vmem:[%s15306_s19 + $0xa0] ss:$16 sps:$4 sm:$0xff]  }
 0x25e   : > { %2096 = vmatpush1.bf16.msra.mxu1 %v10790_v39  ;;  %v10865_v39 = vld [vmem:[%s15306_s19 + $0xa8] ss:$16 sps:$4 sm:$0xff]  }
 0x25f   : > { %2097 = vmatprep.subr.bf16.mxu1 %v10798_v40  ;;  %v10870_v40 = vld [vmem:[%s15306_s19 + $0xc4] ss:$16 sps:$4 sm:$0xff]  }
 0x262   : > { %2098 = vmatpush1.bf16.msra.mxu1 %v10796_v41  ;;  %v10873_v41 = vld [vmem:[%s15306_s19 + $0xcc] ss:$16 sps:$4 sm:$0xff]  }
 0x263   : > { %2099 = vmatprep.subr.bf16.mxu1 %v10804_v42  ;;  %v10868_v42 = vld [vmem:[%s15306_s19 + $0xc0] ss:$16 sps:$4 sm:$0xff]  }
 0x266   : > { %2100 = vmatpush1.bf16.msra.mxu1 %v10802_v43  ;;  %v10871_v43 = vld [vmem:[%s15306_s19 + $0xc8] ss:$16 sps:$4 sm:$0xff]  }
 0x267   : > { %2101 = vmatprep.subr.bf16.mxu1 %v10810_v44  ;;  %v10876_v44 = vld [vmem:[%s15306_s19 + $0xe4] ss:$16 sps:$4 sm:$0xff]  }
 0x26a   : > { %2102 = vmatpush1.bf16.msra.mxu1 %v10808_v49  ;;  %v10874_v49 = vld [vmem:[%s15306_s19 + $0xe0] ss:$16 sps:$4 sm:$0xff]  }
 0x26b   : > { %2103 = vmatprep.subr.bf16.mxu1 %v10816_v51  ;;  %v10882_v51 = vld [vmem:[%s15306_s19 + $0x104] ss:$16 sps:$4 sm:$0xff]  }
 0x26e   : > { %2104 = vmatpush1.bf16.msra.mxu1 %v10814_v53  ;;  %v10880_v53 = vld [vmem:[%s15306_s19 + $0x100] ss:$16 sps:$4 sm:$0xff]  }
 0x26f   : > { %2105 = vmatprep.subr.bf16.mxu1 %v10822_v55  ;;  %v10888_v55 = vld [vmem:[%s15306_s19 + $0x124] ss:$16 sps:$4 sm:$0xff]  }
 0x272   : > { %2106 = vmatpush1.bf16.msra.mxu1 %v10820_v57  ;;  %v10886_v57 = vld [vmem:[%s15306_s19 + $0x120] ss:$16 sps:$4 sm:$0xff]  }
 0x273   : > { %2107 = vmatprep.subr.bf16.mxu1 %v10828_v59  ;;  %v10894_v59 = vld [vmem:[%s15306_s19 + $0x144] ss:$16 sps:$4 sm:$0xff]  }
 0x276   : > { %2108 = vmatpush1.bf16.msra.mxu1 %v10826_v61  ;;  %v10892_v61 = vld [vmem:[%s15306_s19 + $0x140] ss:$16 sps:$4 sm:$0xff]  }
 0x277   : > { %2483 = vmatprep.subr.bf16.mxu1 %v10834_v0  ;;  %v10900_v0 = vld [vmem:[%s15306_s19 + $0x164] ss:$16 sps:$4 sm:$0xff]  }
 0x304   : > { %v1527_v3 = vpop.f32.mrb[12].mxu1 }
 0x305   : > { %v1529_v4 = vpop.f32.mrb[13].mxu1 }
 0x308   : > { %v1533_v5 = vpop.f32.mrb[14].mxu1 }
 0x309   : > { %v12656_v6 = vpack.c.bf16 %v1533_v5, %v1527_v3  ;;  %v1535_v7 = vpop.f32.mrb[15].mxu1  ;;  %v10898_v3 = vld [vmem:[%s15306_s19 + $0x160] ss:$16 sps:$4 sm:$0xff]   ;;  %v10906_v5 = vld [vmem:[%s15306_s19 + $0x184] ss:$16 sps:$4 sm:$0xff]  }
 0x30a   : > { %v1539_v8 = vpack.c.bf16 %v1535_v7, %v1529_v4  ;;  %v10901_v4 = vld [vmem:[%s15306_s19 + $0x168] ss:$16 sps:$4 sm:$0xff]   ;;  %v10909_v7 = vld [vmem:[%s15306_s19 + $0x18c] ss:$16 sps:$4 sm:$0xff]  }
 0x30c   : > { %v1679_v9 = vpop.f32.mrb[16].mxu1 }
 0x30d   : > { %v1681_v10 = vpop.f32.mrb[17].mxu1 }
 0x310   : > { %v1685_v11 = vpop.f32.mrb[18].mxu1 }
 0x311   : > { %v1690_v12 = vpack.c.bf16 %v1685_v11, %v1679_v9  ;;  %v1687_v15 = vpop.f32.mrb[19].mxu1  ;;  %v10907_v9 = vld [vmem:[%s15306_s19 + $0x188] ss:$16 sps:$4 sm:$0xff]   ;;  %v10915_v11 = vld [vmem:[%s15306_s19 + $0x1ac] ss:$16 sps:$4 sm:$0xff]  }
 0x312   : > { %v1691_v16 = vpack.c.bf16 %v1687_v15, %v1681_v10  ;;  %v10912_v10 = vld [vmem:[%s15306_s19 + $0x1a4] ss:$16 sps:$4 sm:$0xff]   ;;  %v10913_v15 = vld [vmem:[%s15306_s19 + $0x1a8] ss:$16 sps:$4 sm:$0xff]  }
 0x314   : > { %2109 = vmatprep.mubr.bf16.mxu1 %v1691_v16  ;;  %2152 = vmatprep.mubr.bf16.mxu0 %v1691_v16  ;;  %v10918_v16 = vld [vmem:[%s15306_s19 + $0x1c4] ss:$16 sps:$4 sm:$0xff]  }
 0x315   : > { %2110 = vmatmul.mubr.bf16.vlgmr.msra.gmra.mrb[20].mxu1 %v1690_v12  ;;  %2153 = vmatmul.mubr.bf16.vlgmr.msra.gmra.mrb[8].mxu0 %v1690_v12  ;;  %v10910_v12 = vld [vmem:[%s15306_s19 + $0x1a0] ss:$16 sps:$4 sm:$0xff]  }
 0x316   : > { %2484 = vmatpush1.bf16.msra.mxu1 %v10832_v17  ;;  %2527 = vmatpush1.bf16.msra.mxu0 %v10835_v18  ;;  %v10921_v17 = vld [vmem:[%s15306_s19 + $0x1cc] ss:$16 sps:$4 sm:$0xff]   ;;  %v10916_v18 = vld [vmem:[%s15306_s19 + $0x1c0] ss:$16 sps:$4 sm:$0xff]  }
 0x317   : > { %2515 = vmatprep.mubr.bf16.mxu1 %v1539_v8  ;;  %2558 = vmatprep.mubr.bf16.mxu0 %v1539_v8  ;;  %v10904_v8 = vld [vmem:[%s15306_s19 + $0x180] ss:$16 sps:$4 sm:$0xff]  }
 0x318   : > { %2485 = vmatprep.subr.bf16.mxu1 %v10840_v20  ;;  %2528 = vmatprep.subr.bf16.mxu0 %v10843_v21  ;;  %v10919_v20 = vld [vmem:[%s15306_s19 + $0x1c8] ss:$16 sps:$4 sm:$0xff]   ;;  %v10924_v21 = vld [vmem:[%s15306_s19 + $0x1e4] ss:$16 sps:$4 sm:$0xff]  }
 0x31a   : > { %2486 = vmatpush1.bf16.msra.mxu1 %v10838_v22  ;;  %2529 = vmatpush1.bf16.msra.mxu0 %v10841_v23  ;;  %v10927_v22 = vld [vmem:[%s15306_s19 + $0x1ec] ss:$16 sps:$4 sm:$0xff]   ;;  %v10922_v23 = vld [vmem:[%s15306_s19 + $0x1e0] ss:$16 sps:$4 sm:$0xff]  }
 0x31b   : > { %2487 = vmatprep.subr.bf16.mxu1 %v10846_v24  ;;  %2530 = vmatprep.subr.bf16.mxu0 %v10849_v25  ;;  %v10925_v24 = vld [vmem:[%s15306_s19 + $0x1e8] ss:$16 sps:$4 sm:$0xff]   ;;  %v10933_v25 = vld [vmem:[%s15306_s19 + $0x40c] ss:$16 sps:$4 sm:$0xff]  }
 0x31e   : > { %2488 = vmatpush1.bf16.msra.mxu1 %v10844_v26  ;;  %2531 = vmatpush1.bf16.msra.mxu0 %v10847_v27  ;;  %v10931_v26 = vld [vmem:[%s15306_s19 + $0x408] ss:$16 sps:$4 sm:$0xff]   ;;  %v10939_v27 = vld [vmem:[%s15306_s19 + $0x42c] ss:$16 sps:$4 sm:$0xff]  }
 0x31f   : > { %2489 = vmatprep.subr.bf16.mxu1 %v10852_v28  ;;  %2532 = vmatprep.subr.bf16.mxu0 %v10855_v29  ;;  %v10937_v28 = vld [vmem:[%s15306_s19 + $0x428] ss:$16 sps:$4 sm:$0xff]   ;;  %v10936_v29 = vld [vmem:[%s15306_s19 + $0x424] ss:$16 sps:$4 sm:$0xff]  }
 0x322   : > { %2490 = vmatpush1.bf16.msra.mxu1 %v10850_v30  ;;  %2533 = vmatpush1.bf16.msra.mxu0 %v10853_v31  ;;  %v10943_v30 = vld [vmem:[%s15306_s19 + $0x448] ss:$16 sps:$4 sm:$0xff]  }
 0x323   : > { %2491 = vmatprep.subr.bf16.mxu1 %v10858_v32  ;;  %2534 = vmatprep.subr.bf16.mxu0 %v10861_v33  ;;  %v9270_v31 = vld [vmem:[%s15308_s5 + $0x28] sm:$0xff]  ;;  %v10934_v32 = vld [vmem:[%s15306_s19 + $0x420] ss:$16 sps:$4 sm:$0xff]   ;;  %v10942_v33 = vld [vmem:[%s15306_s19 + $0x444] ss:$16 sps:$4 sm:$0xff]  }
 0x326   : > { %2492 = vmatpush1.bf16.msra.mxu1 %v10856_v34  ;;  %2535 = vmatpush1.bf16.msra.mxu0 %v10859_v35  ;;  %v10949_v34 = vld [vmem:[%s15306_s19 + $0x468] ss:$16 sps:$4 sm:$0xff]   ;;  %v10957_v35 = vld [vmem:[%s15306_s19 + $0x48c] ss:$16 sps:$4 sm:$0xff]  }
 0x327   : > { %2493 = vmatprep.subr.bf16.mxu1 %v10864_v36  ;;  %2536 = vmatprep.subr.bf16.mxu0 %v10867_v37  ;;  %v10940_v36 = vld [vmem:[%s15306_s19 + $0x440] ss:$16 sps:$4 sm:$0xff]   ;;  %v10948_v37 = vld [vmem:[%s15306_s19 + $0x464] ss:$16 sps:$4 sm:$0xff]  }
 0x32a   : > { %2494 = vmatpush1.bf16.msra.mxu1 %v10862_v38  ;;  %2537 = vmatpush1.bf16.msra.mxu0 %v10865_v39  ;;  %v10955_v38 = vld [vmem:[%s15306_s19 + $0x488] ss:$16 sps:$4 sm:$0xff]   ;;  %v10963_v39 = vld [vmem:[%s15306_s19 + $0x4ac] ss:$16 sps:$4 sm:$0xff]  }
 0x32b   : > { %2495 = vmatprep.subr.bf16.mxu1 %v10870_v40  ;;  %2538 = vmatprep.subr.bf16.mxu0 %v10873_v41  ;;  %v10946_v40 = vld [vmem:[%s15306_s19 + $0x460] ss:$16 sps:$4 sm:$0xff]   ;;  %v10954_v41 = vld [vmem:[%s15306_s19 + $0x484] ss:$16 sps:$4 sm:$0xff]  }
 0x32e   : > { %2496 = vmatpush1.bf16.msra.mxu1 %v10868_v42  ;;  %2539 = vmatpush1.bf16.msra.mxu0 %v10871_v43  ;;  %v10961_v42 = vld [vmem:[%s15306_s19 + $0x4a8] ss:$16 sps:$4 sm:$0xff]   ;;  %v10969_v43 = vld [vmem:[%s15306_s19 + $0x4cc] ss:$16 sps:$4 sm:$0xff]  }
 0x32f   : > { %2497 = vmatprep.subr.bf16.mxu1 %v10876_v44  ;;  %2540 = vmatprep.subr.bf16.mxu0 %v10879_v47  ;;  %v10952_v44 = vld [vmem:[%s15306_s19 + $0x480] ss:$16 sps:$4 sm:$0xff]   ;;  %v10960_v47 = vld [vmem:[%s15306_s19 + $0x4a4] ss:$16 sps:$4 sm:$0xff]  }
 0x332   : > { %2498 = vmatpush1.bf16.msra.mxu1 %v10874_v49  ;;  %2541 = vmatpush1.bf16.msra.mxu0 %v10877_v50  ;;  %v10967_v49 = vld [vmem:[%s15306_s19 + $0x4c8] ss:$16 sps:$4 sm:$0xff]   ;;  %v10975_v50 = vld [vmem:[%s15306_s19 + $0x4ec] ss:$16 sps:$4 sm:$0xff]  }
 0x333   : > { %2499 = vmatprep.subr.bf16.mxu1 %v10882_v51  ;;  %2542 = vmatprep.subr.bf16.mxu0 %v10885_v52  ;;  %v10958_v51 = vld [vmem:[%s15306_s19 + $0x4a0] ss:$16 sps:$4 sm:$0xff]   ;;  %v10966_v52 = vld [vmem:[%s15306_s19 + $0x4c4] ss:$16 sps:$4 sm:$0xff]  }
 0x336   : > { %2500 = vmatpush1.bf16.msra.mxu1 %v10880_v53  ;;  %2543 = vmatpush1.bf16.msra.mxu0 %v10883_v54  ;;  %v10973_v53 = vld [vmem:[%s15306_s19 + $0x4e8] ss:$16 sps:$4 sm:$0xff]   ;;  %v10981_v54 = vld [vmem:[%s15306_s19 + $0x50c] ss:$16 sps:$4 sm:$0xff]  }
 0x337   : > { %2501 = vmatprep.subr.bf16.mxu1 %v10888_v55  ;;  %2544 = vmatprep.subr.bf16.mxu0 %v10891_v56  ;;  %v10964_v55 = vld [vmem:[%s15306_s19 + $0x4c0] ss:$16 sps:$4 sm:$0xff]   ;;  %v10972_v56 = vld [vmem:[%s15306_s19 + $0x4e4] ss:$16 sps:$4 sm:$0xff]  }
 0x33a   : > { %2502 = vmatpush1.bf16.msra.mxu1 %v10886_v57  ;;  %2545 = vmatpush1.bf16.msra.mxu0 %v10889_v58  ;;  %v10979_v57 = vld [vmem:[%s15306_s19 + $0x508] ss:$16 sps:$4 sm:$0xff]   ;;  %v10987_v58 = vld [vmem:[%s15306_s19 + $0x52c] ss:$16 sps:$4 sm:$0xff]  }
 0x33b   : > { %2503 = vmatprep.subr.bf16.mxu1 %v10894_v59  ;;  %2546 = vmatprep.subr.bf16.mxu0 %v10897_v60  ;;  %v10970_v59 = vld [vmem:[%s15306_s19 + $0x4e0] ss:$16 sps:$4 sm:$0xff]   ;;  %v10978_v60 = vld [vmem:[%s15306_s19 + $0x504] ss:$16 sps:$4 sm:$0xff]  }
 0x33e   : > { %2504 = vmatpush1.bf16.msra.mxu1 %v10892_v61  ;;  %2547 = vmatpush1.bf16.msra.mxu0 %v10895_v62  ;;  %v10985_v61 = vld [vmem:[%s15306_s19 + $0x528] ss:$16 sps:$4 sm:$0xff]   ;;  %v10993_v62 = vld [vmem:[%s15306_s19 + $0x54c] ss:$16 sps:$4 sm:$0xff]  }
 0x33f   : > { %2505 = vmatprep.subr.bf16.mxu1 %v10900_v0  ;;  %2548 = vmatprep.subr.bf16.mxu0 %v10903_v2  ;;  %v10976_v0 = vld [vmem:[%s15306_s19 + $0x500] ss:$16 sps:$4 sm:$0xff]   ;;  %v10984_v2 = vld [vmem:[%s15306_s19 + $0x524] ss:$16 sps:$4 sm:$0xff]  }
 0x342   : > { %2506 = vmatpush1.bf16.msra.mxu1 %v10898_v3  ;;  %2549 = vmatpush1.bf16.msra.mxu0 %v10901_v4  ;;  %v10991_v3 = vld [vmem:[%s15306_s19 + $0x548] ss:$16 sps:$4 sm:$0xff]   ;;  %v10999_v4 = vld [vmem:[%s15306_s19 + $0x56c] ss:$16 sps:$4 sm:$0xff]  }
 0x343   : > { %2507 = vmatprep.subr.bf16.mxu1 %v10906_v5  ;;  %2550 = vmatprep.subr.bf16.mxu0 %v10909_v7  ;;  %v10982_v5 = vld [vmem:[%s15306_s19 + $0x520] ss:$16 sps:$4 sm:$0xff]   ;;  %v10990_v7 = vld [vmem:[%s15306_s19 + $0x544] ss:$16 sps:$4 sm:$0xff]  }
 0x346   : > { %2508 = vmatpush1.bf16.msra.mxu1 %v10904_v8  ;;  %2551 = vmatpush1.bf16.msra.mxu0 %v10907_v9  ;;  %v10997_v8 = vld [vmem:[%s15306_s19 + $0x568] ss:$16 sps:$4 sm:$0xff]   ;;  %v11005_v9 = vld [vmem:[%s15306_s19 + $0x58c] ss:$16 sps:$4 sm:$0xff]  }
 0x347   : > { %2509 = vmatprep.subr.bf16.mxu1 %v10912_v10  ;;  %2552 = vmatprep.subr.bf16.mxu0 %v10915_v11  ;;  %v10988_v10 = vld [vmem:[%s15306_s19 + $0x540] ss:$16 sps:$4 sm:$0xff]   ;;  %v10996_v11 = vld [vmem:[%s15306_s19 + $0x564] ss:$16 sps:$4 sm:$0xff]  }
 0x34a   : > { %2510 = vmatpush1.bf16.msra.mxu1 %v10910_v12  ;;  %2553 = vmatpush1.bf16.msra.mxu0 %v10913_v15  ;;  %v11003_v12 = vld [vmem:[%s15306_s19 + $0x588] ss:$16 sps:$4 sm:$0xff]   ;;  %v11011_v15 = vld [vmem:[%s15306_s19 + $0x5ac] ss:$16 sps:$4 sm:$0xff]  }
 0x34b   : > { %2511 = vmatprep.subr.bf16.mxu1 %v10918_v16  ;;  %2554 = vmatprep.subr.bf16.mxu0 %v10921_v17  ;;  %v10994_v16 = vld [vmem:[%s15306_s19 + $0x560] ss:$16 sps:$4 sm:$0xff]   ;;  %v11002_v17 = vld [vmem:[%s15306_s19 + $0x584] ss:$16 sps:$4 sm:$0xff]  }
 0x34e   : > { %2512 = vmatpush1.bf16.msra.mxu1 %v10916_v18  ;;  %2555 = vmatpush1.bf16.msra.mxu0 %v10919_v20  ;;  %v11009_v18 = vld [vmem:[%s15306_s19 + $0x5a8] ss:$16 sps:$4 sm:$0xff]   ;;  %v11000_v20 = vld [vmem:[%s15306_s19 + $0x580] ss:$16 sps:$4 sm:$0xff]  }
 0x34f   : > { %2513 = vmatprep.subr.bf16.mxu1 %v10924_v21  ;;  %2556 = vmatprep.subr.bf16.mxu0 %v10927_v22  ;;  %v11008_v21 = vld [vmem:[%s15306_s19 + $0x5a4] ss:$16 sps:$4 sm:$0xff]   ;;  %v11006_v22 = vld [vmem:[%s15306_s19 + $0x5a0] ss:$16 sps:$4 sm:$0xff]  }
 0x352   : > { %2514 = vmatpush1.bf16.msra.mxu1 %v10922_v23  ;;  %2557 = vmatpush1.bf16.msra.mxu0 %v10925_v24  ;;  %v11014_v23 = vld [vmem:[%s15306_s19 + $0x5c4] ss:$16 sps:$4 sm:$0xff]   ;;  %v11017_v24 = vld [vmem:[%s15306_s19 + $0x5cc] ss:$16 sps:$4 sm:$0xff]  }
 0x353   : > { %10590 = vmatprep.subr.bf16.mxu1 %v12497_v1  ;;  %3085 = vmatprep.subr.bf16.mxu0 %v10933_v25  ;;  %v10930_v1 = vld [vmem:[%s15306_s19 + $0x404] ss:$16 sps:$4 sm:$0xff]   ;;  %v11012_v25 = vld [vmem:[%s15306_s19 + $0x5c0] ss:$16 sps:$4 sm:$0xff]  }
 0x355   : > { %2516 = vmatmul.mubr.bf16.vlgmr.msra.gmra.mrb[20].mxu1 %v12656_v6  ;;  %2559 = vmatmul.mubr.bf16.vlgmr.msra.gmra.mrb[8].mxu0 %v12656_v6  ;;  %v10945_v6 = vld [vmem:[%s15306_s19 + $0x44c] ss:$16 sps:$4 sm:$0xff]  }
 0x356   : > { %10592 = vmatpush1.bf16.msra.mxu1 %v12495_v63  ;;  %2642 = vmatprep.mubr.f32.mxu1 %v12065_v19  ;;  %v9269_v63 = vld [vmem:[%s15308_s5 + $0x20] sm:$0xff] }
 0x357   : > { %10594 = vmatprep.subr.bf16.mxu1 %v12503_v14  ;;  %3086 = vmatpush1.bf16.msra.mxu0 %v10931_v26  ;;  %v10928_v14 = vld [vmem:[%s15306_s19 + $0x400] ss:$16 sps:$4 sm:$0xff]   ;;  %v11015_v26 = vld [vmem:[%s15306_s19 + $0x5c8] ss:$16 sps:$4 sm:$0xff]  }
 0x358   : > { %3087 = vmatprep.subr.bf16.mxu0 %v10939_v27  ;;  %v11020_v27 = vld [vmem:[%s15306_s19 + $0x5e4] ss:$16 sps:$4 sm:$0xff]  }
 0x35a   : > { %10596 = vmatpush1.bf16.msra.mxu1 %v12501_v13  ;;  %v10951_v13 = vld [vmem:[%s15306_s19 + $0x46c] ss:$16 sps:$4 sm:$0xff]  }
 0x35b   : > { %3042 = vmatprep.subr.bf16.mxu1 %v10930_v1  ;;  %3088 = vmatpush1.bf16.msra.mxu0 %v10937_v28  ;;  %v11023_v1 = vld [vmem:[%s15306_s19 + $0x5ec] ss:$16 sps:$4 sm:$0xff]   ;;  %v11018_v28 = vld [vmem:[%s15306_s19 + $0x5e0] ss:$16 sps:$4 sm:$0xff]  }
 0x35c   : > { %3089 = vmatprep.subr.bf16.mxu0 %v10945_v6  ;;  %v11021_v6 = vld [vmem:[%s15306_s19 + $0x5e8] ss:$16 sps:$4 sm:$0xff]  }
 0x35d   : > { %9271 = vmatmul.mubr.msk.f32.vlgmr.msra.gmra.mrb[24].mxu1 %vm713_vm0, %v9269_v63 }
 0x35e   : > { %2648 = vmatprep.mubr.f32.mxu1 %v12065_v19  ;;  %3043 = vmatpush1.bf16.msra.mxu1 %v10928_v14 }
 0x35f   : > { %3044 = vmatprep.subr.bf16.mxu1 %v10936_v29  ;;  %3090 = vmatpush1.bf16.msra.mxu0 %v10943_v30 }
 0x360   : > { %3091 = vmatprep.subr.bf16.mxu0 %v10951_v13 }
 0x361   : > { %9272 = vmatmul.mubr.msk.f32.gmra.mrb[26].mxu1 %vm713_vm0, %v9270_v31 }
 0x362   : > { %3045 = vmatpush1.bf16.msra.mxu1 %v10934_v32  ;;  %v11027_v32 = vld [vmem:[%s15248_s9 + $0x208] ss:$16 sps:$4 sm:$0xff]  }
 0x363   : > { %3046 = vmatprep.subr.bf16.mxu1 %v10942_v33  ;;  %3092 = vmatpush1.bf16.msra.mxu0 %v10949_v34  ;;  %v11029_v33 = vld [vmem:[%s15248_s9 + $0x20c] ss:$16 sps:$4 sm:$0xff]  }
 0x364   : > { %3093 = vmatprep.subr.bf16.mxu0 %v10957_v35  ;;  %v11035_v34 = vld [vmem:[%s15248_s9 + $0x22c] ss:$16 sps:$4 sm:$0xff]   ;;  %v11033_v35 = vld [vmem:[%s15248_s9 + $0x228] ss:$16 sps:$4 sm:$0xff]  }
 0x366   : > { %3047 = vmatpush1.bf16.msra.mxu1 %v10940_v36  ;;  %v11041_v36 = vld [vmem:[%s15248_s9 + $0x24c] ss:$16 sps:$4 sm:$0xff]  }
 0x367   : > { %3048 = vmatprep.subr.bf16.mxu1 %v10948_v37  ;;  %3094 = vmatpush1.bf16.msra.mxu0 %v10955_v38  ;;  %v11039_v37 = vld [vmem:[%s15248_s9 + $0x248] ss:$16 sps:$4 sm:$0xff]   ;;  %v11047_v38 = vld [vmem:[%s15248_s9 + $0x26c] ss:$16 sps:$4 sm:$0xff]  }
 0x368   : > { %3095 = vmatprep.subr.bf16.mxu0 %v10963_v39  ;;  %v11045_v39 = vld [vmem:[%s15248_s9 + $0x268] ss:$16 sps:$4 sm:$0xff]  }
 0x36a   : > { %3049 = vmatpush1.bf16.msra.mxu1 %v10946_v40  ;;  %v11053_v40 = vld [vmem:[%s15248_s9 + $0x28c] ss:$16 sps:$4 sm:$0xff]  }
 0x36b   : > { %3050 = vmatprep.subr.bf16.mxu1 %v10954_v41  ;;  %3096 = vmatpush1.bf16.msra.mxu0 %v10961_v42  ;;  %v11051_v41 = vld [vmem:[%s15248_s9 + $0x288] ss:$16 sps:$4 sm:$0xff]   ;;  %v11059_v42 = vld [vmem:[%s15248_s9 + $0x2ac] ss:$16 sps:$4 sm:$0xff]  }
 0x36c   : > { %3097 = vmatprep.subr.bf16.mxu0 %v10969_v43  ;;  %v11057_v43 = vld [vmem:[%s15248_s9 + $0x2a8] ss:$16 sps:$4 sm:$0xff]  }
 0x36e   : > { %3051 = vmatpush1.bf16.msra.mxu1 %v10952_v44  ;;  %v11065_v44 = vld [vmem:[%s15248_s9 + $0x2cc] ss:$16 sps:$4 sm:$0xff]  }
 0x36f   : > { %3052 = vmatprep.subr.bf16.mxu1 %v10960_v47  ;;  %3098 = vmatpush1.bf16.msra.mxu0 %v10967_v49  ;;  %v11063_v47 = vld [vmem:[%s15248_s9 + $0x2c8] ss:$16 sps:$4 sm:$0xff]   ;;  %v11071_v49 = vld [vmem:[%s15248_s9 + $0x2ec] ss:$16 sps:$4 sm:$0xff]  }
 0x370   : > { %3099 = vmatprep.subr.bf16.mxu0 %v10975_v50  ;;  %v11069_v50 = vld [vmem:[%s15248_s9 + $0x2e8] ss:$16 sps:$4 sm:$0xff]  }
 0x372   : > { %3053 = vmatpush1.bf16.msra.mxu1 %v10958_v51  ;;  %v11077_v51 = vld [vmem:[%s15248_s9 + $0x30c] ss:$16 sps:$4 sm:$0xff]  }
 0x373   : > { %3054 = vmatprep.subr.bf16.mxu1 %v10966_v52  ;;  %3100 = vmatpush1.bf16.msra.mxu0 %v10973_v53  ;;  %v11075_v52 = vld [vmem:[%s15248_s9 + $0x308] ss:$16 sps:$4 sm:$0xff]   ;;  %v11083_v53 = vld [vmem:[%s15248_s9 + $0x32c] ss:$16 sps:$4 sm:$0xff]  }
 0x374   : > { %3101 = vmatprep.subr.bf16.mxu0 %v10981_v54  ;;  %v11081_v54 = vld [vmem:[%s15248_s9 + $0x328] ss:$16 sps:$4 sm:$0xff]  }
 0x376   : > { %3055 = vmatpush1.bf16.msra.mxu1 %v10964_v55  ;;  %v11089_v55 = vld [vmem:[%s15248_s9 + $0x34c] ss:$16 sps:$4 sm:$0xff]  }
 0x377   : > { %3056 = vmatprep.subr.bf16.mxu1 %v10972_v56  ;;  %3102 = vmatpush1.bf16.msra.mxu0 %v10979_v57  ;;  %v11087_v56 = vld [vmem:[%s15248_s9 + $0x348] ss:$16 sps:$4 sm:$0xff]   ;;  %v11095_v57 = vld [vmem:[%s15248_s9 + $0x36c] ss:$16 sps:$4 sm:$0xff]  }
 0x378   : > { %3103 = vmatprep.subr.bf16.mxu0 %v10987_v58  ;;  %v11093_v58 = vld [vmem:[%s15248_s9 + $0x368] ss:$16 sps:$4 sm:$0xff]  }
 0x37a   : > { %3057 = vmatpush1.bf16.msra.mxu1 %v10970_v59  ;;  %v11101_v59 = vld [vmem:[%s15248_s9 + $0x38c] ss:$16 sps:$4 sm:$0xff]  }
 0x37b   : > { %3058 = vmatprep.subr.bf16.mxu1 %v10978_v60  ;;  %3104 = vmatpush1.bf16.msra.mxu0 %v10985_v61  ;;  %v11099_v60 = vld [vmem:[%s15248_s9 + $0x388] ss:$16 sps:$4 sm:$0xff]   ;;  %v11107_v61 = vld [vmem:[%s15248_s9 + $0x3ac] ss:$16 sps:$4 sm:$0xff]  }
 0x37c   : > { %3105 = vmatprep.subr.bf16.mxu0 %v10993_v62  ;;  %v11105_v62 = vld [vmem:[%s15248_s9 + $0x3a8] ss:$16 sps:$4 sm:$0xff]  }
 0x37e   : > { %3059 = vmatpush1.bf16.msra.mxu1 %v10976_v0  ;;  %v13138_v0 = vsub.s32 2, %v12482_v45 }
 0x37f   : > { %3060 = vmatprep.subr.bf16.mxu1 %v10984_v2  ;;  %3106 = vmatpush1.bf16.msra.mxu0 %v10991_v3  ;;  %v3136_v2 = vld [vmem:[%s15246_s7] sm:$0xf]  ;;  %v13144_v3 = vsub.s32 3, %v12482_v45 }
 0x380   : > { %3107 = vmatprep.subr.bf16.mxu0 %v10999_v4  ;;  %v3141_v4 = vrot.slane %v3136_v2, %v12485_v46 }
 0x382   : > { %3061 = vmatpush1.bf16.msra.mxu1 %v10982_v5  ;;  %v3149_v5 = vrot.slane %v3136_v2, %v13138_v0 }
 0x383   : > { %3062 = vmatprep.subr.bf16.mxu1 %v10990_v7  ;;  %3108 = vmatpush1.bf16.msra.mxu0 %v10997_v8  ;;  %v3145_v7 = vrot.slane %v3136_v2, %v12491_v48  ;;  %v3153_v8 = vrot.slane %v3136_v2, %v13144_v3  ;;  %v11108_v2 = vld [vmem:[%s15248_s9 + $0x3c0] ss:$16 sps:$4 sm:$0xff]  }
 0x384   : > { %3109 = vmatprep.subr.bf16.mxu0 %v11005_v9 }
 0x386   : > { %3063 = vmatpush1.bf16.msra.mxu1 %v10988_v10 }
 0x387   : > { %3064 = vmatprep.subr.bf16.mxu1 %v10996_v11  ;;  %3110 = vmatpush1.bf16.msra.mxu0 %v11003_v12 }
 0x388   : > { %3111 = vmatprep.subr.bf16.mxu0 %v11011_v15 }
 0x38a   : > { %3065 = vmatpush1.bf16.msra.mxu1 %v10994_v16 }
 0x38b   : > { %3066 = vmatprep.subr.bf16.mxu1 %v11002_v17  ;;  %3112 = vmatpush1.bf16.msra.mxu0 %v11009_v18 }
 0x38c   : > { %3113 = vmatprep.subr.bf16.mxu0 %v11017_v24 }
 0x38e   : > { %3067 = vmatpush1.bf16.msra.mxu1 %v11000_v20 }
 0x38f   : > { %3068 = vmatprep.subr.bf16.mxu1 %v11008_v21  ;;  %3114 = vmatpush1.bf16.msra.mxu0 %v11015_v26 }
 0x390   : > { %3115 = vmatprep.subr.bf16.mxu0 %v11023_v1 }
 0x392   : > { %3069 = vmatpush1.bf16.msra.mxu1 %v11006_v22 }
 0x393   : > { %3070 = vmatprep.subr.bf16.mxu1 %v11014_v23  ;;  %3116 = vmatpush1.bf16.msra.mxu0 %v11021_v6 }
 0x394   : > { %3816 = vmatprep.subr.bf16.mxu0 %v11029_v33  ;;  %v11030_v33 = vld [vmem:[%s15248_s9 + $0x220] ss:$16 sps:$4 sm:$0xff]  }
 0x396   : > { %3071 = vmatpush1.bf16.msra.mxu1 %v11012_v25 }
 0x397   : > { %3072 = vmatprep.subr.bf16.mxu1 %v11020_v27 }
 0x39a   : > { %3073 = vmatpush1.bf16.msra.mxu1 %v11018_v28 }
 0x430   : > { %v2644_v63 = vpop.f32.mrb[24].mxu1 }
 0x431   : > { %v2646_v14 = vpop.f32.mrb[25].mxu1 }
 0x434   : > { %v2650_v29 = vpop.f32.mrb[26].mxu1 }
 0x435   : > { %v2655_v30 = vpack.c.bf16 %v2650_v29, %v2644_v63  ;;  %v2652_v13 = vpop.f32.mrb[27].mxu1  ;;  %v3170_v29 = vld [vmem:[%s15247_s8] sm:$0xff] }
 0x436   : > { %v2656_v31 = vpack.c.bf16 %v2652_v13, %v2646_v14  ;;  %v9402_v13 = vld [vmem:[%s15247_s8 + $0x8] sm:$0xff] }
 0x438   : > { %3074 = vmatprep.mubr.bf16.mxu1 %v2656_v31  ;;  %3117 = vmatprep.mubr.bf16.mxu0 %v2656_v31  ;;  %v11024_v31 = vld [vmem:[%s15248_s9 + $0x200] ss:$16 sps:$4 sm:$0xff]  }
 0x439   : > { %3075 = vmatmul.mubr.bf16.vlgmr.msra.gmra.mrb[20].mxu1 %v2655_v30  ;;  %3118 = vmatmul.mubr.bf16.vlgmr.msra.gmra.mrb[8].mxu0 %v2655_v30  ;;  %v11026_v30 = vld [vmem:[%s15248_s9 + $0x204] ss:$16 sps:$4 sm:$0xff]  }
 0x43a   : > { %3239 = vmatprep.mubr.f32.mxu1 %v12065_v19  ;;  %3817 = vmatpush1.bf16.msra.mxu0 %v11027_v32  ;;  %v11032_v32 = vld [vmem:[%s15248_s9 + $0x224] ss:$16 sps:$4 sm:$0xff]  }
 0x43b   : > { %3818 = vmatprep.subr.bf16.mxu0 %v11035_v34  ;;  %v11038_v34 = vld [vmem:[%s15248_s9 + $0x244] ss:$16 sps:$4 sm:$0xff]  }
 0x43e   : > { %3819 = vmatpush1.bf16.msra.mxu0 %v11033_v35  ;;  %v11036_v35 = vld [vmem:[%s15248_s9 + $0x240] ss:$16 sps:$4 sm:$0xff]  }
 0x43f   : > { %3820 = vmatprep.subr.bf16.mxu0 %v11041_v36  ;;  %v11044_v36 = vld [vmem:[%s15248_s9 + $0x264] ss:$16 sps:$4 sm:$0xff]  }
 0x442   : > { %3821 = vmatpush1.bf16.msra.mxu0 %v11039_v37  ;;  %v11042_v37 = vld [vmem:[%s15248_s9 + $0x260] ss:$16 sps:$4 sm:$0xff]  }
 0x443   : > { %3822 = vmatprep.subr.bf16.mxu0 %v11047_v38  ;;  %v11050_v38 = vld [vmem:[%s15248_s9 + $0x284] ss:$16 sps:$4 sm:$0xff]  }
 0x446   : > { %3823 = vmatpush1.bf16.msra.mxu0 %v11045_v39  ;;  %v11048_v39 = vld [vmem:[%s15248_s9 + $0x280] ss:$16 sps:$4 sm:$0xff]  }
 0x447   : > { %3824 = vmatprep.subr.bf16.mxu0 %v11053_v40  ;;  %v11056_v40 = vld [vmem:[%s15248_s9 + $0x2a4] ss:$16 sps:$4 sm:$0xff]  }
 0x44a   : > { %3825 = vmatpush1.bf16.msra.mxu0 %v11051_v41  ;;  %v11054_v41 = vld [vmem:[%s15248_s9 + $0x2a0] ss:$16 sps:$4 sm:$0xff]  }
 0x44b   : > { %3826 = vmatprep.subr.bf16.mxu0 %v11059_v42  ;;  %v11062_v42 = vld [vmem:[%s15248_s9 + $0x2c4] ss:$16 sps:$4 sm:$0xff]  }
 0x44e   : > { %3827 = vmatpush1.bf16.msra.mxu0 %v11057_v43  ;;  %v11060_v43 = vld [vmem:[%s15248_s9 + $0x2c0] ss:$16 sps:$4 sm:$0xff]  }
 0x44f   : > { %3828 = vmatprep.subr.bf16.mxu0 %v11065_v44  ;;  %v11068_v44 = vld [vmem:[%s15248_s9 + $0x2e4] ss:$16 sps:$4 sm:$0xff]  }
 0x452   : > { %3829 = vmatpush1.bf16.msra.mxu0 %v11063_v47  ;;  %v11066_v47 = vld [vmem:[%s15248_s9 + $0x2e0] ss:$16 sps:$4 sm:$0xff]  }
 0x453   : > { %3830 = vmatprep.subr.bf16.mxu0 %v11071_v49  ;;  %v11074_v49 = vld [vmem:[%s15248_s9 + $0x304] ss:$16 sps:$4 sm:$0xff]  }
 0x456   : > { %3831 = vmatpush1.bf16.msra.mxu0 %v11069_v50  ;;  %v11072_v50 = vld [vmem:[%s15248_s9 + $0x300] ss:$16 sps:$4 sm:$0xff]  }
 0x457   : > { %3832 = vmatprep.subr.bf16.mxu0 %v11077_v51  ;;  %v11080_v51 = vld [vmem:[%s15248_s9 + $0x324] ss:$16 sps:$4 sm:$0xff]  }
 0x45a   : > { %3833 = vmatpush1.bf16.msra.mxu0 %v11075_v52  ;;  %v11078_v52 = vld [vmem:[%s15248_s9 + $0x320] ss:$16 sps:$4 sm:$0xff]  }
 0x45b   : > { %3834 = vmatprep.subr.bf16.mxu0 %v11083_v53  ;;  %v11086_v53 = vld [vmem:[%s15248_s9 + $0x344] ss:$16 sps:$4 sm:$0xff]  }
 0x45e   : > { %3835 = vmatpush1.bf16.msra.mxu0 %v11081_v54  ;;  %v11084_v54 = vld [vmem:[%s15248_s9 + $0x340] ss:$16 sps:$4 sm:$0xff]  }
 0x45f   : > { %3836 = vmatprep.subr.bf16.mxu0 %v11089_v55  ;;  %v11092_v55 = vld [vmem:[%s15248_s9 + $0x364] ss:$16 sps:$4 sm:$0xff]  }
 0x462   : > { %3837 = vmatpush1.bf16.msra.mxu0 %v11087_v56  ;;  %v11090_v56 = vld [vmem:[%s15248_s9 + $0x360] ss:$16 sps:$4 sm:$0xff]  }
 0x463   : > { %3838 = vmatprep.subr.bf16.mxu0 %v11095_v57  ;;  %v11098_v57 = vld [vmem:[%s15248_s9 + $0x384] ss:$16 sps:$4 sm:$0xff]  }
 0x466   : > { %3839 = vmatpush1.bf16.msra.mxu0 %v11093_v58  ;;  %v11096_v58 = vld [vmem:[%s15248_s9 + $0x380] ss:$16 sps:$4 sm:$0xff]  }
 0x467   : > { %3840 = vmatprep.subr.bf16.mxu0 %v11101_v59  ;;  %v11104_v59 = vld [vmem:[%s15248_s9 + $0x3a4] ss:$16 sps:$4 sm:$0xff]  }
 0x46a   : > { %3841 = vmatpush1.bf16.msra.mxu0 %v11099_v60  ;;  %v11102_v60 = vld [vmem:[%s15248_s9 + $0x3a0] ss:$16 sps:$4 sm:$0xff]  }
 0x46b   : > { %3842 = vmatprep.subr.bf16.mxu0 %v11107_v61  ;;  %v11110_v61 = vld [vmem:[%s15248_s9 + $0x3c4] ss:$16 sps:$4 sm:$0xff]  }
 0x46e   : > { %3843 = vmatpush1.bf16.msra.mxu0 %v11105_v62  ;;  %v11113_v62 = vld [vmem:[%s15248_s9 + $0x3cc] ss:$16 sps:$4 sm:$0xff]  }
 0x46f   : > { %3844 = vmatprep.subr.bf16.mxu0 %v11113_v62  ;;  %v11183_v62 = vld [vmem:[%s15248_s9 + $0x148] ss:$16 sps:$4 sm:$0xff]  }
 0x50c   : > { %v3076_v9 = vpop.f32.mrb[20].mxu1  ;;  %v3119_v10 = vpop.f32.mrb[8].mxu0 }
 0x50d   : > { %v3158_v11 = vadd.f32 %v3141_v4, %v3076_v9  ;;  %v3160_v12 = vadd.f32 %v3149_v5, %v3119_v10  ;;  %v3078_v15 = vpop.f32.mrb[21].mxu1  ;;  %v3121_v16 = vpop.f32.mrb[9].mxu0  ;;  %v11117_v9 = vld [vmem:[%s15248_s9 + $0x3e8] ss:$16 sps:$4 sm:$0xff]   ;;  %v11122_v10 = vld [vmem:[%s15248_s9 + $0x4] ss:$16 sps:$4 sm:$0xff]  }
 0x50e   : > { %v3159_v17 = vadd.f32 %v3145_v7, %v3078_v15  ;;  %v3161_v18 = vadd.f32 %v3153_v8, %v3121_v16  ;;  %v3080_v20 = vpop.f32.mrb[22].mxu1  ;;  %v3123_v21 = vpop.f32.mrb[10].mxu0 }
 0x50f   : > { %v3166_v45 = vmax.f32 %v3158_v11, %v3160_v12  ;;  %v3162_v22 = vadd.f32 %v3141_v4, %v3080_v20  ;;  %v3164_v23 = vadd.f32 %v3149_v5, %v3123_v21  ;;  %v3082_v24 = vpop.f32.mrb[23].mxu1  ;;  %v3125_v25 = vpop.f32.mrb[11].mxu0  ;;  %v11111_v4 = vld [vmem:[%s15248_s9 + $0x3c8] ss:$16 sps:$4 sm:$0xff]   ;;  %v11116_v5 = vld [vmem:[%s15248_s9 + $0x3e4] ss:$16 sps:$4 sm:$0xff]  }
 0x510   : > { %v3167_v26 = vmax.f32 %v3159_v17, %v3161_v18  ;;  %v3163_v27 = vadd.f32 %v3145_v7, %v3082_v24  ;;  %v3165_v1 = vadd.f32 %v3153_v8, %v3125_v25  ;;  %3845 = vmatpush1.bf16.msra.mxu0 %v11111_v4  ;;  %v11119_v7 = vld [vmem:[%s15248_s9 + $0x3ec] ss:$16 sps:$4 sm:$0xff]   ;;  %v11114_v8 = vld [vmem:[%s15248_s9 + $0x3e0] ss:$16 sps:$4 sm:$0xff]   ;;  %v11123_v21 = vld [vmem:[%s15248_s9 + $0x8] ss:$16 sps:$4 sm:$0xff]  }
 0x511   : > { %v3168_v28 = vmax.f32 %v3162_v22, %v3164_v23  ;;  %3846 = vmatprep.subr.bf16.mxu0 %v11119_v7  ;;  %v11125_v11 = vld [vmem:[%s15248_s9 + $0xc] ss:$16 sps:$4 sm:$0xff]   ;;  %v11120_v20 = vld [vmem:[%s15248_s9] ss:$16 sps:$4 sm:$0xff]   ;;  %v11128_v22 = vld [vmem:[%s15248_s9 + $0x24] ss:$16 sps:$4 sm:$0xff]  }
 0x512   : > { %v3169_v6 = vmax.f32 %v3163_v27, %v3165_v1  ;;  %v11131_v23 = vld [vmem:[%s15248_s9 + $0x2c] ss:$16 sps:$4 sm:$0xff]   ;;  %v11126_v25 = vld [vmem:[%s15248_s9 + $0x20] ss:$16 sps:$4 sm:$0xff]   ;;  %v11134_v27 = vld [vmem:[%s15248_s9 + $0x44] ss:$16 sps:$4 sm:$0xff]  }
 0x513   : > { %v13150_v63 = vpack.c.bf16 %v3168_v28, %v3166_v45  ;;  %v11137_v1 = vld [vmem:[%s15248_s9 + $0x4c] ss:$16 sps:$4 sm:$0xff]   ;;  %v11132_v28 = vld [vmem:[%s15248_s9 + $0x40] ss:$16 sps:$4 sm:$0xff]   ;;  %v11189_v7 = vld [vmem:[%s15248_s9 + $0x168] ss:$16 sps:$4 sm:$0xff]  }
 0x514   : > { %v13152_v14 = vpack.c.bf16 %v3169_v6, %v3167_v26  ;;  %3847 = vmatpush1.bf16.msra.mxu0 %v11117_v9  ;;  %v11129_v26 = vld [vmem:[%s15248_s9 + $0x28] ss:$16 sps:$4 sm:$0xff]   ;;  %v11191_v4 = vld [vmem:[%s15248_s9 + $0x16c] ss:$16 sps:$4 sm:$0xff]  }
 0x515   : > { %4218 = vmatprep.subr.bf16.mxu0 %v11125_v11  ;;  %v11135_v6 = vld [vmem:[%s15248_s9 + $0x48] ss:$16 sps:$4 sm:$0xff]   ;;  %v11197_v9 = vld [vmem:[%s15248_s9 + $0x18c] ss:$16 sps:$4 sm:$0xff]  }
 0x516   : > { %10598 = vmatprep.subr.bf16.mxu1 %v13152_v14  ;;  %v11195_v11 = vld [vmem:[%s15248_s9 + $0x188] ss:$16 sps:$4 sm:$0xff]  }
 0x517   : > { %10600 = vmatpush1.bf16.msra.mxu1 %v13150_v63 }
 0x518   : > { %10602 = vmatprep.subr.bf16.mxu1 %v13152_v14 }
 0x51a   : > { %9401 = vmatmul.mubr.msk.f32.vlgmr.msra.gmra.mrb[28].mxu1 %vm3171_vm2, %v3170_v29  ;;  %v11140_v29 = vld [vmem:[%s15248_s9 + $0x64] ss:$16 sps:$4 sm:$0xff]  }
 0x51b   : > { %10604 = vmatpush1.bf16.msra.mxu1 %v13150_v63  ;;  %3381 = vmatprep.mubr.f32.mxu1 %v12065_v19 }
 0x51c   : > { %3775 = vmatprep.subr.bf16.mxu1 %v11026_v30  ;;  %v11143_v30 = vld [vmem:[%s15248_s9 + $0x6c] ss:$16 sps:$4 sm:$0xff]  }
 0x51e   : > { %9403 = vmatmul.mubr.msk.f32.vlgmr.msra.gmra.mrb[30].mxu1 %vm3171_vm2, %v9402_v13  ;;  %v11138_v13 = vld [vmem:[%s15248_s9 + $0x60] ss:$16 sps:$4 sm:$0xff]  }
 0x51f   : > { %3776 = vmatpush1.bf16.msra.mxu1 %v11024_v31  ;;  %v11141_v31 = vld [vmem:[%s15248_s9 + $0x68] ss:$16 sps:$4 sm:$0xff]  }
 0x520   : > { %3777 = vmatprep.subr.bf16.mxu1 %v11032_v32  ;;  %v11146_v32 = vld [vmem:[%s15248_s9 + $0x84] ss:$16 sps:$4 sm:$0xff]  }
 0x523   : > { %3778 = vmatpush1.bf16.msra.mxu1 %v11030_v33  ;;  %v11149_v33 = vld [vmem:[%s15248_s9 + $0x8c] ss:$16 sps:$4 sm:$0xff]  }
 0x524   : > { %3779 = vmatprep.subr.bf16.mxu1 %v11038_v34  ;;  %v11144_v34 = vld [vmem:[%s15248_s9 + $0x80] ss:$16 sps:$4 sm:$0xff]  }
 0x527   : > { %3780 = vmatpush1.bf16.msra.mxu1 %v11036_v35  ;;  %v11147_v35 = vld [vmem:[%s15248_s9 + $0x88] ss:$16 sps:$4 sm:$0xff]  }
 0x528   : > { %3781 = vmatprep.subr.bf16.mxu1 %v11044_v36  ;;  %v11152_v36 = vld [vmem:[%s15248_s9 + $0xa4] ss:$16 sps:$4 sm:$0xff]  }
 0x52b   : > { %3782 = vmatpush1.bf16.msra.mxu1 %v11042_v37  ;;  %v11155_v37 = vld [vmem:[%s15248_s9 + $0xac] ss:$16 sps:$4 sm:$0xff]  }
 0x52c   : > { %3783 = vmatprep.subr.bf16.mxu1 %v11050_v38  ;;  %v11150_v38 = vld [vmem:[%s15248_s9 + $0xa0] ss:$16 sps:$4 sm:$0xff]  }
 0x52f   : > { %3784 = vmatpush1.bf16.msra.mxu1 %v11048_v39  ;;  %v11153_v39 = vld [vmem:[%s15248_s9 + $0xa8] ss:$16 sps:$4 sm:$0xff]  }
 0x530   : > { %3785 = vmatprep.subr.bf16.mxu1 %v11056_v40  ;;  %v11158_v40 = vld [vmem:[%s15248_s9 + $0xc4] ss:$16 sps:$4 sm:$0xff]  }
 0x533   : > { %3786 = vmatpush1.bf16.msra.mxu1 %v11054_v41  ;;  %v11161_v41 = vld [vmem:[%s15248_s9 + $0xcc] ss:$16 sps:$4 sm:$0xff]  }
 0x534   : > { %3787 = vmatprep.subr.bf16.mxu1 %v11062_v42  ;;  %v11156_v42 = vld [vmem:[%s15248_s9 + $0xc0] ss:$16 sps:$4 sm:$0xff]  }
 0x537   : > { %3788 = vmatpush1.bf16.msra.mxu1 %v11060_v43  ;;  %v11159_v43 = vld [vmem:[%s15248_s9 + $0xc8] ss:$16 sps:$4 sm:$0xff]  }
 0x538   : > { %3789 = vmatprep.subr.bf16.mxu1 %v11068_v44  ;;  %v11164_v44 = vld [vmem:[%s15248_s9 + $0xe4] ss:$16 sps:$4 sm:$0xff]  }
 0x53b   : > { %3790 = vmatpush1.bf16.msra.mxu1 %v11066_v47  ;;  %v11167_v47 = vld [vmem:[%s15248_s9 + $0xec] ss:$16 sps:$4 sm:$0xff]  }
 0x53c   : > { %3791 = vmatprep.subr.bf16.mxu1 %v11074_v49  ;;  %v11162_v49 = vld [vmem:[%s15248_s9 + $0xe0] ss:$16 sps:$4 sm:$0xff]  }
 0x53f   : > { %3792 = vmatpush1.bf16.msra.mxu1 %v11072_v50  ;;  %v11165_v50 = vld [vmem:[%s15248_s9 + $0xe8] ss:$16 sps:$4 sm:$0xff]  }
 0x540   : > { %3793 = vmatprep.subr.bf16.mxu1 %v11080_v51  ;;  %v11170_v51 = vld [vmem:[%s15248_s9 + $0x104] ss:$16 sps:$4 sm:$0xff]  }
 0x543   : > { %3794 = vmatpush1.bf16.msra.mxu1 %v11078_v52  ;;  %v11173_v52 = vld [vmem:[%s15248_s9 + $0x10c] ss:$16 sps:$4 sm:$0xff]  }
 0x544   : > { %3795 = vmatprep.subr.bf16.mxu1 %v11086_v53  ;;  %v11168_v53 = vld [vmem:[%s15248_s9 + $0x100] ss:$16 sps:$4 sm:$0xff]  }
 0x547   : > { %3796 = vmatpush1.bf16.msra.mxu1 %v11084_v54  ;;  %v11171_v54 = vld [vmem:[%s15248_s9 + $0x108] ss:$16 sps:$4 sm:$0xff]  }
 0x548   : > { %3797 = vmatprep.subr.bf16.mxu1 %v11092_v55  ;;  %v11176_v55 = vld [vmem:[%s15248_s9 + $0x124] ss:$16 sps:$4 sm:$0xff]  }
 0x54b   : > { %3798 = vmatpush1.bf16.msra.mxu1 %v11090_v56  ;;  %v11179_v56 = vld [vmem:[%s15248_s9 + $0x12c] ss:$16 sps:$4 sm:$0xff]  }
 0x54c   : > { %3799 = vmatprep.subr.bf16.mxu1 %v11098_v57  ;;  %v11174_v57 = vld [vmem:[%s15248_s9 + $0x120] ss:$16 sps:$4 sm:$0xff]  }
 0x54f   : > { %3800 = vmatpush1.bf16.msra.mxu1 %v11096_v58  ;;  %v11177_v58 = vld [vmem:[%s15248_s9 + $0x128] ss:$16 sps:$4 sm:$0xff]  }
 0x550   : > { %3801 = vmatprep.subr.bf16.mxu1 %v11104_v59  ;;  %v11182_v59 = vld [vmem:[%s15248_s9 + $0x144] ss:$16 sps:$4 sm:$0xff]  }
 0x553   : > { %3802 = vmatpush1.bf16.msra.mxu1 %v11102_v60  ;;  %v11185_v60 = vld [vmem:[%s15248_s9 + $0x14c] ss:$16 sps:$4 sm:$0xff]  }
 0x554   : > { %3803 = vmatprep.subr.bf16.mxu1 %v11110_v61  ;;  %v11180_v61 = vld [vmem:[%s15248_s9 + $0x140] ss:$16 sps:$4 sm:$0xff]  }
 0x557   : > { %3804 = vmatpush1.bf16.msra.mxu1 %v11108_v2  ;;  %v11188_v2 = vld [vmem:[%s15248_s9 + $0x164] ss:$16 sps:$4 sm:$0xff]  }
 0x558   : > { %3805 = vmatprep.subr.bf16.mxu1 %v11116_v5  ;;  %v11186_v5 = vld [vmem:[%s15248_s9 + $0x160] ss:$16 sps:$4 sm:$0xff]  }
 0x55b   : > { %3806 = vmatpush1.bf16.msra.mxu1 %v11114_v8  ;;  %v11194_v8 = vld [vmem:[%s15248_s9 + $0x184] ss:$16 sps:$4 sm:$0xff]  }
 0x55c   : > { %4177 = vmatprep.subr.bf16.mxu1 %v11122_v10  ;;  %v11192_v10 = vld [vmem:[%s15248_s9 + $0x180] ss:$16 sps:$4 sm:$0xff]  }
 0x5ed   : > { %v13281_v12 = vpop.f32.mrb[28].mxu1 }
 0x5ee   : > { %v3243_v15 = vpop.f32.mrb[29].mxu1 }
 0x5ef   : > { %v3247_v24 = vpack.c.bf16 %v3243_v15, %v3243_v15  ;;  %v11200_v15 = vld [vmem:[%s15248_s9 + $0x1a4] ss:$16 sps:$4 sm:$0xff]  }
 0x5f1   : > { %v3383_v16 = vpop.f32.mrb[30].mxu1 }
 0x5f2   : > { %v3385_v17 = vpop.f32.mrb[31].mxu1  ;;  %v3388_v45 = vpack.c.bf16 %v3383_v16, %v3383_v16  ;;  %v11203_v16 = vld [vmem:[%s15248_s9 + $0x1ac] ss:$16 sps:$4 sm:$0xff]  }
 0x5f3   : > { %v3389_v18 = vpack.c.bf16 %v3385_v17, %v3385_v17  ;;  %v11198_v17 = vld [vmem:[%s15248_s9 + $0x1a0] ss:$16 sps:$4 sm:$0xff]  }
 0x5f5   : > { %3807 = vmatprep.mubr.bf16.mxu1 %v3389_v18  ;;  %3848 = vmatprep.mubr.bf16.mxu0 %v3389_v18  ;;  %v11201_v18 = vld [vmem:[%s15248_s9 + $0x1a8] ss:$16 sps:$4 sm:$0xff]  }
 0x5f6   : > { %3808 = vmatmul.mubr.bf16.vlgmr.msra.gmra.mrb[32].mxu1 %v3388_v45  ;;  %3849 = vmatmul.mubr.bf16.vlgmr.msra.gmra.mrb[12].mxu0 %v3388_v45  ;;  %v11204_v45 = vld [vmem:[%s15248_s9 + $0x1c0] ss:$16 sps:$4 sm:$0xff]  }
 0x5f7   : > { %4178 = vmatpush1.bf16.msra.mxu1 %v11120_v20  ;;  %4219 = vmatpush1.bf16.msra.mxu0 %v11123_v21  ;;  %v11206_v20 = vld [vmem:[%s15248_s9 + $0x1c4] ss:$16 sps:$4 sm:$0xff]   ;;  %v11209_v21 = vld [vmem:[%s15248_s9 + $0x1cc] ss:$16 sps:$4 sm:$0xff]  }
 0x5f8   : > { %4209 = vmatprep.mubr.bf16.mxu1 %v3247_v24  ;;  %4250 = vmatprep.mubr.bf16.mxu0 %v3247_v24  ;;  %v11215_v24 = vld [vmem:[%s15248_s9 + $0x1ec] ss:$16 sps:$4 sm:$0xff]  }
 0x5f9   : > { %4179 = vmatprep.subr.bf16.mxu1 %v11128_v22  ;;  %4220 = vmatprep.subr.bf16.mxu0 %v11131_v23  ;;  %v11207_v22 = vld [vmem:[%s15248_s9 + $0x1c8] ss:$16 sps:$4 sm:$0xff]   ;;  %v11212_v23 = vld [vmem:[%s15248_s9 + $0x1e4] ss:$16 sps:$4 sm:$0xff]  }
 0x5fb   : > { %4180 = vmatpush1.bf16.msra.mxu1 %v11126_v25  ;;  %4221 = vmatpush1.bf16.msra.mxu0 %v11129_v26  ;;  %v11210_v25 = vld [vmem:[%s15248_s9 + $0x1e0] ss:$16 sps:$4 sm:$0xff]   ;;  %v11213_v26 = vld [vmem:[%s15248_s9 + $0x1e8] ss:$16 sps:$4 sm:$0xff]  }
 0x5fc   : > { %4181 = vmatprep.subr.bf16.mxu1 %v11134_v27  ;;  %4222 = vmatprep.subr.bf16.mxu0 %v11137_v1  ;;  %v3246_v27 = vpack.c.bf16 %v13281_v12, %v13281_v12  ;;  %v9596_v1 = vld [vmem:[%s15247_s8 + $0x10] sm:$0xff]  ;;  %v11221_v12 = vld [vmem:[%s15248_s9 + $0x40c] ss:$16 sps:$4 sm:$0xff]  }
 0x5ff   : > { %4182 = vmatpush1.bf16.msra.mxu1 %v11132_v28  ;;  %4223 = vmatpush1.bf16.msra.mxu0 %v11135_v6  ;;  %v11216_v28 = vld [vmem:[%s15248_s9 + $0x400] ss:$16 sps:$4 sm:$0xff]   ;;  %v11224_v6 = vld [vmem:[%s15248_s9 + $0x424] ss:$16 sps:$4 sm:$0xff]  }
 0x600   : > { %4183 = vmatprep.subr.bf16.mxu1 %v11140_v29  ;;  %4224 = vmatprep.subr.bf16.mxu0 %v11143_v30  ;;  %v11227_v29 = vld [vmem:[%s15248_s9 + $0x42c] ss:$16 sps:$4 sm:$0xff]   ;;  %v11222_v30 = vld [vmem:[%s15248_s9 + $0x420] ss:$16 sps:$4 sm:$0xff]  }
 0x603   : > { %4184 = vmatpush1.bf16.msra.mxu1 %v11138_v13  ;;  %4225 = vmatpush1.bf16.msra.mxu0 %v11141_v31  ;;  %v11225_v13 = vld [vmem:[%s15248_s9 + $0x428] ss:$16 sps:$4 sm:$0xff]   ;;  %v11230_v31 = vld [vmem:[%s15248_s9 + $0x444] ss:$16 sps:$4 sm:$0xff]  }
 0x604   : > { %4185 = vmatprep.subr.bf16.mxu1 %v11146_v32  ;;  %4226 = vmatprep.subr.bf16.mxu0 %v11149_v33  ;;  %v11233_v32 = vld [vmem:[%s15248_s9 + $0x44c] ss:$16 sps:$4 sm:$0xff]   ;;  %v11228_v33 = vld [vmem:[%s15248_s9 + $0x440] ss:$16 sps:$4 sm:$0xff]  }
 0x607   : > { %4186 = vmatpush1.bf16.msra.mxu1 %v11144_v34  ;;  %4227 = vmatpush1.bf16.msra.mxu0 %v11147_v35  ;;  %v11231_v34 = vld [vmem:[%s15248_s9 + $0x448] ss:$16 sps:$4 sm:$0xff]   ;;  %v11236_v35 = vld [vmem:[%s15248_s9 + $0x464] ss:$16 sps:$4 sm:$0xff]  }
 0x608   : > { %4187 = vmatprep.subr.bf16.mxu1 %v11152_v36  ;;  %4228 = vmatprep.subr.bf16.mxu0 %v11155_v37  ;;  %v11239_v36 = vld [vmem:[%s15248_s9 + $0x46c] ss:$16 sps:$4 sm:$0xff]   ;;  %v11234_v37 = vld [vmem:[%s15248_s9 + $0x460] ss:$16 sps:$4 sm:$0xff]  }
 0x60b   : > { %4188 = vmatpush1.bf16.msra.mxu1 %v11150_v38  ;;  %4229 = vmatpush1.bf16.msra.mxu0 %v11153_v39  ;;  %v11237_v38 = vld [vmem:[%s15248_s9 + $0x468] ss:$16 sps:$4 sm:$0xff]   ;;  %v11242_v39 = vld [vmem:[%s15248_s9 + $0x484] ss:$16 sps:$4 sm:$0xff]  }
 0x60c   : > { %4189 = vmatprep.subr.bf16.mxu1 %v11158_v40  ;;  %4230 = vmatprep.subr.bf16.mxu0 %v11161_v41  ;;  %v11245_v40 = vld [vmem:[%s15248_s9 + $0x48c] ss:$16 sps:$4 sm:$0xff]   ;;  %v11240_v41 = vld [vmem:[%s15248_s9 + $0x480] ss:$16 sps:$4 sm:$0xff]  }
 0x60f   : > { %4190 = vmatpush1.bf16.msra.mxu1 %v11156_v42  ;;  %4231 = vmatpush1.bf16.msra.mxu0 %v11159_v43  ;;  %v11243_v42 = vld [vmem:[%s15248_s9 + $0x488] ss:$16 sps:$4 sm:$0xff]   ;;  %v11248_v43 = vld [vmem:[%s15248_s9 + $0x4a4] ss:$16 sps:$4 sm:$0xff]  }
 0x610   : > { %4191 = vmatprep.subr.bf16.mxu1 %v11164_v44  ;;  %4232 = vmatprep.subr.bf16.mxu0 %v11167_v47  ;;  %v11251_v44 = vld [vmem:[%s15248_s9 + $0x4ac] ss:$16 sps:$4 sm:$0xff]   ;;  %v11246_v47 = vld [vmem:[%s15248_s9 + $0x4a0] ss:$16 sps:$4 sm:$0xff]  }
 0x613   : > { %4192 = vmatpush1.bf16.msra.mxu1 %v11162_v49  ;;  %4233 = vmatpush1.bf16.msra.mxu0 %v11165_v50  ;;  %v11249_v49 = vld [vmem:[%s15248_s9 + $0x4a8] ss:$16 sps:$4 sm:$0xff]   ;;  %v11254_v50 = vld [vmem:[%s15248_s9 + $0x4c4] ss:$16 sps:$4 sm:$0xff]  }
 0x614   : > { %4193 = vmatprep.subr.bf16.mxu1 %v11170_v51  ;;  %4234 = vmatprep.subr.bf16.mxu0 %v11173_v52  ;;  %v11257_v51 = vld [vmem:[%s15248_s9 + $0x4cc] ss:$16 sps:$4 sm:$0xff]   ;;  %v11252_v52 = vld [vmem:[%s15248_s9 + $0x4c0] ss:$16 sps:$4 sm:$0xff]  }
 0x617   : > { %4194 = vmatpush1.bf16.msra.mxu1 %v11168_v53  ;;  %4235 = vmatpush1.bf16.msra.mxu0 %v11171_v54  ;;  %v11255_v53 = vld [vmem:[%s15248_s9 + $0x4c8] ss:$16 sps:$4 sm:$0xff]   ;;  %v11260_v54 = vld [vmem:[%s15248_s9 + $0x4e4] ss:$16 sps:$4 sm:$0xff]  }
 0x618   : > { %4195 = vmatprep.subr.bf16.mxu1 %v11176_v55  ;;  %4236 = vmatprep.subr.bf16.mxu0 %v11179_v56  ;;  %v11263_v55 = vld [vmem:[%s15248_s9 + $0x4ec] ss:$16 sps:$4 sm:$0xff]   ;;  %v11258_v56 = vld [vmem:[%s15248_s9 + $0x4e0] ss:$16 sps:$4 sm:$0xff]  }
 0x61b   : > { %4196 = vmatpush1.bf16.msra.mxu1 %v11174_v57  ;;  %4237 = vmatpush1.bf16.msra.mxu0 %v11177_v58  ;;  %v11261_v57 = vld [vmem:[%s15248_s9 + $0x4e8] ss:$16 sps:$4 sm:$0xff]   ;;  %v11266_v58 = vld [vmem:[%s15248_s9 + $0x504] ss:$16 sps:$4 sm:$0xff]  }
 0x61c   : > { %4197 = vmatprep.subr.bf16.mxu1 %v11182_v59  ;;  %4238 = vmatprep.subr.bf16.mxu0 %v11185_v60  ;;  %v11269_v59 = vld [vmem:[%s15248_s9 + $0x50c] ss:$16 sps:$4 sm:$0xff]   ;;  %v11264_v60 = vld [vmem:[%s15248_s9 + $0x500] ss:$16 sps:$4 sm:$0xff]  }
 0x61f   : > { %4198 = vmatpush1.bf16.msra.mxu1 %v11180_v61  ;;  %4239 = vmatpush1.bf16.msra.mxu0 %v11183_v62  ;;  %v11267_v61 = vld [vmem:[%s15248_s9 + $0x508] ss:$16 sps:$4 sm:$0xff]   ;;  %v11272_v62 = vld [vmem:[%s15248_s9 + $0x524] ss:$16 sps:$4 sm:$0xff]  }
 0x620   : > { %4199 = vmatprep.subr.bf16.mxu1 %v11188_v2  ;;  %4240 = vmatprep.subr.bf16.mxu0 %v11191_v4  ;;  %v11275_v2 = vld [vmem:[%s15248_s9 + $0x52c] ss:$16 sps:$4 sm:$0xff]   ;;  %v11270_v4 = vld [vmem:[%s15248_s9 + $0x520] ss:$16 sps:$4 sm:$0xff]  }
 0x623   : > { %4200 = vmatpush1.bf16.msra.mxu1 %v11186_v5  ;;  %4241 = vmatpush1.bf16.msra.mxu0 %v11189_v7  ;;  %v11273_v5 = vld [vmem:[%s15248_s9 + $0x528] ss:$16 sps:$4 sm:$0xff]   ;;  %v11278_v7 = vld [vmem:[%s15248_s9 + $0x544] ss:$16 sps:$4 sm:$0xff]  }
 0x624   : > { %4201 = vmatprep.subr.bf16.mxu1 %v11194_v8  ;;  %4242 = vmatprep.subr.bf16.mxu0 %v11197_v9  ;;  %v11281_v8 = vld [vmem:[%s15248_s9 + $0x54c] ss:$16 sps:$4 sm:$0xff]   ;;  %v11276_v9 = vld [vmem:[%s15248_s9 + $0x540] ss:$16 sps:$4 sm:$0xff]  }
 0x627   : > { %4202 = vmatpush1.bf16.msra.mxu1 %v11192_v10  ;;  %4243 = vmatpush1.bf16.msra.mxu0 %v11195_v11  ;;  %v11279_v10 = vld [vmem:[%s15248_s9 + $0x548] ss:$16 sps:$4 sm:$0xff]   ;;  %v11284_v11 = vld [vmem:[%s15248_s9 + $0x564] ss:$16 sps:$4 sm:$0xff]  }
 0x628   : > { %4203 = vmatprep.subr.bf16.mxu1 %v11200_v15  ;;  %4244 = vmatprep.subr.bf16.mxu0 %v11203_v16  ;;  %v11287_v15 = vld [vmem:[%s15248_s9 + $0x56c] ss:$16 sps:$4 sm:$0xff]   ;;  %v11282_v16 = vld [vmem:[%s15248_s9 + $0x560] ss:$16 sps:$4 sm:$0xff]  }
 0x62b   : > { %4204 = vmatpush1.bf16.msra.mxu1 %v11198_v17  ;;  %4245 = vmatpush1.bf16.msra.mxu0 %v11201_v18  ;;  %v11285_v17 = vld [vmem:[%s15248_s9 + $0x568] ss:$16 sps:$4 sm:$0xff]   ;;  %v11290_v18 = vld [vmem:[%s15248_s9 + $0x584] ss:$16 sps:$4 sm:$0xff]  }
 0x62c   : > { %4205 = vmatprep.subr.bf16.mxu1 %v11206_v20  ;;  %4246 = vmatprep.subr.bf16.mxu0 %v11209_v21  ;;  %v11293_v20 = vld [vmem:[%s15248_s9 + $0x58c] ss:$16 sps:$4 sm:$0xff]   ;;  %v11288_v21 = vld [vmem:[%s15248_s9 + $0x580] ss:$16 sps:$4 sm:$0xff]  }
 0x62f   : > { %4206 = vmatpush1.bf16.msra.mxu1 %v11204_v45  ;;  %4247 = vmatpush1.bf16.msra.mxu0 %v11207_v22  ;;  %v11291_v45 = vld [vmem:[%s15248_s9 + $0x588] ss:$16 sps:$4 sm:$0xff]   ;;  %v11296_v22 = vld [vmem:[%s15248_s9 + $0x5a4] ss:$16 sps:$4 sm:$0xff]  }
 0x630   : > { %4207 = vmatprep.subr.bf16.mxu1 %v11212_v23  ;;  %4248 = vmatprep.subr.bf16.mxu0 %v11215_v24  ;;  %v11299_v23 = vld [vmem:[%s15248_s9 + $0x5ac] ss:$16 sps:$4 sm:$0xff]   ;;  %v11294_v24 = vld [vmem:[%s15248_s9 + $0x5a0] ss:$16 sps:$4 sm:$0xff]  }
 0x633   : > { %4208 = vmatpush1.bf16.msra.mxu1 %v11210_v25  ;;  %4249 = vmatpush1.bf16.msra.mxu0 %v11213_v26  ;;  %v11297_v25 = vld [vmem:[%s15248_s9 + $0x5a8] ss:$16 sps:$4 sm:$0xff]   ;;  %v11300_v26 = vld [vmem:[%s15248_s9 + $0x5c0] ss:$16 sps:$4 sm:$0xff]  }
 0x634   : > { %10606 = vmatprep.subr.bf16.mxu1 %v13152_v14  ;;  %v11218_v14 = vld [vmem:[%s15248_s9 + $0x404] ss:$16 sps:$4 sm:$0xff]   ;;  %4763 = vmatprep.subr.bf16.mxu0 %v11221_v12  ;;  %v11306_v12 = vld [vmem:[%s15248_s9 + $0x5e0] ss:$16 sps:$4 sm:$0xff]  }
 0x636   : > { %4210 = vmatmul.mubr.bf16.vlgmr.msra.gmra.mrb[36].mxu1 %v3246_v27  ;;  %4251 = vmatmul.mubr.bf16.vlgmr.msra.gmra.mrb[16].mxu0 %v3246_v27  ;;  %v11302_v27 = vld [vmem:[%s15248_s9 + $0x5c4] ss:$16 sps:$4 sm:$0xff]  }
 0x637   : > { %10608 = vmatpush1.bf16.msra.mxu1 %v13150_v63  ;;  %4328 = vmatprep.mubr.f32.mxu1 %v12065_v19  ;;  %v11219_v63 = vld [vmem:[%s15248_s9 + $0x408] ss:$16 sps:$4 sm:$0xff]  }
 0x638   : > { %4722 = vmatprep.subr.bf16.mxu1 %v11218_v14  ;;  %4764 = vmatpush1.bf16.msra.mxu0 %v11219_v63  ;;  %v11308_v14 = vld [vmem:[%s15248_s9 + $0x5e4] ss:$16 sps:$4 sm:$0xff]   ;;  %v11311_v63 = vld [vmem:[%s15248_s9 + $0x5ec] ss:$16 sps:$4 sm:$0xff]  }
 0x639   : > { %4765 = vmatprep.subr.bf16.mxu0 %v11227_v29 }
 0x63c   : > { %4766 = vmatpush1.bf16.msra.mxu0 %v11225_v13 }
 0x63d   : > { %4767 = vmatprep.subr.bf16.mxu0 %v11233_v32 }
 0x63e   : > { %9597 = vmatmul.mubr.msk.f32.vlgmr.msra.gmra.mrb[40].mxu1 %vm3171_vm2, %v9596_v1  ;;  %v11303_v1 = vld [vmem:[%s15248_s9 + $0x5c8] ss:$16 sps:$4 sm:$0xff]  }
 0x63f   : > { %4723 = vmatpush1.bf16.msra.mxu1 %v11216_v28  ;;  %v11305_v28 = vld [vmem:[%s15248_s9 + $0x5cc] ss:$16 sps:$4 sm:$0xff]  }
 0x640   : > { %4724 = vmatprep.subr.bf16.mxu1 %v11224_v6  ;;  %4768 = vmatpush1.bf16.msra.mxu0 %v11231_v34  ;;  %v11309_v6 = vld [vmem:[%s15248_s9 + $0x5e8] ss:$16 sps:$4 sm:$0xff]  }
 0x641   : > { %4769 = vmatprep.subr.bf16.mxu0 %v11239_v36 }
 0x643   : > { %4725 = vmatpush1.bf16.msra.mxu1 %v11222_v30 }
 0x644   : > { %4726 = vmatprep.subr.bf16.mxu1 %v11230_v31  ;;  %4770 = vmatpush1.bf16.msra.mxu0 %v11237_v38 }
 0x645   : > { %4771 = vmatprep.subr.bf16.mxu0 %v11245_v40 }
 0x647   : > { %4727 = vmatpush1.bf16.msra.mxu1 %v11228_v33 }
 0x648   : > { %4728 = vmatprep.subr.bf16.mxu1 %v11236_v35  ;;  %4772 = vmatpush1.bf16.msra.mxu0 %v11243_v42 }
 0x649   : > { %4773 = vmatprep.subr.bf16.mxu0 %v11251_v44 }
 0x64b   : > { %4729 = vmatpush1.bf16.msra.mxu1 %v11234_v37 }
 0x64c   : > { %4730 = vmatprep.subr.bf16.mxu1 %v11242_v39  ;;  %4774 = vmatpush1.bf16.msra.mxu0 %v11249_v49 }
 0x64d   : > { %4775 = vmatprep.subr.bf16.mxu0 %v11257_v51 }
 0x64f   : > { %4731 = vmatpush1.bf16.msra.mxu1 %v11240_v41 }
 0x650   : > { %4732 = vmatprep.subr.bf16.mxu1 %v11248_v43  ;;  %4776 = vmatpush1.bf16.msra.mxu0 %v11255_v53 }
 0x651   : > { %4777 = vmatprep.subr.bf16.mxu0 %v11263_v55  ;;  %v11315_v55 = vld [vmem:[%s15251_s12 + $0x208] ss:$16 sps:$4 sm:$0xff]  }
 0x653   : > { %4733 = vmatpush1.bf16.msra.mxu1 %v11246_v47 }
 0x654   : > { %4734 = vmatprep.subr.bf16.mxu1 %v11254_v50  ;;  %4778 = vmatpush1.bf16.msra.mxu0 %v11261_v57  ;;  %v11323_v57 = vld [vmem:[%s15251_s12 + $0x22c] ss:$16 sps:$4 sm:$0xff]  }
 0x655   : > { %4779 = vmatprep.subr.bf16.mxu0 %v11269_v59  ;;  %v11329_v59 = vld [vmem:[%s15251_s12 + $0x24c] ss:$16 sps:$4 sm:$0xff]  }
 0x657   : > { %4735 = vmatpush1.bf16.msra.mxu1 %v11252_v52 }
 0x658   : > { %4736 = vmatprep.subr.bf16.mxu1 %v11260_v54  ;;  %4780 = vmatpush1.bf16.msra.mxu0 %v11267_v61  ;;  %v11335_v61 = vld [vmem:[%s15251_s12 + $0x26c] ss:$16 sps:$4 sm:$0xff]  }
 0x659   : > { %4781 = vmatprep.subr.bf16.mxu0 %v11275_v2  ;;  %v11341_v2 = vld [vmem:[%s15251_s12 + $0x28c] ss:$16 sps:$4 sm:$0xff]  }
 0x65b   : > { %4737 = vmatpush1.bf16.msra.mxu1 %v11258_v56  ;;  %v11317_v56 = vld [vmem:[%s15251_s12 + $0x20c] ss:$16 sps:$4 sm:$0xff]  }
 0x65c   : > { %4738 = vmatprep.subr.bf16.mxu1 %v11266_v58  ;;  %4782 = vmatpush1.bf16.msra.mxu0 %v11273_v5  ;;  %v11321_v58 = vld [vmem:[%s15251_s12 + $0x228] ss:$16 sps:$4 sm:$0xff]   ;;  %v11347_v5 = vld [vmem:[%s15251_s12 + $0x2ac] ss:$16 sps:$4 sm:$0xff]  }
 0x65d   : > { %4783 = vmatprep.subr.bf16.mxu0 %v11281_v8  ;;  %v11353_v8 = vld [vmem:[%s15251_s12 + $0x2cc] ss:$16 sps:$4 sm:$0xff]  }
 0x65f   : > { %4739 = vmatpush1.bf16.msra.mxu1 %v11264_v60  ;;  %v11327_v60 = vld [vmem:[%s15251_s12 + $0x248] ss:$16 sps:$4 sm:$0xff]  }
 0x660   : > { %4740 = vmatprep.subr.bf16.mxu1 %v11272_v62  ;;  %4784 = vmatpush1.bf16.msra.mxu0 %v11279_v10  ;;  %v11333_v62 = vld [vmem:[%s15251_s12 + $0x268] ss:$16 sps:$4 sm:$0xff]   ;;  %v11359_v10 = vld [vmem:[%s15251_s12 + $0x2ec] ss:$16 sps:$4 sm:$0xff]  }
 0x661   : > { %4785 = vmatprep.subr.bf16.mxu0 %v11287_v15  ;;  %v11365_v15 = vld [vmem:[%s15251_s12 + $0x30c] ss:$16 sps:$4 sm:$0xff]  }
 0x663   : > { %4741 = vmatpush1.bf16.msra.mxu1 %v11270_v4  ;;  %v11339_v4 = vld [vmem:[%s15251_s12 + $0x288] ss:$16 sps:$4 sm:$0xff]  }
 0x664   : > { %4742 = vmatprep.subr.bf16.mxu1 %v11278_v7  ;;  %4786 = vmatpush1.bf16.msra.mxu0 %v11285_v17  ;;  %v11345_v7 = vld [vmem:[%s15251_s12 + $0x2a8] ss:$16 sps:$4 sm:$0xff]   ;;  %v11371_v17 = vld [vmem:[%s15251_s12 + $0x32c] ss:$16 sps:$4 sm:$0xff]  }
 0x665   : > { %4787 = vmatprep.subr.bf16.mxu0 %v11293_v20  ;;  %v11377_v20 = vld [vmem:[%s15251_s12 + $0x34c] ss:$16 sps:$4 sm:$0xff]  }
 0x667   : > { %4743 = vmatpush1.bf16.msra.mxu1 %v11276_v9  ;;  %v11351_v9 = vld [vmem:[%s15251_s12 + $0x2c8] ss:$16 sps:$4 sm:$0xff]  }
 0x668   : > { %4744 = vmatprep.subr.bf16.mxu1 %v11284_v11  ;;  %4788 = vmatpush1.bf16.msra.mxu0 %v11291_v45  ;;  %v11357_v11 = vld [vmem:[%s15251_s12 + $0x2e8] ss:$16 sps:$4 sm:$0xff]   ;;  %v11383_v45 = vld [vmem:[%s15251_s12 + $0x36c] ss:$16 sps:$4 sm:$0xff]  }
 0x669   : > { %4789 = vmatprep.subr.bf16.mxu0 %v11299_v23  ;;  %v11389_v23 = vld [vmem:[%s15251_s12 + $0x38c] ss:$16 sps:$4 sm:$0xff]  }
 0x66b   : > { %4745 = vmatpush1.bf16.msra.mxu1 %v11282_v16  ;;  %v11363_v16 = vld [vmem:[%s15251_s12 + $0x308] ss:$16 sps:$4 sm:$0xff]  }
 0x66c   : > { %4746 = vmatprep.subr.bf16.mxu1 %v11290_v18  ;;  %4790 = vmatpush1.bf16.msra.mxu0 %v11297_v25  ;;  %v11369_v18 = vld [vmem:[%s15251_s12 + $0x328] ss:$16 sps:$4 sm:$0xff]   ;;  %v11395_v25 = vld [vmem:[%s15251_s12 + $0x3ac] ss:$16 sps:$4 sm:$0xff]  }
 0x66d   : > { %4791 = vmatprep.subr.bf16.mxu0 %v11305_v28 }
 0x66f   : > { %4747 = vmatpush1.bf16.msra.mxu1 %v11288_v21  ;;  %v11375_v21 = vld [vmem:[%s15251_s12 + $0x348] ss:$16 sps:$4 sm:$0xff]  }
 0x670   : > { %4748 = vmatprep.subr.bf16.mxu1 %v11296_v22  ;;  %4792 = vmatpush1.bf16.msra.mxu0 %v11303_v1  ;;  %v11381_v22 = vld [vmem:[%s15251_s12 + $0x368] ss:$16 sps:$4 sm:$0xff]  }
 0x671   : > { %4793 = vmatprep.subr.bf16.mxu0 %v11311_v63 }
 0x673   : > { %4749 = vmatpush1.bf16.msra.mxu1 %v11294_v24  ;;  %v11387_v24 = vld [vmem:[%s15251_s12 + $0x388] ss:$16 sps:$4 sm:$0xff]  }
 0x674   : > { %4750 = vmatprep.subr.bf16.mxu1 %v11302_v27  ;;  %4794 = vmatpush1.bf16.msra.mxu0 %v11309_v6  ;;  %v4808_v27 = vld [vmem:[%s15249_s10] sm:$0xf] }
 0x675   : > { %5482 = vmatprep.subr.bf16.mxu0 %v11317_v56  ;;  %v4813_v1 = vrot.slane %v4808_v27, %v12485_v46  ;;  %v4821_v28 = vrot.slane %v4808_v27, %v13138_v0  ;;  %v4825_v6 = vrot.slane %v4808_v27, %v13144_v3  ;;  %v11330_v56 = vld [vmem:[%s15251_s12 + $0x260] ss:$16 sps:$4 sm:$0xff]  }
 0x677   : > { %4751 = vmatpush1.bf16.msra.mxu1 %v11300_v26  ;;  %v11393_v26 = vld [vmem:[%s15251_s12 + $0x3a8] ss:$16 sps:$4 sm:$0xff]  }
 0x678   : > { %4752 = vmatprep.subr.bf16.mxu1 %v11308_v14 }
 0x67b   : > { %4753 = vmatpush1.bf16.msra.mxu1 %v11306_v12  ;;  %v4817_v12 = vrot.slane %v4808_v27, %v12491_v48  ;;  %v11402_v27 = vld [vmem:[%s15251_s12 + $0x3e0] ss:$16 sps:$4 sm:$0xff]  }
 0x6c9   : > { %v3809_v29 = vpop.f32.mrb[32].mxu1  ;;  %v3850_v30 = vpop.f32.mrb[12].mxu0 }
 0x6ca   : > { %v3811_v13 = vpop.f32.mrb[33].mxu1  ;;  %v3852_v31 = vpop.f32.mrb[13].mxu0 }
 0x6cb   : > { %v3813_v32 = vpop.f32.mrb[34].mxu1  ;;  %v3854_v33 = vpop.f32.mrb[14].mxu0 }
 0x6cc   : > { %v3814_v34 = vpop.f32.mrb[35].mxu1  ;;  %v3855_v35 = vpop.f32.mrb[15].mxu0 }
 0x709   : > { %v4211_v36 = vpop.f32.mrb[36].mxu1  ;;  %v4252_v37 = vpop.f32.mrb[16].mxu0 }
 0x70a   : > { %v13670_v38 = vadd.f32 %v4211_v36, %v3809_v29  ;;  %v13672_v39 = vadd.f32 %v4252_v37, %v3850_v30  ;;  %v4213_v40 = vpop.f32.mrb[37].mxu1  ;;  %v4254_v41 = vpop.f32.mrb[17].mxu0 }
 0x70b   : > { %v13674_v42 = vadd.f32 %v4213_v40, %v3811_v13  ;;  %v13676_v43 = vadd.f32 %v4254_v41, %v3852_v31  ;;  %v4215_v44 = vpop.f32.mrb[38].mxu1  ;;  %v4256_v47 = vpop.f32.mrb[18].mxu0 }
 0x70c   : > { %v4216_v49 = vpop.f32.mrb[39].mxu1  ;;  %v4257_v50 = vpop.f32.mrb[19].mxu0 }
 0x711   : > { %v4330_v51 = vpop.f32.mrb[40].mxu1 }
 0x712   : > { %v4332_v52 = vpop.f32.mrb[41].mxu1  ;;  %v4335_v54 = vpack.c.bf16 %v4330_v51, %v4330_v51  ;;  %v11320_v51 = vld [vmem:[%s15251_s12 + $0x224] ss:$16 sps:$4 sm:$0xff]  }
 0x713   : > { %v4336_v53 = vpack.c.bf16 %v4332_v52, %v4332_v52  ;;  %v11318_v52 = vld [vmem:[%s15251_s12 + $0x220] ss:$16 sps:$4 sm:$0xff]  }
 0x715   : > { %4754 = vmatprep.mubr.bf16.mxu1 %v4336_v53  ;;  %4795 = vmatprep.mubr.bf16.mxu0 %v4336_v53  ;;  %v11326_v53 = vld [vmem:[%s15251_s12 + $0x244] ss:$16 sps:$4 sm:$0xff]  }
 0x716   : > { %4755 = vmatmul.mubr.bf16.vlgmr.msra.gmra.mrb[44].mxu1 %v4335_v54  ;;  %4796 = vmatmul.mubr.bf16.vlgmr.msra.gmra.mrb[20].mxu0 %v4335_v54  ;;  %v11324_v54 = vld [vmem:[%s15251_s12 + $0x240] ss:$16 sps:$4 sm:$0xff]  }
 0x717   : > { %4905 = vmatprep.mubr.f32.mxu1 %v12065_v19  ;;  %5483 = vmatpush1.bf16.msra.mxu0 %v11315_v55  ;;  %v11332_v55 = vld [vmem:[%s15251_s12 + $0x264] ss:$16 sps:$4 sm:$0xff]  }
 0x718   : > { %5484 = vmatprep.subr.bf16.mxu0 %v11323_v57  ;;  %v11338_v57 = vld [vmem:[%s15251_s12 + $0x284] ss:$16 sps:$4 sm:$0xff]  }
 0x71b   : > { %5485 = vmatpush1.bf16.msra.mxu0 %v11321_v58  ;;  %v11336_v58 = vld [vmem:[%s15251_s12 + $0x280] ss:$16 sps:$4 sm:$0xff]  }
 0x71c   : > { %5486 = vmatprep.subr.bf16.mxu0 %v11329_v59  ;;  %v11344_v59 = vld [vmem:[%s15251_s12 + $0x2a4] ss:$16 sps:$4 sm:$0xff]  }
 0x71f   : > { %5487 = vmatpush1.bf16.msra.mxu0 %v11327_v60  ;;  %v11342_v60 = vld [vmem:[%s15251_s12 + $0x2a0] ss:$16 sps:$4 sm:$0xff]  }
 0x720   : > { %5488 = vmatprep.subr.bf16.mxu0 %v11335_v61  ;;  %v11350_v61 = vld [vmem:[%s15251_s12 + $0x2c4] ss:$16 sps:$4 sm:$0xff]  }
 0x723   : > { %5489 = vmatpush1.bf16.msra.mxu0 %v11333_v62  ;;  %v11348_v62 = vld [vmem:[%s15251_s12 + $0x2c0] ss:$16 sps:$4 sm:$0xff]  }
 0x724   : > { %5490 = vmatprep.subr.bf16.mxu0 %v11341_v2  ;;  %v11356_v2 = vld [vmem:[%s15251_s12 + $0x2e4] ss:$16 sps:$4 sm:$0xff]  }
 0x727   : > { %5491 = vmatpush1.bf16.msra.mxu0 %v11339_v4  ;;  %v11354_v4 = vld [vmem:[%s15251_s12 + $0x2e0] ss:$16 sps:$4 sm:$0xff]  }
 0x728   : > { %5492 = vmatprep.subr.bf16.mxu0 %v11347_v5  ;;  %v11362_v5 = vld [vmem:[%s15251_s12 + $0x304] ss:$16 sps:$4 sm:$0xff]  }
 0x72b   : > { %5493 = vmatpush1.bf16.msra.mxu0 %v11345_v7  ;;  %v11360_v7 = vld [vmem:[%s15251_s12 + $0x300] ss:$16 sps:$4 sm:$0xff]  }
 0x72c   : > { %5494 = vmatprep.subr.bf16.mxu0 %v11353_v8  ;;  %v11368_v8 = vld [vmem:[%s15251_s12 + $0x324] ss:$16 sps:$4 sm:$0xff]  }
 0x72f   : > { %5495 = vmatpush1.bf16.msra.mxu0 %v11351_v9  ;;  %v11366_v9 = vld [vmem:[%s15251_s12 + $0x320] ss:$16 sps:$4 sm:$0xff]  }
 0x730   : > { %5496 = vmatprep.subr.bf16.mxu0 %v11359_v10  ;;  %v11374_v10 = vld [vmem:[%s15251_s12 + $0x344] ss:$16 sps:$4 sm:$0xff]  }
 0x733   : > { %5497 = vmatpush1.bf16.msra.mxu0 %v11357_v11  ;;  %v11372_v11 = vld [vmem:[%s15251_s12 + $0x340] ss:$16 sps:$4 sm:$0xff]  }
 0x734   : > { %5498 = vmatprep.subr.bf16.mxu0 %v11365_v15  ;;  %v11380_v15 = vld [vmem:[%s15251_s12 + $0x364] ss:$16 sps:$4 sm:$0xff]  }
 0x737   : > { %5499 = vmatpush1.bf16.msra.mxu0 %v11363_v16  ;;  %v11378_v16 = vld [vmem:[%s15251_s12 + $0x360] ss:$16 sps:$4 sm:$0xff]  }
 0x738   : > { %5500 = vmatprep.subr.bf16.mxu0 %v11371_v17  ;;  %v11386_v17 = vld [vmem:[%s15251_s12 + $0x384] ss:$16 sps:$4 sm:$0xff]  }
 0x73b   : > { %5501 = vmatpush1.bf16.msra.mxu0 %v11369_v18  ;;  %v11384_v18 = vld [vmem:[%s15251_s12 + $0x380] ss:$16 sps:$4 sm:$0xff]  }
 0x73c   : > { %5502 = vmatprep.subr.bf16.mxu0 %v11377_v20  ;;  %v11392_v20 = vld [vmem:[%s15251_s12 + $0x3a4] ss:$16 sps:$4 sm:$0xff]  }
 0x73f   : > { %5503 = vmatpush1.bf16.msra.mxu0 %v11375_v21  ;;  %v11390_v21 = vld [vmem:[%s15251_s12 + $0x3a0] ss:$16 sps:$4 sm:$0xff]  }
 0x740   : > { %5504 = vmatprep.subr.bf16.mxu0 %v11383_v45  ;;  %v11398_v45 = vld [vmem:[%s15251_s12 + $0x3c4] ss:$16 sps:$4 sm:$0xff]  }
 0x743   : > { %5505 = vmatpush1.bf16.msra.mxu0 %v11381_v22  ;;  %v11401_v22 = vld [vmem:[%s15251_s12 + $0x3cc] ss:$16 sps:$4 sm:$0xff]  }
 0x744   : > { %5506 = vmatprep.subr.bf16.mxu0 %v11389_v23  ;;  %v11396_v23 = vld [vmem:[%s15251_s12 + $0x3c0] ss:$16 sps:$4 sm:$0xff]  }
 0x747   : > { %5507 = vmatpush1.bf16.msra.mxu0 %v11387_v24  ;;  %v11399_v24 = vld [vmem:[%s15251_s12 + $0x3c8] ss:$16 sps:$4 sm:$0xff]  }
 0x748   : > { %5508 = vmatprep.subr.bf16.mxu0 %v11395_v25  ;;  %v11404_v25 = vld [vmem:[%s15251_s12 + $0x3e4] ss:$16 sps:$4 sm:$0xff]  }
 0x74b   : > { %5509 = vmatpush1.bf16.msra.mxu0 %v11393_v26  ;;  %v11407_v26 = vld [vmem:[%s15251_s12 + $0x3ec] ss:$16 sps:$4 sm:$0xff]  }
 0x74c   : > { %5510 = vmatprep.subr.bf16.mxu0 %v11401_v22  ;;  %v11471_v22 = vld [vmem:[%s15251_s12 + $0x148] ss:$16 sps:$4 sm:$0xff]  }
 0x74f   : > { %5511 = vmatpush1.bf16.msra.mxu0 %v11399_v24  ;;  %v11479_v24 = vld [vmem:[%s15251_s12 + $0x16c] ss:$16 sps:$4 sm:$0xff]  }
 0x750   : > { %5512 = vmatprep.subr.bf16.mxu0 %v11407_v26  ;;  %v11477_v26 = vld [vmem:[%s15251_s12 + $0x168] ss:$16 sps:$4 sm:$0xff]  }
 0x7e9   : > { %v4756_v14 = vpop.f32.mrb[44].mxu1  ;;  %v4797_v63 = vpop.f32.mrb[20].mxu0 }
 0x7ea   : > { %v4804_v29 = vadd.f32 %v4756_v14, %v13670_v38  ;;  %v4806_v30 = vadd.f32 %v4797_v63, %v13672_v39  ;;  %v4758_v13 = vpop.f32.mrb[45].mxu1  ;;  %v4799_v31 = vpop.f32.mrb[21].mxu0  ;;  %v4836_v38 = vld [vmem:[%s15250_s11] sm:$0xff]  ;;  %v11413_v14 = vld [vmem:[%s15251_s12 + $0xc] ss:$16 sps:$4 sm:$0xff]  }
 0x7eb   : > { %v4805_v32 = vadd.f32 %v4758_v13, %v13674_v42  ;;  %v4807_v33 = vadd.f32 %v4799_v31, %v13676_v43  ;;  %v4760_v34 = vpop.f32.mrb[46].mxu1  ;;  %v4801_v35 = vpop.f32.mrb[22].mxu0  ;;  %v11314_v39 = vld [vmem:[%s15251_s12 + $0x204] ss:$16 sps:$4 sm:$0xff]   ;;  %v9727_v42 = vld [vmem:[%s15250_s11 + $0x8] sm:$0xff] }
 0x7ec   : > { %v4830_v36 = vadd.f32 %v4813_v1, %v4804_v29  ;;  %v4832_v37 = vadd.f32 %v4821_v28, %v4806_v30  ;;  %v4761_v40 = vpop.f32.mrb[47].mxu1  ;;  %v4802_v41 = vpop.f32.mrb[23].mxu0  ;;  %v11312_v43 = vld [vmem:[%s15251_s12 + $0x200] ss:$16 sps:$4 sm:$0xff]   ;;  %v11405_v1 = vld [vmem:[%s15251_s12 + $0x3e8] ss:$16 sps:$4 sm:$0xff]  }
 0x7ed   : > { %v4831_v44 = vadd.f32 %v4817_v12, %v4805_v32  ;;  %v4833_v47 = vadd.f32 %v4825_v6, %v4807_v33  ;;  %5513 = vmatpush1.bf16.msra.mxu0 %v11405_v1  ;;  %v11410_v28 = vld [vmem:[%s15251_s12 + $0x4] ss:$16 sps:$4 sm:$0xff]   ;;  %v11408_v13 = vld [vmem:[%s15251_s12] ss:$16 sps:$4 sm:$0xff]   ;;  %v11411_v31 = vld [vmem:[%s15251_s12 + $0x8] ss:$16 sps:$4 sm:$0xff]  }
 0x7ee   : > { %v13774_v49 = vmax.f32 %v4830_v36, %v4832_v37  ;;  %5884 = vmatprep.subr.bf16.mxu0 %v11413_v14  ;;  %v11416_v33 = vld [vmem:[%s15251_s12 + $0x24] ss:$16 sps:$4 sm:$0xff]   ;;  %v11419_v34 = vld [vmem:[%s15251_s12 + $0x2c] ss:$16 sps:$4 sm:$0xff]   ;;  %v11414_v36 = vld [vmem:[%s15251_s12 + $0x20] ss:$16 sps:$4 sm:$0xff]  }
 0x7ef   : > { %v13776_v50 = vmax.f32 %v4831_v44, %v4833_v47  ;;  %v11417_v37 = vld [vmem:[%s15251_s12 + $0x28] ss:$16 sps:$4 sm:$0xff]   ;;  %v11422_v40 = vld [vmem:[%s15251_s12 + $0x44] ss:$16 sps:$4 sm:$0xff]   ;;  %v11425_v41 = vld [vmem:[%s15251_s12 + $0x4c] ss:$16 sps:$4 sm:$0xff]  }
 0x7f0   : > { %v11420_v44 = vld [vmem:[%s15251_s12 + $0x40] ss:$16 sps:$4 sm:$0xff]   ;;  %v11423_v47 = vld [vmem:[%s15251_s12 + $0x48] ss:$16 sps:$4 sm:$0xff]   ;;  %v11485_v1 = vld [vmem:[%s15251_s12 + $0x18c] ss:$16 sps:$4 sm:$0xff]  }
 0x7f1   : > { %4841 = vmatprep.subr.mxu1 %v13776_v50  ;;  %v11483_v14 = vld [vmem:[%s15251_s12 + $0x188] ss:$16 sps:$4 sm:$0xff]  }
 0x7f2   : > { %4842 = vmatpush1.msra.mxu1 %v13774_v49 }
 0x7f3   : > { %9726 = vmatmul.mubr.msk.f32.vlgmr.msra.gmra.mrb[42].mxu1 %vm4837_vm3, %v4836_v38  ;;  %4983 = vmatprep.subr.mxu1 %v13776_v50  ;;  %v11428_v38 = vld [vmem:[%s15251_s12 + $0x64] ss:$16 sps:$4 sm:$0xff]  }
 0x7f4   : > { %4984 = vmatpush1.msra.mxu1 %v13774_v49  ;;  %5047 = vmatprep.mubr.f32.mxu1 %v12065_v19 }
 0x7f5   : > { %5441 = vmatprep.subr.bf16.mxu1 %v11314_v39  ;;  %v11431_v39 = vld [vmem:[%s15251_s12 + $0x6c] ss:$16 sps:$4 sm:$0xff]  }
 0x7f7   : > { %9728 = vmatmul.mubr.msk.f32.vlgmr.msra.gmra.mrb[48].mxu1 %vm4837_vm3, %v9727_v42  ;;  %v11426_v42 = vld [vmem:[%s15251_s12 + $0x60] ss:$16 sps:$4 sm:$0xff]  }
 0x7f8   : > { %5442 = vmatpush1.bf16.msra.mxu1 %v11312_v43  ;;  %v11429_v43 = vld [vmem:[%s15251_s12 + $0x68] ss:$16 sps:$4 sm:$0xff]  }
 0x7f9   : > { %5443 = vmatprep.subr.bf16.mxu1 %v11320_v51  ;;  %v11434_v51 = vld [vmem:[%s15251_s12 + $0x84] ss:$16 sps:$4 sm:$0xff]  }
 0x7fc   : > { %5444 = vmatpush1.bf16.msra.mxu1 %v11318_v52  ;;  %v11437_v52 = vld [vmem:[%s15251_s12 + $0x8c] ss:$16 sps:$4 sm:$0xff]  }
 0x7fd   : > { %5445 = vmatprep.subr.bf16.mxu1 %v11326_v53  ;;  %v11432_v53 = vld [vmem:[%s15251_s12 + $0x80] ss:$16 sps:$4 sm:$0xff]  }
 0x800   : > { %5446 = vmatpush1.bf16.msra.mxu1 %v11324_v54  ;;  %v11435_v54 = vld [vmem:[%s15251_s12 + $0x88] ss:$16 sps:$4 sm:$0xff]  }
 0x801   : > { %5447 = vmatprep.subr.bf16.mxu1 %v11332_v55  ;;  %v11440_v55 = vld [vmem:[%s15251_s12 + $0xa4] ss:$16 sps:$4 sm:$0xff]  }
 0x804   : > { %5448 = vmatpush1.bf16.msra.mxu1 %v11330_v56  ;;  %v11443_v56 = vld [vmem:[%s15251_s12 + $0xac] ss:$16 sps:$4 sm:$0xff]  }
 0x805   : > { %5449 = vmatprep.subr.bf16.mxu1 %v11338_v57  ;;  %v11438_v57 = vld [vmem:[%s15251_s12 + $0xa0] ss:$16 sps:$4 sm:$0xff]  }
 0x808   : > { %5450 = vmatpush1.bf16.msra.mxu1 %v11336_v58  ;;  %v11441_v58 = vld [vmem:[%s15251_s12 + $0xa8] ss:$16 sps:$4 sm:$0xff]  }
 0x809   : > { %5451 = vmatprep.subr.bf16.mxu1 %v11344_v59  ;;  %v11446_v59 = vld [vmem:[%s15251_s12 + $0xc4] ss:$16 sps:$4 sm:$0xff]  }
 0x80c   : > { %5452 = vmatpush1.bf16.msra.mxu1 %v11342_v60  ;;  %v11449_v60 = vld [vmem:[%s15251_s12 + $0xcc] ss:$16 sps:$4 sm:$0xff]  }
 0x80d   : > { %5453 = vmatprep.subr.bf16.mxu1 %v11350_v61  ;;  %v11444_v61 = vld [vmem:[%s15251_s12 + $0xc0] ss:$16 sps:$4 sm:$0xff]  }
 0x810   : > { %5454 = vmatpush1.bf16.msra.mxu1 %v11348_v62  ;;  %v11447_v62 = vld [vmem:[%s15251_s12 + $0xc8] ss:$16 sps:$4 sm:$0xff]  }
 0x811   : > { %5455 = vmatprep.subr.bf16.mxu1 %v11356_v2  ;;  %v11452_v2 = vld [vmem:[%s15251_s12 + $0xe4] ss:$16 sps:$4 sm:$0xff]  }
 0x814   : > { %5456 = vmatpush1.bf16.msra.mxu1 %v11354_v4  ;;  %v11455_v4 = vld [vmem:[%s15251_s12 + $0xec] ss:$16 sps:$4 sm:$0xff]  }
 0x815   : > { %5457 = vmatprep.subr.bf16.mxu1 %v11362_v5  ;;  %v11450_v5 = vld [vmem:[%s15251_s12 + $0xe0] ss:$16 sps:$4 sm:$0xff]  }
 0x818   : > { %5458 = vmatpush1.bf16.msra.mxu1 %v11360_v7  ;;  %v11453_v7 = vld [vmem:[%s15251_s12 + $0xe8] ss:$16 sps:$4 sm:$0xff]  }
 0x819   : > { %5459 = vmatprep.subr.bf16.mxu1 %v11368_v8  ;;  %v11458_v8 = vld [vmem:[%s15251_s12 + $0x104] ss:$16 sps:$4 sm:$0xff]  }
 0x81c   : > { %5460 = vmatpush1.bf16.msra.mxu1 %v11366_v9  ;;  %v11461_v9 = vld [vmem:[%s15251_s12 + $0x10c] ss:$16 sps:$4 sm:$0xff]  }
 0x81d   : > { %5461 = vmatprep.subr.bf16.mxu1 %v11374_v10  ;;  %v11456_v10 = vld [vmem:[%s15251_s12 + $0x100] ss:$16 sps:$4 sm:$0xff]  }
 0x820   : > { %5462 = vmatpush1.bf16.msra.mxu1 %v11372_v11  ;;  %v11459_v11 = vld [vmem:[%s15251_s12 + $0x108] ss:$16 sps:$4 sm:$0xff]  }
 0x821   : > { %5463 = vmatprep.subr.bf16.mxu1 %v11380_v15  ;;  %v11464_v15 = vld [vmem:[%s15251_s12 + $0x124] ss:$16 sps:$4 sm:$0xff]  }
 0x824   : > { %5464 = vmatpush1.bf16.msra.mxu1 %v11378_v16  ;;  %v11467_v16 = vld [vmem:[%s15251_s12 + $0x12c] ss:$16 sps:$4 sm:$0xff]  }
 0x825   : > { %5465 = vmatprep.subr.bf16.mxu1 %v11386_v17  ;;  %v11462_v17 = vld [vmem:[%s15251_s12 + $0x120] ss:$16 sps:$4 sm:$0xff]  }
 0x828   : > { %5466 = vmatpush1.bf16.msra.mxu1 %v11384_v18  ;;  %v11465_v18 = vld [vmem:[%s15251_s12 + $0x128] ss:$16 sps:$4 sm:$0xff]  }
 0x829   : > { %5467 = vmatprep.subr.bf16.mxu1 %v11392_v20  ;;  %v11470_v20 = vld [vmem:[%s15251_s12 + $0x144] ss:$16 sps:$4 sm:$0xff]  }
 0x82c   : > { %5468 = vmatpush1.bf16.msra.mxu1 %v11390_v21  ;;  %v11473_v21 = vld [vmem:[%s15251_s12 + $0x14c] ss:$16 sps:$4 sm:$0xff]  }
 0x82d   : > { %5469 = vmatprep.subr.bf16.mxu1 %v11398_v45  ;;  %v11468_v45 = vld [vmem:[%s15251_s12 + $0x140] ss:$16 sps:$4 sm:$0xff]  }
 0x830   : > { %5470 = vmatpush1.bf16.msra.mxu1 %v11396_v23  ;;  %v11476_v23 = vld [vmem:[%s15251_s12 + $0x164] ss:$16 sps:$4 sm:$0xff]  }
 0x831   : > { %5471 = vmatprep.subr.bf16.mxu1 %v11404_v25  ;;  %v11474_v25 = vld [vmem:[%s15251_s12 + $0x160] ss:$16 sps:$4 sm:$0xff]  }
 0x834   : > { %5472 = vmatpush1.bf16.msra.mxu1 %v11402_v27  ;;  %v11482_v27 = vld [vmem:[%s15251_s12 + $0x184] ss:$16 sps:$4 sm:$0xff]  }
 0x835   : > { %5843 = vmatprep.subr.bf16.mxu1 %v11410_v28  ;;  %v11480_v28 = vld [vmem:[%s15251_s12 + $0x180] ss:$16 sps:$4 sm:$0xff]  }
 0x8c6   : > { %v13905_v63 = vpop.f32.mrb[42].mxu1 }
 0x8c7   : > { %v4909_v12 = vpop.f32.mrb[43].mxu1 }
 0x8c8   : > { %v4913_v35 = vpack.c.bf16 %v4909_v12, %v4909_v12  ;;  %v11488_v12 = vld [vmem:[%s15251_s12 + $0x1a4] ss:$16 sps:$4 sm:$0xff]  }
 0x8ca   : > { %v5049_v6 = vpop.f32.mrb[48].mxu1 }
 0x8cb   : > { %v5051_v29 = vpop.f32.mrb[49].mxu1  ;;  %v5054_v32 = vpack.c.bf16 %v5049_v6, %v5049_v6  ;;  %v11491_v6 = vld [vmem:[%s15251_s12 + $0x1ac] ss:$16 sps:$4 sm:$0xff]  }
 0x8cc   : > { %v5055_v30 = vpack.c.bf16 %v5051_v29, %v5051_v29  ;;  %v11486_v29 = vld [vmem:[%s15251_s12 + $0x1a0] ss:$16 sps:$4 sm:$0xff]  }
 0x8ce   : > { %5473 = vmatprep.mubr.bf16.mxu1 %v5055_v30  ;;  %5514 = vmatprep.mubr.bf16.mxu0 %v5055_v30  ;;  %v11489_v30 = vld [vmem:[%s15251_s12 + $0x1a8] ss:$16 sps:$4 sm:$0xff]  }
 0x8cf   : > { %5474 = vmatmul.mubr.bf16.vlgmr.msra.gmra.mrb[52].mxu1 %v5054_v32  ;;  %5515 = vmatmul.mubr.bf16.vlgmr.msra.gmra.mrb[24].mxu0 %v5054_v32  ;;  %v11492_v32 = vld [vmem:[%s15251_s12 + $0x1c0] ss:$16 sps:$4 sm:$0xff]  }
 0x8d0   : > { %5844 = vmatpush1.bf16.msra.mxu1 %v11408_v13  ;;  %5885 = vmatpush1.bf16.msra.mxu0 %v11411_v31  ;;  %v11494_v13 = vld [vmem:[%s15251_s12 + $0x1c4] ss:$16 sps:$4 sm:$0xff]   ;;  %v11497_v31 = vld [vmem:[%s15251_s12 + $0x1cc] ss:$16 sps:$4 sm:$0xff]  }
 0x8d1   : > { %5875 = vmatprep.mubr.bf16.mxu1 %v4913_v35  ;;  %5916 = vmatprep.mubr.bf16.mxu0 %v4913_v35  ;;  %v11503_v35 = vld [vmem:[%s15251_s12 + $0x1ec] ss:$16 sps:$4 sm:$0xff]  }
 0x8d2   : > { %5845 = vmatprep.subr.bf16.mxu1 %v11416_v33  ;;  %5886 = vmatprep.subr.bf16.mxu0 %v11419_v34  ;;  %v11495_v33 = vld [vmem:[%s15251_s12 + $0x1c8] ss:$16 sps:$4 sm:$0xff]   ;;  %v11500_v34 = vld [vmem:[%s15251_s12 + $0x1e4] ss:$16 sps:$4 sm:$0xff]  }
 0x8d4   : > { %5846 = vmatpush1.bf16.msra.mxu1 %v11414_v36  ;;  %5887 = vmatpush1.bf16.msra.mxu0 %v11417_v37  ;;  %v11498_v36 = vld [vmem:[%s15251_s12 + $0x1e0] ss:$16 sps:$4 sm:$0xff]   ;;  %v11501_v37 = vld [vmem:[%s15251_s12 + $0x1e8] ss:$16 sps:$4 sm:$0xff]  }
 0x8d5   : > { %5847 = vmatprep.subr.bf16.mxu1 %v11422_v40  ;;  %5888 = vmatprep.subr.bf16.mxu0 %v11425_v41  ;;  %v4912_v40 = vpack.c.bf16 %v13905_v63, %v13905_v63  ;;  %v9921_v41 = vld [vmem:[%s15250_s11 + $0x10] sm:$0xff]  ;;  %v11509_v63 = vld [vmem:[%s15251_s12 + $0x40c] ss:$16 sps:$4 sm:$0xff]  }
 0x8d8   : > { %5848 = vmatpush1.bf16.msra.mxu1 %v11420_v44  ;;  %5889 = vmatpush1.bf16.msra.mxu0 %v11423_v47  ;;  %v11504_v44 = vld [vmem:[%s15251_s12 + $0x400] ss:$16 sps:$4 sm:$0xff]   ;;  %v11512_v47 = vld [vmem:[%s15251_s12 + $0x424] ss:$16 sps:$4 sm:$0xff]  }
 0x8d9   : > { %5849 = vmatprep.subr.bf16.mxu1 %v11428_v38  ;;  %5890 = vmatprep.subr.bf16.mxu0 %v11431_v39  ;;  %v11515_v38 = vld [vmem:[%s15251_s12 + $0x42c] ss:$16 sps:$4 sm:$0xff]   ;;  %v11510_v39 = vld [vmem:[%s15251_s12 + $0x420] ss:$16 sps:$4 sm:$0xff]  }
 0x8dc   : > { %5850 = vmatpush1.bf16.msra.mxu1 %v11426_v42  ;;  %5891 = vmatpush1.bf16.msra.mxu0 %v11429_v43  ;;  %v11513_v42 = vld [vmem:[%s15251_s12 + $0x428] ss:$16 sps:$4 sm:$0xff]   ;;  %v11518_v43 = vld [vmem:[%s15251_s12 + $0x444] ss:$16 sps:$4 sm:$0xff]  }
 0x8dd   : > { %5851 = vmatprep.subr.bf16.mxu1 %v11434_v51  ;;  %5892 = vmatprep.subr.bf16.mxu0 %v11437_v52  ;;  %v11521_v51 = vld [vmem:[%s15251_s12 + $0x44c] ss:$16 sps:$4 sm:$0xff]   ;;  %v11516_v52 = vld [vmem:[%s15251_s12 + $0x440] ss:$16 sps:$4 sm:$0xff]  }
 0x8e0   : > { %5852 = vmatpush1.bf16.msra.mxu1 %v11432_v53  ;;  %5893 = vmatpush1.bf16.msra.mxu0 %v11435_v54  ;;  %v11519_v53 = vld [vmem:[%s15251_s12 + $0x448] ss:$16 sps:$4 sm:$0xff]   ;;  %v11524_v54 = vld [vmem:[%s15251_s12 + $0x464] ss:$16 sps:$4 sm:$0xff]  }
 0x8e1   : > { %5853 = vmatprep.subr.bf16.mxu1 %v11440_v55  ;;  %5894 = vmatprep.subr.bf16.mxu0 %v11443_v56  ;;  %v11527_v55 = vld [vmem:[%s15251_s12 + $0x46c] ss:$16 sps:$4 sm:$0xff]   ;;  %v11522_v56 = vld [vmem:[%s15251_s12 + $0x460] ss:$16 sps:$4 sm:$0xff]  }
 0x8e4   : > { %5854 = vmatpush1.bf16.msra.mxu1 %v11438_v57  ;;  %5895 = vmatpush1.bf16.msra.mxu0 %v11441_v58  ;;  %v11525_v57 = vld [vmem:[%s15251_s12 + $0x468] ss:$16 sps:$4 sm:$0xff]   ;;  %v11530_v58 = vld [vmem:[%s15251_s12 + $0x484] ss:$16 sps:$4 sm:$0xff]  }
 0x8e5   : > { %5855 = vmatprep.subr.bf16.mxu1 %v11446_v59  ;;  %5896 = vmatprep.subr.bf16.mxu0 %v11449_v60  ;;  %v11533_v59 = vld [vmem:[%s15251_s12 + $0x48c] ss:$16 sps:$4 sm:$0xff]   ;;  %v11528_v60 = vld [vmem:[%s15251_s12 + $0x480] ss:$16 sps:$4 sm:$0xff]  }
 0x8e8   : > { %5856 = vmatpush1.bf16.msra.mxu1 %v11444_v61  ;;  %5897 = vmatpush1.bf16.msra.mxu0 %v11447_v62  ;;  %v11531_v61 = vld [vmem:[%s15251_s12 + $0x488] ss:$16 sps:$4 sm:$0xff]   ;;  %v11536_v62 = vld [vmem:[%s15251_s12 + $0x4a4] ss:$16 sps:$4 sm:$0xff]  }
 0x8e9   : > { %5857 = vmatprep.subr.bf16.mxu1 %v11452_v2  ;;  %5898 = vmatprep.subr.bf16.mxu0 %v11455_v4  ;;  %v11539_v2 = vld [vmem:[%s15251_s12 + $0x4ac] ss:$16 sps:$4 sm:$0xff]   ;;  %v11534_v4 = vld [vmem:[%s15251_s12 + $0x4a0] ss:$16 sps:$4 sm:$0xff]  }
 0x8ec   : > { %5858 = vmatpush1.bf16.msra.mxu1 %v11450_v5  ;;  %5899 = vmatpush1.bf16.msra.mxu0 %v11453_v7  ;;  %v11537_v5 = vld [vmem:[%s15251_s12 + $0x4a8] ss:$16 sps:$4 sm:$0xff]   ;;  %v11542_v7 = vld [vmem:[%s15251_s12 + $0x4c4] ss:$16 sps:$4 sm:$0xff]  }
 0x8ed   : > { %5859 = vmatprep.subr.bf16.mxu1 %v11458_v8  ;;  %5900 = vmatprep.subr.bf16.mxu0 %v11461_v9  ;;  %v11545_v8 = vld [vmem:[%s15251_s12 + $0x4cc] ss:$16 sps:$4 sm:$0xff]   ;;  %v11540_v9 = vld [vmem:[%s15251_s12 + $0x4c0] ss:$16 sps:$4 sm:$0xff]  }
 0x8f0   : > { %5860 = vmatpush1.bf16.msra.mxu1 %v11456_v10  ;;  %5901 = vmatpush1.bf16.msra.mxu0 %v11459_v11  ;;  %v11543_v10 = vld [vmem:[%s15251_s12 + $0x4c8] ss:$16 sps:$4 sm:$0xff]   ;;  %v11548_v11 = vld [vmem:[%s15251_s12 + $0x4e4] ss:$16 sps:$4 sm:$0xff]  }
 0x8f1   : > { %5861 = vmatprep.subr.bf16.mxu1 %v11464_v15  ;;  %5902 = vmatprep.subr.bf16.mxu0 %v11467_v16  ;;  %v11551_v15 = vld [vmem:[%s15251_s12 + $0x4ec] ss:$16 sps:$4 sm:$0xff]   ;;  %v11546_v16 = vld [vmem:[%s15251_s12 + $0x4e0] ss:$16 sps:$4 sm:$0xff]  }
 0x8f4   : > { %5862 = vmatpush1.bf16.msra.mxu1 %v11462_v17  ;;  %5903 = vmatpush1.bf16.msra.mxu0 %v11465_v18  ;;  %v11549_v17 = vld [vmem:[%s15251_s12 + $0x4e8] ss:$16 sps:$4 sm:$0xff]   ;;  %v11554_v18 = vld [vmem:[%s15251_s12 + $0x504] ss:$16 sps:$4 sm:$0xff]  }
 0x8f5   : > { %5863 = vmatprep.subr.bf16.mxu1 %v11470_v20  ;;  %5904 = vmatprep.subr.bf16.mxu0 %v11473_v21  ;;  %v11557_v20 = vld [vmem:[%s15251_s12 + $0x50c] ss:$16 sps:$4 sm:$0xff]   ;;  %v11552_v21 = vld [vmem:[%s15251_s12 + $0x500] ss:$16 sps:$4 sm:$0xff]  }
 0x8f8   : > { %5864 = vmatpush1.bf16.msra.mxu1 %v11468_v45  ;;  %5905 = vmatpush1.bf16.msra.mxu0 %v11471_v22  ;;  %v11555_v45 = vld [vmem:[%s15251_s12 + $0x508] ss:$16 sps:$4 sm:$0xff]   ;;  %v11560_v22 = vld [vmem:[%s15251_s12 + $0x524] ss:$16 sps:$4 sm:$0xff]  }
 0x8f9   : > { %5865 = vmatprep.subr.bf16.mxu1 %v11476_v23  ;;  %5906 = vmatprep.subr.bf16.mxu0 %v11479_v24  ;;  %v11563_v23 = vld [vmem:[%s15251_s12 + $0x52c] ss:$16 sps:$4 sm:$0xff]   ;;  %v11558_v24 = vld [vmem:[%s15251_s12 + $0x520] ss:$16 sps:$4 sm:$0xff]  }
 0x8fc   : > { %5866 = vmatpush1.bf16.msra.mxu1 %v11474_v25  ;;  %5907 = vmatpush1.bf16.msra.mxu0 %v11477_v26  ;;  %v11561_v25 = vld [vmem:[%s15251_s12 + $0x528] ss:$16 sps:$4 sm:$0xff]   ;;  %v11566_v26 = vld [vmem:[%s15251_s12 + $0x544] ss:$16 sps:$4 sm:$0xff]  }
 0x8fd   : > { %5867 = vmatprep.subr.bf16.mxu1 %v11482_v27  ;;  %5908 = vmatprep.subr.bf16.mxu0 %v11485_v1  ;;  %v11569_v27 = vld [vmem:[%s15251_s12 + $0x54c] ss:$16 sps:$4 sm:$0xff]   ;;  %v11564_v1 = vld [vmem:[%s15251_s12 + $0x540] ss:$16 sps:$4 sm:$0xff]  }
 0x900   : > { %5868 = vmatpush1.bf16.msra.mxu1 %v11480_v28  ;;  %5909 = vmatpush1.bf16.msra.mxu0 %v11483_v14  ;;  %v11567_v28 = vld [vmem:[%s15251_s12 + $0x548] ss:$16 sps:$4 sm:$0xff]   ;;  %v11572_v14 = vld [vmem:[%s15251_s12 + $0x564] ss:$16 sps:$4 sm:$0xff]  }
 0x901   : > { %5869 = vmatprep.subr.bf16.mxu1 %v11488_v12  ;;  %5910 = vmatprep.subr.bf16.mxu0 %v11491_v6  ;;  %v11575_v12 = vld [vmem:[%s15251_s12 + $0x56c] ss:$16 sps:$4 sm:$0xff]   ;;  %v11570_v6 = vld [vmem:[%s15251_s12 + $0x560] ss:$16 sps:$4 sm:$0xff]  }
 0x904   : > { %5870 = vmatpush1.bf16.msra.mxu1 %v11486_v29  ;;  %5911 = vmatpush1.bf16.msra.mxu0 %v11489_v30  ;;  %v11573_v29 = vld [vmem:[%s15251_s12 + $0x568] ss:$16 sps:$4 sm:$0xff]   ;;  %v11578_v30 = vld [vmem:[%s15251_s12 + $0x584] ss:$16 sps:$4 sm:$0xff]  }
 0x905   : > { %5871 = vmatprep.subr.bf16.mxu1 %v11494_v13  ;;  %5912 = vmatprep.subr.bf16.mxu0 %v11497_v31  ;;  %v11581_v13 = vld [vmem:[%s15251_s12 + $0x58c] ss:$16 sps:$4 sm:$0xff]   ;;  %v11576_v31 = vld [vmem:[%s15251_s12 + $0x580] ss:$16 sps:$4 sm:$0xff]  }
 0x908   : > { %5872 = vmatpush1.bf16.msra.mxu1 %v11492_v32  ;;  %5913 = vmatpush1.bf16.msra.mxu0 %v11495_v33  ;;  %v11579_v32 = vld [vmem:[%s15251_s12 + $0x588] ss:$16 sps:$4 sm:$0xff]   ;;  %v11584_v33 = vld [vmem:[%s15251_s12 + $0x5a4] ss:$16 sps:$4 sm:$0xff]  }
 0x909   : > { %5873 = vmatprep.subr.bf16.mxu1 %v11500_v34  ;;  %5914 = vmatprep.subr.bf16.mxu0 %v11503_v35  ;;  %v11587_v34 = vld [vmem:[%s15251_s12 + $0x5ac] ss:$16 sps:$4 sm:$0xff]   ;;  %v11582_v35 = vld [vmem:[%s15251_s12 + $0x5a0] ss:$16 sps:$4 sm:$0xff]  }
 0x90c   : > { %5874 = vmatpush1.bf16.msra.mxu1 %v11498_v36  ;;  %5915 = vmatpush1.bf16.msra.mxu0 %v11501_v37  ;;  %v11585_v36 = vld [vmem:[%s15251_s12 + $0x5a8] ss:$16 sps:$4 sm:$0xff]   ;;  %v11588_v37 = vld [vmem:[%s15251_s12 + $0x5c0] ss:$16 sps:$4 sm:$0xff]  }
 0x90d   : > { %5930 = vmatprep.subr.mxu1 %v13776_v50  ;;  %v11506_v50 = vld [vmem:[%s15251_s12 + $0x404] ss:$16 sps:$4 sm:$0xff]  }
 0x90e   : > { %6388 = vmatprep.subr.bf16.mxu0 %v11506_v50  ;;  %v11596_v50 = vld [vmem:[%s15251_s12 + $0x5e4] ss:$16 sps:$4 sm:$0xff]  }
 0x90f   : > { %5876 = vmatmul.mubr.bf16.vlgmr.msra.gmra.mrb[56].mxu1 %v4912_v40  ;;  %5917 = vmatmul.mubr.bf16.vlgmr.msra.gmra.mrb[28].mxu0 %v4912_v40  ;;  %v11590_v40 = vld [vmem:[%s15251_s12 + $0x5c4] ss:$16 sps:$4 sm:$0xff]  }
 0x910   : > { %5931 = vmatpush1.msra.mxu1 %v13774_v49  ;;  %5994 = vmatprep.mubr.f32.mxu1 %v12065_v19  ;;  %v11507_v49 = vld [vmem:[%s15251_s12 + $0x408] ss:$16 sps:$4 sm:$0xff]  }
 0x911   : > { %6429 = vmatprep.subr.bf16.mxu1 %v11509_v63  ;;  %6389 = vmatpush1.bf16.msra.mxu0 %v11504_v44  ;;  %v11593_v44 = vld [vmem:[%s15251_s12 + $0x5cc] ss:$16 sps:$4 sm:$0xff]   ;;  %v11594_v63 = vld [vmem:[%s15251_s12 + $0x5e0] ss:$16 sps:$4 sm:$0xff]  }
 0x912   : > { %6390 = vmatprep.subr.bf16.mxu0 %v11512_v47  ;;  %v11597_v47 = vld [vmem:[%s15251_s12 + $0x5e8] ss:$16 sps:$4 sm:$0xff]  }
 0x915   : > { %6391 = vmatpush1.bf16.msra.mxu0 %v11510_v39 }
 0x916   : > { %6392 = vmatprep.subr.bf16.mxu0 %v11518_v43 }
 0x917   : > { %9922 = vmatmul.mubr.msk.f32.vlgmr.msra.gmra.mrb[50].mxu1 %vm4837_vm3, %v9921_v41  ;;  %v11591_v41 = vld [vmem:[%s15251_s12 + $0x5c8] ss:$16 sps:$4 sm:$0xff]  }
 0x918   : > { %6430 = vmatpush1.bf16.msra.mxu1 %v11507_v49  ;;  %v11599_v49 = vld [vmem:[%s15251_s12 + $0x5ec] ss:$16 sps:$4 sm:$0xff]  }
 0x919   : > { %6431 = vmatprep.subr.bf16.mxu1 %v11515_v38  ;;  %6393 = vmatpush1.bf16.msra.mxu0 %v11516_v52 }
 0x91a   : > { %6394 = vmatprep.subr.bf16.mxu0 %v11524_v54 }
 0x91c   : > { %6432 = vmatpush1.bf16.msra.mxu1 %v11513_v42 }
 0x91d   : > { %6433 = vmatprep.subr.bf16.mxu1 %v11521_v51  ;;  %6395 = vmatpush1.bf16.msra.mxu0 %v11522_v56 }
 0x91e   : > { %6396 = vmatprep.subr.bf16.mxu0 %v11530_v58 }
 0x920   : > { %6434 = vmatpush1.bf16.msra.mxu1 %v11519_v53 }
 0x921   : > { %6435 = vmatprep.subr.bf16.mxu1 %v11527_v55  ;;  %6397 = vmatpush1.bf16.msra.mxu0 %v11528_v60 }
 0x922   : > { %6398 = vmatprep.subr.bf16.mxu0 %v11536_v62 }
 0x924   : > { %6436 = vmatpush1.bf16.msra.mxu1 %v11525_v57 }
 0x925   : > { %6437 = vmatprep.subr.bf16.mxu1 %v11533_v59  ;;  %6399 = vmatpush1.bf16.msra.mxu0 %v11534_v4 }
 0x926   : > { %6400 = vmatprep.subr.bf16.mxu0 %v11542_v7 }
 0x928   : > { %6438 = vmatpush1.bf16.msra.mxu1 %v11531_v61 }
 0x929   : > { %6439 = vmatprep.subr.bf16.mxu1 %v11539_v2  ;;  %6401 = vmatpush1.bf16.msra.mxu0 %v11540_v9 }
 0x92a   : > { %6402 = vmatprep.subr.bf16.mxu0 %v11548_v11 }
 0x92c   : > { %6440 = vmatpush1.bf16.msra.mxu1 %v11537_v5 }
 0x92d   : > { %6441 = vmatprep.subr.bf16.mxu1 %v11545_v8  ;;  %6403 = vmatpush1.bf16.msra.mxu0 %v11546_v16  ;;  %v11602_v16 = vld [vmem:[%s15254_s15 + $0x204] ss:$16 sps:$4 sm:$0xff]  }
 0x92e   : > { %6404 = vmatprep.subr.bf16.mxu0 %v11554_v18  ;;  %v11606_v18 = vld [vmem:[%s15254_s15 + $0x220] ss:$16 sps:$4 sm:$0xff]  }
 0x930   : > { %6442 = vmatpush1.bf16.msra.mxu1 %v11543_v10 }
 0x931   : > { %6443 = vmatprep.subr.bf16.mxu1 %v11551_v15  ;;  %6405 = vmatpush1.bf16.msra.mxu0 %v11552_v21  ;;  %v11600_v15 = vld [vmem:[%s15254_s15 + $0x200] ss:$16 sps:$4 sm:$0xff]  }
 0x932   : > { %6406 = vmatprep.subr.bf16.mxu0 %v11560_v22  ;;  %v11612_v21 = vld [vmem:[%s15254_s15 + $0x240] ss:$16 sps:$4 sm:$0xff]  }
 0x933   : > { %v11618_v22 = vld [vmem:[%s15254_s15 + $0x260] ss:$16 sps:$4 sm:$0xff]  }
 0x934   : > { %6444 = vmatpush1.bf16.msra.mxu1 %v11549_v17  ;;  %v11608_v17 = vld [vmem:[%s15254_s15 + $0x224] ss:$16 sps:$4 sm:$0xff]  }
 0x935   : > { %6445 = vmatprep.subr.bf16.mxu1 %v11557_v20  ;;  %6407 = vmatpush1.bf16.msra.mxu0 %v11558_v24  ;;  %v11614_v20 = vld [vmem:[%s15254_s15 + $0x244] ss:$16 sps:$4 sm:$0xff]   ;;  %v11624_v24 = vld [vmem:[%s15254_s15 + $0x280] ss:$16 sps:$4 sm:$0xff]  }
 0x936   : > { %6408 = vmatprep.subr.bf16.mxu0 %v11566_v26  ;;  %v11630_v26 = vld [vmem:[%s15254_s15 + $0x2a0] ss:$16 sps:$4 sm:$0xff]  }
 0x938   : > { %6446 = vmatpush1.bf16.msra.mxu1 %v11555_v45  ;;  %v11620_v45 = vld [vmem:[%s15254_s15 + $0x264] ss:$16 sps:$4 sm:$0xff]  }
 0x939   : > { %6447 = vmatprep.subr.bf16.mxu1 %v11563_v23  ;;  %6409 = vmatpush1.bf16.msra.mxu0 %v11564_v1  ;;  %v11626_v23 = vld [vmem:[%s15254_s15 + $0x284] ss:$16 sps:$4 sm:$0xff]   ;;  %v11636_v1 = vld [vmem:[%s15254_s15 + $0x2c0] ss:$16 sps:$4 sm:$0xff]  }
 0x93a   : > { %6410 = vmatprep.subr.bf16.mxu0 %v11572_v14  ;;  %v11642_v14 = vld [vmem:[%s15254_s15 + $0x2e0] ss:$16 sps:$4 sm:$0xff]  }
 0x93c   : > { %6448 = vmatpush1.bf16.msra.mxu1 %v11561_v25  ;;  %v11632_v25 = vld [vmem:[%s15254_s15 + $0x2a4] ss:$16 sps:$4 sm:$0xff]  }
 0x93d   : > { %6449 = vmatprep.subr.bf16.mxu1 %v11569_v27  ;;  %6411 = vmatpush1.bf16.msra.mxu0 %v11570_v6  ;;  %v11638_v27 = vld [vmem:[%s15254_s15 + $0x2c4] ss:$16 sps:$4 sm:$0xff]   ;;  %v11648_v6 = vld [vmem:[%s15254_s15 + $0x300] ss:$16 sps:$4 sm:$0xff]  }
 0x93e   : > { %6412 = vmatprep.subr.bf16.mxu0 %v11578_v30  ;;  %v11654_v30 = vld [vmem:[%s15254_s15 + $0x320] ss:$16 sps:$4 sm:$0xff]  }
 0x940   : > { %6450 = vmatpush1.bf16.msra.mxu1 %v11567_v28  ;;  %v11644_v28 = vld [vmem:[%s15254_s15 + $0x2e4] ss:$16 sps:$4 sm:$0xff]  }
 0x941   : > { %6451 = vmatprep.subr.bf16.mxu1 %v11575_v12  ;;  %6413 = vmatpush1.bf16.msra.mxu0 %v11576_v31  ;;  %v11650_v12 = vld [vmem:[%s15254_s15 + $0x304] ss:$16 sps:$4 sm:$0xff]   ;;  %v11660_v31 = vld [vmem:[%s15254_s15 + $0x340] ss:$16 sps:$4 sm:$0xff]  }
 0x942   : > { %6414 = vmatprep.subr.bf16.mxu0 %v11584_v33  ;;  %v11666_v33 = vld [vmem:[%s15254_s15 + $0x360] ss:$16 sps:$4 sm:$0xff]  }
 0x944   : > { %6452 = vmatpush1.bf16.msra.mxu1 %v11573_v29  ;;  %v11656_v29 = vld [vmem:[%s15254_s15 + $0x324] ss:$16 sps:$4 sm:$0xff]  }
 0x945   : > { %6453 = vmatprep.subr.bf16.mxu1 %v11581_v13  ;;  %6415 = vmatpush1.bf16.msra.mxu0 %v11582_v35  ;;  %v11662_v13 = vld [vmem:[%s15254_s15 + $0x344] ss:$16 sps:$4 sm:$0xff]   ;;  %v11672_v35 = vld [vmem:[%s15254_s15 + $0x380] ss:$16 sps:$4 sm:$0xff]  }
 0x946   : > { %6416 = vmatprep.subr.bf16.mxu0 %v11590_v40  ;;  %v6474_v40 = vld [vmem:[%s15252_s13] sm:$0xf] }
 0x948   : > { %6454 = vmatpush1.bf16.msra.mxu1 %v11579_v32  ;;  %v11668_v32 = vld [vmem:[%s15254_s15 + $0x364] ss:$16 sps:$4 sm:$0xff]  }
 0x949   : > { %6455 = vmatprep.subr.bf16.mxu1 %v11587_v34  ;;  %6417 = vmatpush1.bf16.msra.mxu0 %v11588_v37  ;;  %v11674_v34 = vld [vmem:[%s15254_s15 + $0x384] ss:$16 sps:$4 sm:$0xff]   ;;  %v11678_v37 = vld [vmem:[%s15254_s15 + $0x3a0] ss:$16 sps:$4 sm:$0xff]  }
 0x94a   : > { %6418 = vmatprep.subr.bf16.mxu0 %v11596_v50 }
 0x94c   : > { %6456 = vmatpush1.bf16.msra.mxu1 %v11585_v36  ;;  %v11680_v36 = vld [vmem:[%s15254_s15 + $0x3a4] ss:$16 sps:$4 sm:$0xff]  }
 0x94d   : > { %6457 = vmatprep.subr.bf16.mxu1 %v11593_v44  ;;  %6419 = vmatpush1.bf16.msra.mxu0 %v11594_v63  ;;  %v6487_v44 = vrot.slane %v6474_v40, %v13138_v0  ;;  %v6483_v63 = vrot.slane %v6474_v40, %v12491_v48 }
 0x94e   : > { %7106 = vmatprep.subr.bf16.mxu0 %v11602_v16  ;;  %v11621_v16 = vld [vmem:[%s15254_s15 + $0x268] ss:$16 sps:$4 sm:$0xff]  }
 0x950   : > { %6458 = vmatpush1.bf16.msra.mxu1 %v11591_v41  ;;  %v6479_v41 = vrot.slane %v6474_v40, %v12485_v46 }
 0x951   : > { %6459 = vmatprep.subr.bf16.mxu1 %v11599_v49 }
 0x954   : > { %6460 = vmatpush1.bf16.msra.mxu1 %v11597_v47  ;;  %v6491_v47 = vrot.slane %v6474_v40, %v13144_v3  ;;  %v11690_v40 = vld [vmem:[%s15254_s15 + $0x3e0] ss:$16 sps:$4 sm:$0xff]  }
 0x9a2   : > { %v5475_v38 = vpop.f32.mrb[52].mxu1  ;;  %v5516_v39 = vpop.f32.mrb[24].mxu0 }
 0x9a3   : > { %v5477_v42 = vpop.f32.mrb[53].mxu1  ;;  %v5518_v43 = vpop.f32.mrb[25].mxu0 }
 0x9a4   : > { %v5479_v51 = vpop.f32.mrb[54].mxu1  ;;  %v5520_v52 = vpop.f32.mrb[26].mxu0 }
 0x9a5   : > { %v5480_v53 = vpop.f32.mrb[55].mxu1  ;;  %v5521_v54 = vpop.f32.mrb[27].mxu0 }
 0x9e2   : > { %v5877_v55 = vpop.f32.mrb[56].mxu1  ;;  %v5918_v56 = vpop.f32.mrb[28].mxu0 }
 0x9e3   : > { %v14294_v57 = vadd.f32 %v5877_v55, %v5475_v38  ;;  %v14296_v58 = vadd.f32 %v5918_v56, %v5516_v39  ;;  %v5879_v59 = vpop.f32.mrb[57].mxu1  ;;  %v5920_v60 = vpop.f32.mrb[29].mxu0 }
 0x9e4   : > { %v14298_v61 = vadd.f32 %v5879_v59, %v5477_v42  ;;  %v14300_v62 = vadd.f32 %v5920_v60, %v5518_v43  ;;  %v5881_v2 = vpop.f32.mrb[58].mxu1  ;;  %v5922_v4 = vpop.f32.mrb[30].mxu0 }
 0x9e5   : > { %v5882_v5 = vpop.f32.mrb[59].mxu1  ;;  %v5923_v7 = vpop.f32.mrb[31].mxu0 }
 0x9ea   : > { %v5996_v8 = vpop.f32.mrb[50].mxu1 }
 0x9eb   : > { %v5998_v9 = vpop.f32.mrb[51].mxu1  ;;  %v6001_v11 = vpack.c.bf16 %v5996_v8, %v5996_v8  ;;  %v11611_v8 = vld [vmem:[%s15254_s15 + $0x22c] ss:$16 sps:$4 sm:$0xff]  }
 0x9ec   : > { %v6002_v10 = vpack.c.bf16 %v5998_v9, %v5998_v9  ;;  %v11609_v9 = vld [vmem:[%s15254_s15 + $0x228] ss:$16 sps:$4 sm:$0xff]  }
 0x9ee   : > { %6420 = vmatprep.mubr.bf16.mxu0 %v6002_v10  ;;  %6461 = vmatprep.mubr.bf16.mxu1 %v6002_v10  ;;  %v11617_v10 = vld [vmem:[%s15254_s15 + $0x24c] ss:$16 sps:$4 sm:$0xff]  }
 0x9ef   : > { %6421 = vmatmul.mubr.bf16.vlgmr.msra.gmra.mrb[32].mxu0 %v6001_v11  ;;  %6462 = vmatmul.mubr.bf16.vlgmr.msra.gmra.mrb[60].mxu1 %v6001_v11  ;;  %v11615_v11 = vld [vmem:[%s15254_s15 + $0x248] ss:$16 sps:$4 sm:$0xff]  }
 0x9f0   : > { %6570 = vmatprep.mubr.f32.mxu1 %v12065_v19  ;;  %7107 = vmatpush1.bf16.msra.mxu0 %v11600_v15  ;;  %v11623_v15 = vld [vmem:[%s15254_s15 + $0x26c] ss:$16 sps:$4 sm:$0xff]  }
 0x9f1   : > { %7108 = vmatprep.subr.bf16.mxu0 %v11608_v17  ;;  %v11629_v17 = vld [vmem:[%s15254_s15 + $0x28c] ss:$16 sps:$4 sm:$0xff]  }
 0x9f4   : > { %7109 = vmatpush1.bf16.msra.mxu0 %v11606_v18  ;;  %v11627_v18 = vld [vmem:[%s15254_s15 + $0x288] ss:$16 sps:$4 sm:$0xff]  }
 0x9f5   : > { %7110 = vmatprep.subr.bf16.mxu0 %v11614_v20  ;;  %v11635_v20 = vld [vmem:[%s15254_s15 + $0x2ac] ss:$16 sps:$4 sm:$0xff]  }
 0x9f8   : > { %7111 = vmatpush1.bf16.msra.mxu0 %v11612_v21  ;;  %v11633_v21 = vld [vmem:[%s15254_s15 + $0x2a8] ss:$16 sps:$4 sm:$0xff]  }
 0x9f9   : > { %7112 = vmatprep.subr.bf16.mxu0 %v11620_v45  ;;  %v11641_v45 = vld [vmem:[%s15254_s15 + $0x2cc] ss:$16 sps:$4 sm:$0xff]  }
 0x9fc   : > { %7113 = vmatpush1.bf16.msra.mxu0 %v11618_v22  ;;  %v11639_v22 = vld [vmem:[%s15254_s15 + $0x2c8] ss:$16 sps:$4 sm:$0xff]  }
 0x9fd   : > { %7114 = vmatprep.subr.bf16.mxu0 %v11626_v23  ;;  %v11647_v23 = vld [vmem:[%s15254_s15 + $0x2ec] ss:$16 sps:$4 sm:$0xff]  }
 0xa00   : > { %7115 = vmatpush1.bf16.msra.mxu0 %v11624_v24  ;;  %v11645_v24 = vld [vmem:[%s15254_s15 + $0x2e8] ss:$16 sps:$4 sm:$0xff]  }
 0xa01   : > { %7116 = vmatprep.subr.bf16.mxu0 %v11632_v25  ;;  %v11653_v25 = vld [vmem:[%s15254_s15 + $0x30c] ss:$16 sps:$4 sm:$0xff]  }
 0xa04   : > { %7117 = vmatpush1.bf16.msra.mxu0 %v11630_v26  ;;  %v11651_v26 = vld [vmem:[%s15254_s15 + $0x308] ss:$16 sps:$4 sm:$0xff]  }
 0xa05   : > { %7118 = vmatprep.subr.bf16.mxu0 %v11638_v27  ;;  %v11659_v27 = vld [vmem:[%s15254_s15 + $0x32c] ss:$16 sps:$4 sm:$0xff]  }
 0xa08   : > { %7119 = vmatpush1.bf16.msra.mxu0 %v11636_v1  ;;  %v11657_v1 = vld [vmem:[%s15254_s15 + $0x328] ss:$16 sps:$4 sm:$0xff]  }
 0xa09   : > { %7120 = vmatprep.subr.bf16.mxu0 %v11644_v28  ;;  %v11665_v28 = vld [vmem:[%s15254_s15 + $0x34c] ss:$16 sps:$4 sm:$0xff]  }
 0xa0c   : > { %7121 = vmatpush1.bf16.msra.mxu0 %v11642_v14  ;;  %v11663_v14 = vld [vmem:[%s15254_s15 + $0x348] ss:$16 sps:$4 sm:$0xff]  }
 0xa0d   : > { %7122 = vmatprep.subr.bf16.mxu0 %v11650_v12  ;;  %v11671_v12 = vld [vmem:[%s15254_s15 + $0x36c] ss:$16 sps:$4 sm:$0xff]  }
 0xa10   : > { %7123 = vmatpush1.bf16.msra.mxu0 %v11648_v6  ;;  %v11669_v6 = vld [vmem:[%s15254_s15 + $0x368] ss:$16 sps:$4 sm:$0xff]  }
 0xa11   : > { %7124 = vmatprep.subr.bf16.mxu0 %v11656_v29  ;;  %v11677_v29 = vld [vmem:[%s15254_s15 + $0x38c] ss:$16 sps:$4 sm:$0xff]  }
 0xa14   : > { %7125 = vmatpush1.bf16.msra.mxu0 %v11654_v30  ;;  %v11675_v30 = vld [vmem:[%s15254_s15 + $0x388] ss:$16 sps:$4 sm:$0xff]  }
 0xa15   : > { %7126 = vmatprep.subr.bf16.mxu0 %v11662_v13  ;;  %v11683_v13 = vld [vmem:[%s15254_s15 + $0x3ac] ss:$16 sps:$4 sm:$0xff]  }
 0xa18   : > { %7127 = vmatpush1.bf16.msra.mxu0 %v11660_v31  ;;  %v11681_v31 = vld [vmem:[%s15254_s15 + $0x3a8] ss:$16 sps:$4 sm:$0xff]  }
 0xa19   : > { %7128 = vmatprep.subr.bf16.mxu0 %v11668_v32  ;;  %v11686_v32 = vld [vmem:[%s15254_s15 + $0x3c4] ss:$16 sps:$4 sm:$0xff]  }
 0xa1c   : > { %7129 = vmatpush1.bf16.msra.mxu0 %v11666_v33  ;;  %v11689_v33 = vld [vmem:[%s15254_s15 + $0x3cc] ss:$16 sps:$4 sm:$0xff]  }
 0xa1d   : > { %7130 = vmatprep.subr.bf16.mxu0 %v11674_v34  ;;  %v11684_v34 = vld [vmem:[%s15254_s15 + $0x3c0] ss:$16 sps:$4 sm:$0xff]  }
 0xa20   : > { %7131 = vmatpush1.bf16.msra.mxu0 %v11672_v35  ;;  %v11687_v35 = vld [vmem:[%s15254_s15 + $0x3c8] ss:$16 sps:$4 sm:$0xff]  }
 0xa21   : > { %7132 = vmatprep.subr.bf16.mxu0 %v11680_v36  ;;  %v11692_v36 = vld [vmem:[%s15254_s15 + $0x3e4] ss:$16 sps:$4 sm:$0xff]  }
 0xa24   : > { %7133 = vmatpush1.bf16.msra.mxu0 %v11678_v37  ;;  %v11695_v37 = vld [vmem:[%s15254_s15 + $0x3ec] ss:$16 sps:$4 sm:$0xff]  }
 0xa25   : > { %7134 = vmatprep.subr.bf16.mxu0 %v11686_v32  ;;  %v11756_v32 = vld [vmem:[%s15254_s15 + $0x140] ss:$16 sps:$4 sm:$0xff]  }
 0xa28   : > { %7135 = vmatpush1.bf16.msra.mxu0 %v11684_v34  ;;  %v11764_v34 = vld [vmem:[%s15254_s15 + $0x164] ss:$16 sps:$4 sm:$0xff]  }
 0xa29   : > { %7136 = vmatprep.subr.bf16.mxu0 %v11692_v36  ;;  %v11762_v36 = vld [vmem:[%s15254_s15 + $0x160] ss:$16 sps:$4 sm:$0xff]  }
 0xa2c   : > { %7137 = vmatpush1.bf16.msra.mxu0 %v11690_v40  ;;  %v11770_v40 = vld [vmem:[%s15254_s15 + $0x184] ss:$16 sps:$4 sm:$0xff]  }
 0xac2   : > { %v6422_v50 = vpop.f32.mrb[32].mxu0  ;;  %v6463_v49 = vpop.f32.mrb[60].mxu1 }
 0xac3   : > { %v6470_v38 = vadd.f32 %v6422_v50, %v14294_v57  ;;  %v6472_v39 = vadd.f32 %v6463_v49, %v14296_v58  ;;  %v6424_v42 = vpop.f32.mrb[33].mxu0  ;;  %v6465_v43 = vpop.f32.mrb[61].mxu1  ;;  %v6502_v57 = vld [vmem:[%s15253_s14] sm:$0xff]  ;;  %v11605_v58 = vld [vmem:[%s15254_s15 + $0x20c] ss:$16 sps:$4 sm:$0xff]  }
 0xac4   : > { %v6471_v51 = vadd.f32 %v6424_v42, %v14298_v61  ;;  %v6473_v52 = vadd.f32 %v6465_v43, %v14300_v62  ;;  %v6426_v53 = vpop.f32.mrb[34].mxu0  ;;  %v6467_v54 = vpop.f32.mrb[62].mxu1  ;;  %v10052_v61 = vld [vmem:[%s15253_s14 + $0x8] sm:$0xff]  ;;  %v11696_v42 = vld [vmem:[%s15254_s15] ss:$16 sps:$4 sm:$0xff]  }
 0xac5   : > { %v6496_v55 = vadd.f32 %v6479_v41, %v6470_v38  ;;  %v6498_v56 = vadd.f32 %v6487_v44, %v6472_v39  ;;  %v6427_v59 = vpop.f32.mrb[35].mxu0  ;;  %v6468_v60 = vpop.f32.mrb[63].mxu1  ;;  %v11603_v62 = vld [vmem:[%s15254_s15 + $0x208] ss:$16 sps:$4 sm:$0xff]   ;;  %v11698_v44 = vld [vmem:[%s15254_s15 + $0x4] ss:$16 sps:$4 sm:$0xff]  }
 0xac6   : > { %v6497_v2 = vadd.f32 %v6483_v63, %v6471_v51  ;;  %v6499_v4 = vadd.f32 %v6491_v47, %v6473_v52  ;;  %v11693_v41 = vld [vmem:[%s15254_s15 + $0x3e8] ss:$16 sps:$4 sm:$0xff]   ;;  %v11701_v50 = vld [vmem:[%s15254_s15 + $0xc] ss:$16 sps:$4 sm:$0xff]   ;;  %7508 = vmatprep.subr.bf16.mxu0 %v11698_v44  ;;  %v11704_v52 = vld [vmem:[%s15254_s15 + $0x24] ss:$16 sps:$4 sm:$0xff]  }
 0xac7   : > { %v14398_v5 = vmax.f32 %v6496_v55, %v6498_v56  ;;  %v11699_v43 = vld [vmem:[%s15254_s15 + $0x8] ss:$16 sps:$4 sm:$0xff]   ;;  %v11707_v53 = vld [vmem:[%s15254_s15 + $0x2c] ss:$16 sps:$4 sm:$0xff]   ;;  %v11702_v55 = vld [vmem:[%s15254_s15 + $0x20] ss:$16 sps:$4 sm:$0xff]  }
 0xac8   : > { %v14400_v7 = vmax.f32 %v6497_v2, %v6499_v4  ;;  %v11705_v56 = vld [vmem:[%s15254_s15 + $0x28] ss:$16 sps:$4 sm:$0xff]   ;;  %v11710_v59 = vld [vmem:[%s15254_s15 + $0x44] ss:$16 sps:$4 sm:$0xff]   ;;  %v11713_v60 = vld [vmem:[%s15254_s15 + $0x4c] ss:$16 sps:$4 sm:$0xff]  }
 0xac9   : > { %v11708_v2 = vld [vmem:[%s15254_s15 + $0x40] ss:$16 sps:$4 sm:$0xff]   ;;  %v11711_v4 = vld [vmem:[%s15254_s15 + $0x48] ss:$16 sps:$4 sm:$0xff]  }
 0xaca   : > { %6506 = vmatprep.subr.mxu1 %v14400_v7  ;;  %v11768_v44 = vld [vmem:[%s15254_s15 + $0x180] ss:$16 sps:$4 sm:$0xff]  }
 0xacb   : > { %6507 = vmatpush1.msra.mxu1 %v14398_v5 }
 0xacc   : > { %10051 = vmatmul.mubr.msk.f32.vlgmr.msra.gmra.mrb[64].mxu1 %vm4837_vm3, %v6502_v57  ;;  %6648 = vmatprep.subr.mxu1 %v14400_v7  ;;  %v11716_v57 = vld [vmem:[%s15254_s15 + $0x64] ss:$16 sps:$4 sm:$0xff]  }
 0xacd   : > { %6649 = vmatpush1.msra.mxu1 %v14398_v5  ;;  %6712 = vmatprep.mubr.f32.mxu1 %v12065_v19 }
 0xace   : > { %7147 = vmatprep.subr.bf16.mxu1 %v11605_v58  ;;  %v11719_v58 = vld [vmem:[%s15254_s15 + $0x6c] ss:$16 sps:$4 sm:$0xff]  }
 0xad0   : > { %10053 = vmatmul.mubr.msk.f32.vlgmr.msra.gmra.mrb[66].mxu1 %vm4837_vm3, %v10052_v61  ;;  %v11714_v61 = vld [vmem:[%s15254_s15 + $0x60] ss:$16 sps:$4 sm:$0xff]  }
 0xad1   : > { %7148 = vmatpush1.bf16.msra.mxu1 %v11603_v62  ;;  %v11717_v62 = vld [vmem:[%s15254_s15 + $0x68] ss:$16 sps:$4 sm:$0xff]  }
 0xad2   : > { %7149 = vmatprep.subr.bf16.mxu1 %v11611_v8  ;;  %v11722_v8 = vld [vmem:[%s15254_s15 + $0x84] ss:$16 sps:$4 sm:$0xff]  }
 0xad5   : > { %7150 = vmatpush1.bf16.msra.mxu1 %v11609_v9  ;;  %v11725_v9 = vld [vmem:[%s15254_s15 + $0x8c] ss:$16 sps:$4 sm:$0xff]  }
 0xad6   : > { %7151 = vmatprep.subr.bf16.mxu1 %v11617_v10  ;;  %v11720_v10 = vld [vmem:[%s15254_s15 + $0x80] ss:$16 sps:$4 sm:$0xff]  }
 0xad9   : > { %7152 = vmatpush1.bf16.msra.mxu1 %v11615_v11  ;;  %v11723_v11 = vld [vmem:[%s15254_s15 + $0x88] ss:$16 sps:$4 sm:$0xff]  }
 0xada   : > { %7153 = vmatprep.subr.bf16.mxu1 %v11623_v15  ;;  %v11728_v15 = vld [vmem:[%s15254_s15 + $0xa4] ss:$16 sps:$4 sm:$0xff]  }
 0xadd   : > { %7154 = vmatpush1.bf16.msra.mxu1 %v11621_v16  ;;  %v11731_v16 = vld [vmem:[%s15254_s15 + $0xac] ss:$16 sps:$4 sm:$0xff]  }
 0xade   : > { %7155 = vmatprep.subr.bf16.mxu1 %v11629_v17  ;;  %v11726_v17 = vld [vmem:[%s15254_s15 + $0xa0] ss:$16 sps:$4 sm:$0xff]  }
 0xae1   : > { %7156 = vmatpush1.bf16.msra.mxu1 %v11627_v18  ;;  %v11729_v18 = vld [vmem:[%s15254_s15 + $0xa8] ss:$16 sps:$4 sm:$0xff]  }
 0xae2   : > { %7157 = vmatprep.subr.bf16.mxu1 %v11635_v20  ;;  %v11734_v20 = vld [vmem:[%s15254_s15 + $0xc4] ss:$16 sps:$4 sm:$0xff]  }
 0xae5   : > { %7158 = vmatpush1.bf16.msra.mxu1 %v11633_v21  ;;  %v11737_v21 = vld [vmem:[%s15254_s15 + $0xcc] ss:$16 sps:$4 sm:$0xff]  }
 0xae6   : > { %7159 = vmatprep.subr.bf16.mxu1 %v11641_v45  ;;  %v11732_v45 = vld [vmem:[%s15254_s15 + $0xc0] ss:$16 sps:$4 sm:$0xff]  }
 0xae9   : > { %7160 = vmatpush1.bf16.msra.mxu1 %v11639_v22  ;;  %v11735_v22 = vld [vmem:[%s15254_s15 + $0xc8] ss:$16 sps:$4 sm:$0xff]  }
 0xaea   : > { %7161 = vmatprep.subr.bf16.mxu1 %v11647_v23  ;;  %v11740_v23 = vld [vmem:[%s15254_s15 + $0xe4] ss:$16 sps:$4 sm:$0xff]  }
 0xaed   : > { %7162 = vmatpush1.bf16.msra.mxu1 %v11645_v24  ;;  %v11743_v24 = vld [vmem:[%s15254_s15 + $0xec] ss:$16 sps:$4 sm:$0xff]  }
 0xaee   : > { %7163 = vmatprep.subr.bf16.mxu1 %v11653_v25  ;;  %v11738_v25 = vld [vmem:[%s15254_s15 + $0xe0] ss:$16 sps:$4 sm:$0xff]  }
 0xaf1   : > { %7164 = vmatpush1.bf16.msra.mxu1 %v11651_v26  ;;  %v11741_v26 = vld [vmem:[%s15254_s15 + $0xe8] ss:$16 sps:$4 sm:$0xff]  }
 0xaf2   : > { %7165 = vmatprep.subr.bf16.mxu1 %v11659_v27  ;;  %v11746_v27 = vld [vmem:[%s15254_s15 + $0x104] ss:$16 sps:$4 sm:$0xff]  }
 0xaf5   : > { %7166 = vmatpush1.bf16.msra.mxu1 %v11657_v1  ;;  %v11749_v1 = vld [vmem:[%s15254_s15 + $0x10c] ss:$16 sps:$4 sm:$0xff]  }
 0xaf6   : > { %7167 = vmatprep.subr.bf16.mxu1 %v11665_v28  ;;  %v11744_v28 = vld [vmem:[%s15254_s15 + $0x100] ss:$16 sps:$4 sm:$0xff]  }
 0xaf9   : > { %7168 = vmatpush1.bf16.msra.mxu1 %v11663_v14  ;;  %v11747_v14 = vld [vmem:[%s15254_s15 + $0x108] ss:$16 sps:$4 sm:$0xff]  }
 0xafa   : > { %7169 = vmatprep.subr.bf16.mxu1 %v11671_v12  ;;  %v11752_v12 = vld [vmem:[%s15254_s15 + $0x124] ss:$16 sps:$4 sm:$0xff]  }
 0xafd   : > { %7170 = vmatpush1.bf16.msra.mxu1 %v11669_v6  ;;  %v11755_v6 = vld [vmem:[%s15254_s15 + $0x12c] ss:$16 sps:$4 sm:$0xff]  }
 0xafe   : > { %7171 = vmatprep.subr.bf16.mxu1 %v11677_v29  ;;  %v11750_v29 = vld [vmem:[%s15254_s15 + $0x120] ss:$16 sps:$4 sm:$0xff]  }
 0xb01   : > { %7172 = vmatpush1.bf16.msra.mxu1 %v11675_v30  ;;  %v11753_v30 = vld [vmem:[%s15254_s15 + $0x128] ss:$16 sps:$4 sm:$0xff]  }
 0xb02   : > { %7173 = vmatprep.subr.bf16.mxu1 %v11683_v13  ;;  %v11758_v13 = vld [vmem:[%s15254_s15 + $0x144] ss:$16 sps:$4 sm:$0xff]  }
 0xb05   : > { %7174 = vmatpush1.bf16.msra.mxu1 %v11681_v31  ;;  %v11761_v31 = vld [vmem:[%s15254_s15 + $0x14c] ss:$16 sps:$4 sm:$0xff]  }
 0xb06   : > { %7175 = vmatprep.subr.bf16.mxu1 %v11689_v33  ;;  %v11759_v33 = vld [vmem:[%s15254_s15 + $0x148] ss:$16 sps:$4 sm:$0xff]  }
 0xb09   : > { %7176 = vmatpush1.bf16.msra.mxu1 %v11687_v35  ;;  %v11767_v35 = vld [vmem:[%s15254_s15 + $0x16c] ss:$16 sps:$4 sm:$0xff]  }
 0xb0a   : > { %7177 = vmatprep.subr.bf16.mxu1 %v11695_v37  ;;  %v11765_v37 = vld [vmem:[%s15254_s15 + $0x168] ss:$16 sps:$4 sm:$0xff]  }
 0xb0d   : > { %7178 = vmatpush1.bf16.msra.mxu1 %v11693_v41  ;;  %v11773_v41 = vld [vmem:[%s15254_s15 + $0x18c] ss:$16 sps:$4 sm:$0xff]  }
 0xb0e   : > { %7549 = vmatprep.subr.bf16.mxu1 %v11701_v50  ;;  %v11771_v50 = vld [vmem:[%s15254_s15 + $0x188] ss:$16 sps:$4 sm:$0xff]  }
 0xb9f   : > { %v14529_v49 = vpop.f32.mrb[64].mxu1 }
 0xba0   : > { %v6574_v63 = vpop.f32.mrb[65].mxu1 }
 0xba1   : > { %v6578_v54 = vpack.c.bf16 %v6574_v63, %v6574_v63  ;;  %v11776_v63 = vld [vmem:[%s15254_s15 + $0x1a4] ss:$16 sps:$4 sm:$0xff]  }
 0xba3   : > { %v6714_v47 = vpop.f32.mrb[66].mxu1 }
 0xba4   : > { %v6716_v38 = vpop.f32.mrb[67].mxu1  ;;  %v6719_v51 = vpack.c.bf16 %v6714_v47, %v6714_v47  ;;  %v11779_v47 = vld [vmem:[%s15254_s15 + $0x1ac] ss:$16 sps:$4 sm:$0xff]  }
 0xba5   : > { %v6720_v39 = vpack.c.bf16 %v6716_v38, %v6716_v38  ;;  %v11774_v38 = vld [vmem:[%s15254_s15 + $0x1a0] ss:$16 sps:$4 sm:$0xff]  }
 0xba7   : > { %7138 = vmatprep.mubr.bf16.mxu0 %v6720_v39  ;;  %7179 = vmatprep.mubr.bf16.mxu1 %v6720_v39  ;;  %v11777_v39 = vld [vmem:[%s15254_s15 + $0x1a8] ss:$16 sps:$4 sm:$0xff]  }
 0xba8   : > { %7139 = vmatmul.mubr.bf16.vlgmr.msra.gmra.mrb[36].mxu0 %v6719_v51  ;;  %7180 = vmatmul.mubr.bf16.vlgmr.msra.gmra.mrb[68].mxu1 %v6719_v51  ;;  %v11780_v51 = vld [vmem:[%s15254_s15 + $0x1c0] ss:$16 sps:$4 sm:$0xff]  }
 0xba9   : > { %7509 = vmatpush1.bf16.msra.mxu0 %v11696_v42  ;;  %7550 = vmatpush1.bf16.msra.mxu1 %v11699_v43  ;;  %v11782_v42 = vld [vmem:[%s15254_s15 + $0x1c4] ss:$16 sps:$4 sm:$0xff]   ;;  %v11785_v43 = vld [vmem:[%s15254_s15 + $0x1cc] ss:$16 sps:$4 sm:$0xff]  }
 0xbaa   : > { %7540 = vmatprep.mubr.bf16.mxu0 %v6578_v54  ;;  %7581 = vmatprep.mubr.bf16.mxu1 %v6578_v54  ;;  %v11791_v54 = vld [vmem:[%s15254_s15 + $0x1ec] ss:$16 sps:$4 sm:$0xff]  }
 0xbab   : > { %7510 = vmatprep.subr.bf16.mxu0 %v11704_v52  ;;  %7551 = vmatprep.subr.bf16.mxu1 %v11707_v53  ;;  %v11783_v52 = vld [vmem:[%s15254_s15 + $0x1c8] ss:$16 sps:$4 sm:$0xff]   ;;  %v11788_v53 = vld [vmem:[%s15254_s15 + $0x1e4] ss:$16 sps:$4 sm:$0xff]  }
 0xbad   : > { %7511 = vmatpush1.bf16.msra.mxu0 %v11702_v55  ;;  %7552 = vmatpush1.bf16.msra.mxu1 %v11705_v56  ;;  %v11786_v55 = vld [vmem:[%s15254_s15 + $0x1e0] ss:$16 sps:$4 sm:$0xff]   ;;  %v11789_v56 = vld [vmem:[%s15254_s15 + $0x1e8] ss:$16 sps:$4 sm:$0xff]  }
 0xbae   : > { %7512 = vmatprep.subr.bf16.mxu0 %v11710_v59  ;;  %7553 = vmatprep.subr.bf16.mxu1 %v11713_v60  ;;  %v6577_v59 = vpack.c.bf16 %v14529_v49, %v14529_v49  ;;  %v10246_v60 = vld [vmem:[%s15253_s14 + $0x10] sm:$0xff]  ;;  %v11797_v49 = vld [vmem:[%s15254_s15 + $0x40c] ss:$16 sps:$4 sm:$0xff]  }
 0xbb1   : > { %7513 = vmatpush1.bf16.msra.mxu0 %v11708_v2  ;;  %7554 = vmatpush1.bf16.msra.mxu1 %v11711_v4  ;;  %v11792_v2 = vld [vmem:[%s15254_s15 + $0x400] ss:$16 sps:$4 sm:$0xff]   ;;  %v11800_v4 = vld [vmem:[%s15254_s15 + $0x424] ss:$16 sps:$4 sm:$0xff]  }
 0xbb2   : > { %7514 = vmatprep.subr.bf16.mxu0 %v11716_v57  ;;  %7555 = vmatprep.subr.bf16.mxu1 %v11719_v58  ;;  %v11803_v57 = vld [vmem:[%s15254_s15 + $0x42c] ss:$16 sps:$4 sm:$0xff]   ;;  %v11798_v58 = vld [vmem:[%s15254_s15 + $0x420] ss:$16 sps:$4 sm:$0xff]  }
 0xbb5   : > { %7515 = vmatpush1.bf16.msra.mxu0 %v11714_v61  ;;  %7556 = vmatpush1.bf16.msra.mxu1 %v11717_v62  ;;  %v11801_v61 = vld [vmem:[%s15254_s15 + $0x428] ss:$16 sps:$4 sm:$0xff]   ;;  %v11806_v62 = vld [vmem:[%s15254_s15 + $0x444] ss:$16 sps:$4 sm:$0xff]  }
 0xbb6   : > { %7516 = vmatprep.subr.bf16.mxu0 %v11722_v8  ;;  %7557 = vmatprep.subr.bf16.mxu1 %v11725_v9  ;;  %v11809_v8 = vld [vmem:[%s15254_s15 + $0x44c] ss:$16 sps:$4 sm:$0xff]   ;;  %v11804_v9 = vld [vmem:[%s15254_s15 + $0x440] ss:$16 sps:$4 sm:$0xff]  }
 0xbb9   : > { %7517 = vmatpush1.bf16.msra.mxu0 %v11720_v10  ;;  %7558 = vmatpush1.bf16.msra.mxu1 %v11723_v11  ;;  %v11807_v10 = vld [vmem:[%s15254_s15 + $0x448] ss:$16 sps:$4 sm:$0xff]   ;;  %v11812_v11 = vld [vmem:[%s15254_s15 + $0x464] ss:$16 sps:$4 sm:$0xff]  }
 0xbba   : > { %7518 = vmatprep.subr.bf16.mxu0 %v11728_v15  ;;  %7559 = vmatprep.subr.bf16.mxu1 %v11731_v16  ;;  %v11815_v15 = vld [vmem:[%s15254_s15 + $0x46c] ss:$16 sps:$4 sm:$0xff]   ;;  %v11810_v16 = vld [vmem:[%s15254_s15 + $0x460] ss:$16 sps:$4 sm:$0xff]  }
 0xbbd   : > { %7519 = vmatpush1.bf16.msra.mxu0 %v11726_v17  ;;  %7560 = vmatpush1.bf16.msra.mxu1 %v11729_v18  ;;  %v11813_v17 = vld [vmem:[%s15254_s15 + $0x468] ss:$16 sps:$4 sm:$0xff]   ;;  %v11818_v18 = vld [vmem:[%s15254_s15 + $0x484] ss:$16 sps:$4 sm:$0xff]  }
 0xbbe   : > { %7520 = vmatprep.subr.bf16.mxu0 %v11734_v20  ;;  %7561 = vmatprep.subr.bf16.mxu1 %v11737_v21  ;;  %v11821_v20 = vld [vmem:[%s15254_s15 + $0x48c] ss:$16 sps:$4 sm:$0xff]   ;;  %v11816_v21 = vld [vmem:[%s15254_s15 + $0x480] ss:$16 sps:$4 sm:$0xff]  }
 0xbc1   : > { %7521 = vmatpush1.bf16.msra.mxu0 %v11732_v45  ;;  %7562 = vmatpush1.bf16.msra.mxu1 %v11735_v22  ;;  %v11819_v45 = vld [vmem:[%s15254_s15 + $0x488] ss:$16 sps:$4 sm:$0xff]   ;;  %v11824_v22 = vld [vmem:[%s15254_s15 + $0x4a4] ss:$16 sps:$4 sm:$0xff]  }
 0xbc2   : > { %7522 = vmatprep.subr.bf16.mxu0 %v11740_v23  ;;  %7563 = vmatprep.subr.bf16.mxu1 %v11743_v24  ;;  %v11827_v23 = vld [vmem:[%s15254_s15 + $0x4ac] ss:$16 sps:$4 sm:$0xff]   ;;  %v11822_v24 = vld [vmem:[%s15254_s15 + $0x4a0] ss:$16 sps:$4 sm:$0xff]  }
 0xbc5   : > { %7523 = vmatpush1.bf16.msra.mxu0 %v11738_v25  ;;  %7564 = vmatpush1.bf16.msra.mxu1 %v11741_v26  ;;  %v11825_v25 = vld [vmem:[%s15254_s15 + $0x4a8] ss:$16 sps:$4 sm:$0xff]   ;;  %v11830_v26 = vld [vmem:[%s15254_s15 + $0x4c4] ss:$16 sps:$4 sm:$0xff]  }
 0xbc6   : > { %7524 = vmatprep.subr.bf16.mxu0 %v11746_v27  ;;  %7565 = vmatprep.subr.bf16.mxu1 %v11749_v1  ;;  %v11833_v27 = vld [vmem:[%s15254_s15 + $0x4cc] ss:$16 sps:$4 sm:$0xff]   ;;  %v11828_v1 = vld [vmem:[%s15254_s15 + $0x4c0] ss:$16 sps:$4 sm:$0xff]  }
 0xbc9   : > { %7525 = vmatpush1.bf16.msra.mxu0 %v11744_v28  ;;  %7566 = vmatpush1.bf16.msra.mxu1 %v11747_v14  ;;  %v11831_v28 = vld [vmem:[%s15254_s15 + $0x4c8] ss:$16 sps:$4 sm:$0xff]   ;;  %v11836_v14 = vld [vmem:[%s15254_s15 + $0x4e4] ss:$16 sps:$4 sm:$0xff]  }
 0xbca   : > { %7526 = vmatprep.subr.bf16.mxu0 %v11752_v12  ;;  %7567 = vmatprep.subr.bf16.mxu1 %v11755_v6  ;;  %v11839_v12 = vld [vmem:[%s15254_s15 + $0x4ec] ss:$16 sps:$4 sm:$0xff]   ;;  %v11834_v6 = vld [vmem:[%s15254_s15 + $0x4e0] ss:$16 sps:$4 sm:$0xff]  }
 0xbcd   : > { %7527 = vmatpush1.bf16.msra.mxu0 %v11750_v29  ;;  %7568 = vmatpush1.bf16.msra.mxu1 %v11753_v30  ;;  %v11837_v29 = vld [vmem:[%s15254_s15 + $0x4e8] ss:$16 sps:$4 sm:$0xff]   ;;  %v11842_v30 = vld [vmem:[%s15254_s15 + $0x504] ss:$16 sps:$4 sm:$0xff]  }
 0xbce   : > { %7528 = vmatprep.subr.bf16.mxu0 %v11758_v13  ;;  %7569 = vmatprep.subr.bf16.mxu1 %v11761_v31  ;;  %v11845_v13 = vld [vmem:[%s15254_s15 + $0x50c] ss:$16 sps:$4 sm:$0xff]   ;;  %v11840_v31 = vld [vmem:[%s15254_s15 + $0x500] ss:$16 sps:$4 sm:$0xff]  }
 0xbd1   : > { %7529 = vmatpush1.bf16.msra.mxu0 %v11756_v32  ;;  %7570 = vmatpush1.bf16.msra.mxu1 %v11759_v33  ;;  %v11843_v32 = vld [vmem:[%s15254_s15 + $0x508] ss:$16 sps:$4 sm:$0xff]   ;;  %v11848_v33 = vld [vmem:[%s15254_s15 + $0x524] ss:$16 sps:$4 sm:$0xff]  }
 0xbd2   : > { %7530 = vmatprep.subr.bf16.mxu0 %v11764_v34  ;;  %7571 = vmatprep.subr.bf16.mxu1 %v11767_v35  ;;  %v11851_v34 = vld [vmem:[%s15254_s15 + $0x52c] ss:$16 sps:$4 sm:$0xff]   ;;  %v11846_v35 = vld [vmem:[%s15254_s15 + $0x520] ss:$16 sps:$4 sm:$0xff]  }
 0xbd5   : > { %7531 = vmatpush1.bf16.msra.mxu0 %v11762_v36  ;;  %7572 = vmatpush1.bf16.msra.mxu1 %v11765_v37  ;;  %v11849_v36 = vld [vmem:[%s15254_s15 + $0x528] ss:$16 sps:$4 sm:$0xff]   ;;  %v11854_v37 = vld [vmem:[%s15254_s15 + $0x544] ss:$16 sps:$4 sm:$0xff]  }
 0xbd6   : > { %7532 = vmatprep.subr.bf16.mxu0 %v11770_v40  ;;  %7573 = vmatprep.subr.bf16.mxu1 %v11773_v41  ;;  %v11857_v40 = vld [vmem:[%s15254_s15 + $0x54c] ss:$16 sps:$4 sm:$0xff]   ;;  %v11852_v41 = vld [vmem:[%s15254_s15 + $0x540] ss:$16 sps:$4 sm:$0xff]  }
 0xbd9   : > { %7533 = vmatpush1.bf16.msra.mxu0 %v11768_v44  ;;  %7574 = vmatpush1.bf16.msra.mxu1 %v11771_v50  ;;  %v11855_v44 = vld [vmem:[%s15254_s15 + $0x548] ss:$16 sps:$4 sm:$0xff]   ;;  %v11860_v50 = vld [vmem:[%s15254_s15 + $0x564] ss:$16 sps:$4 sm:$0xff]  }
 0xbda   : > { %7534 = vmatprep.subr.bf16.mxu0 %v11776_v63  ;;  %7575 = vmatprep.subr.bf16.mxu1 %v11779_v47  ;;  %v11863_v63 = vld [vmem:[%s15254_s15 + $0x56c] ss:$16 sps:$4 sm:$0xff]   ;;  %v11858_v47 = vld [vmem:[%s15254_s15 + $0x560] ss:$16 sps:$4 sm:$0xff]  }
 0xbdd   : > { %7535 = vmatpush1.bf16.msra.mxu0 %v11774_v38  ;;  %7576 = vmatpush1.bf16.msra.mxu1 %v11777_v39  ;;  %v11861_v38 = vld [vmem:[%s15254_s15 + $0x568] ss:$16 sps:$4 sm:$0xff]   ;;  %v11866_v39 = vld [vmem:[%s15254_s15 + $0x584] ss:$16 sps:$4 sm:$0xff]  }
 0xbde   : > { %7536 = vmatprep.subr.bf16.mxu0 %v11782_v42  ;;  %7577 = vmatprep.subr.bf16.mxu1 %v11785_v43  ;;  %v11869_v42 = vld [vmem:[%s15254_s15 + $0x58c] ss:$16 sps:$4 sm:$0xff]   ;;  %v11864_v43 = vld [vmem:[%s15254_s15 + $0x580] ss:$16 sps:$4 sm:$0xff]  }
 0xbe1   : > { %7537 = vmatpush1.bf16.msra.mxu0 %v11780_v51  ;;  %7578 = vmatpush1.bf16.msra.mxu1 %v11783_v52  ;;  %v11867_v51 = vld [vmem:[%s15254_s15 + $0x588] ss:$16 sps:$4 sm:$0xff]   ;;  %v11872_v52 = vld [vmem:[%s15254_s15 + $0x5a4] ss:$16 sps:$4 sm:$0xff]  }
 0xbe2   : > { %7538 = vmatprep.subr.bf16.mxu0 %v11788_v53  ;;  %7579 = vmatprep.subr.bf16.mxu1 %v11791_v54  ;;  %v11875_v53 = vld [vmem:[%s15254_s15 + $0x5ac] ss:$16 sps:$4 sm:$0xff]   ;;  %v11870_v54 = vld [vmem:[%s15254_s15 + $0x5a0] ss:$16 sps:$4 sm:$0xff]  }
 0xbe5   : > { %7539 = vmatpush1.bf16.msra.mxu0 %v11786_v55  ;;  %7580 = vmatpush1.bf16.msra.mxu1 %v11789_v56  ;;  %v11873_v55 = vld [vmem:[%s15254_s15 + $0x5a8] ss:$16 sps:$4 sm:$0xff]   ;;  %v11876_v56 = vld [vmem:[%s15254_s15 + $0x5c0] ss:$16 sps:$4 sm:$0xff]  }
 0xbe6   : > { %7595 = vmatprep.subr.mxu0 %v14400_v7  ;;  %v11794_v7 = vld [vmem:[%s15254_s15 + $0x404] ss:$16 sps:$4 sm:$0xff]  }
 0xbe7   : > { %8053 = vmatprep.subr.bf16.mxu1 %v11794_v7  ;;  %v11884_v7 = vld [vmem:[%s15254_s15 + $0x5e4] ss:$16 sps:$4 sm:$0xff]  }
 0xbe8   : > { %7541 = vmatmul.mubr.bf16.vlgmr.msra.gmra.mrb[40].mxu0 %v6577_v59  ;;  %7582 = vmatmul.mubr.bf16.vlgmr.msra.gmra.mrb[72].mxu1 %v6577_v59  ;;  %v11878_v59 = vld [vmem:[%s15254_s15 + $0x5c4] ss:$16 sps:$4 sm:$0xff]  }
 0xbe9   : > { %7596 = vmatpush1.msra.mxu0 %v14398_v5  ;;  %7659 = vmatprep.mubr.f32.mxu0 %v12065_v19  ;;  %v11795_v5 = vld [vmem:[%s15254_s15 + $0x408] ss:$16 sps:$4 sm:$0xff]  }
 0xbea   : > { %8094 = vmatprep.subr.bf16.mxu0 %v11797_v49  ;;  %8054 = vmatpush1.bf16.msra.mxu1 %v11792_v2  ;;  %v11881_v2 = vld [vmem:[%s15254_s15 + $0x5cc] ss:$16 sps:$4 sm:$0xff]   ;;  %v11882_v49 = vld [vmem:[%s15254_s15 + $0x5e0] ss:$16 sps:$4 sm:$0xff]  }
 0xbeb   : > { %8055 = vmatprep.subr.bf16.mxu1 %v11800_v4  ;;  %v11885_v4 = vld [vmem:[%s15254_s15 + $0x5e8] ss:$16 sps:$4 sm:$0xff]  }
 0xbee   : > { %8056 = vmatpush1.bf16.msra.mxu1 %v11798_v58 }
 0xbef   : > { %8057 = vmatprep.subr.bf16.mxu1 %v11806_v62 }
 0xbf0   : > { %10247 = vmatmul.mubr.msk.f32.vlgmr.msra.gmra.mrb[44].mxu0 %vm4837_vm3, %v10246_v60  ;;  %v11879_v60 = vld [vmem:[%s15254_s15 + $0x5c8] ss:$16 sps:$4 sm:$0xff]  }
 0xbf1   : > { %8095 = vmatpush1.bf16.msra.mxu0 %v11795_v5  ;;  %v11887_v5 = vld [vmem:[%s15254_s15 + $0x5ec] ss:$16 sps:$4 sm:$0xff]  }
 0xbf2   : > { %8096 = vmatprep.subr.bf16.mxu0 %v11803_v57  ;;  %8058 = vmatpush1.bf16.msra.mxu1 %v11804_v9 }
 0xbf3   : > { %8059 = vmatprep.subr.bf16.mxu1 %v11812_v11 }
 0xbf5   : > { %8097 = vmatpush1.bf16.msra.mxu0 %v11801_v61 }
 0xbf6   : > { %8098 = vmatprep.subr.bf16.mxu0 %v11809_v8  ;;  %8060 = vmatpush1.bf16.msra.mxu1 %v11810_v16 }
 0xbf7   : > { %8061 = vmatprep.subr.bf16.mxu1 %v11818_v18 }
 0xbf9   : > { %8099 = vmatpush1.bf16.msra.mxu0 %v11807_v10 }
 0xbfa   : > { %8100 = vmatprep.subr.bf16.mxu0 %v11815_v15  ;;  %8062 = vmatpush1.bf16.msra.mxu1 %v11816_v21 }
 0xbfb   : > { %8063 = vmatprep.subr.bf16.mxu1 %v11824_v22 }
 0xbfd   : > { %8101 = vmatpush1.bf16.msra.mxu0 %v11813_v17 }
 0xbfe   : > { %8102 = vmatprep.subr.bf16.mxu0 %v11821_v20  ;;  %8064 = vmatpush1.bf16.msra.mxu1 %v11822_v24 }
 0xbff   : > { %8065 = vmatprep.subr.bf16.mxu1 %v11830_v26 }
 0xc01   : > { %8103 = vmatpush1.bf16.msra.mxu0 %v11819_v45 }
 0xc02   : > { %8104 = vmatprep.subr.bf16.mxu0 %v11827_v23  ;;  %8066 = vmatpush1.bf16.msra.mxu1 %v11828_v1 }
 0xc03   : > { %8067 = vmatprep.subr.bf16.mxu1 %v11836_v14 }
 0xc05   : > { %8105 = vmatpush1.bf16.msra.mxu0 %v11825_v25 }
 0xc06   : > { %8106 = vmatprep.subr.bf16.mxu0 %v11833_v27  ;;  %8068 = vmatpush1.bf16.msra.mxu1 %v11834_v6  ;;  %v11890_v6 = vld [vmem:[%s15257_s18 + $0x4] ss:$16 sps:$4 sm:$0xff]  }
 0xc07   : > { %8069 = vmatprep.subr.bf16.mxu1 %v11842_v30  ;;  %v11894_v30 = vld [vmem:[%s15257_s18 + $0x20] ss:$16 sps:$4 sm:$0xff]  }
 0xc09   : > { %8107 = vmatpush1.bf16.msra.mxu0 %v11831_v28 }
 0xc0a   : > { %8108 = vmatprep.subr.bf16.mxu0 %v11839_v12  ;;  %8070 = vmatpush1.bf16.msra.mxu1 %v11840_v31  ;;  %v11888_v12 = vld [vmem:[%s15257_s18] ss:$16 sps:$4 sm:$0xff]   ;;  %v11908_v31 = vld [vmem:[%s15257_s18 + $0x64] ss:$16 sps:$4 sm:$0xff]  }
 0xc0b   : > { %8071 = vmatprep.subr.bf16.mxu1 %v11848_v33  ;;  %v11914_v33 = vld [vmem:[%s15257_s18 + $0x84] ss:$16 sps:$4 sm:$0xff]  }
 0xc0d   : > { %8109 = vmatpush1.bf16.msra.mxu0 %v11837_v29  ;;  %v11896_v29 = vld [vmem:[%s15257_s18 + $0x24] ss:$16 sps:$4 sm:$0xff]  }
 0xc0e   : > { %8110 = vmatprep.subr.bf16.mxu0 %v11845_v13  ;;  %8072 = vmatpush1.bf16.msra.mxu1 %v11846_v35  ;;  %v11900_v13 = vld [vmem:[%s15257_s18 + $0x40] ss:$16 sps:$4 sm:$0xff]   ;;  %v11920_v35 = vld [vmem:[%s15257_s18 + $0xa4] ss:$16 sps:$4 sm:$0xff]  }
 0xc0f   : > { %8073 = vmatprep.subr.bf16.mxu1 %v11854_v37  ;;  %v11926_v37 = vld [vmem:[%s15257_s18 + $0xc4] ss:$16 sps:$4 sm:$0xff]  }
 0xc11   : > { %8111 = vmatpush1.bf16.msra.mxu0 %v11843_v32  ;;  %v11906_v32 = vld [vmem:[%s15257_s18 + $0x60] ss:$16 sps:$4 sm:$0xff]  }
 0xc12   : > { %8112 = vmatprep.subr.bf16.mxu0 %v11851_v34  ;;  %8074 = vmatpush1.bf16.msra.mxu1 %v11852_v41  ;;  %v11912_v34 = vld [vmem:[%s15257_s18 + $0x80] ss:$16 sps:$4 sm:$0xff]   ;;  %v11932_v41 = vld [vmem:[%s15257_s18 + $0xe4] ss:$16 sps:$4 sm:$0xff]  }
 0xc13   : > { %8075 = vmatprep.subr.bf16.mxu1 %v11860_v50  ;;  %v11938_v50 = vld [vmem:[%s15257_s18 + $0x104] ss:$16 sps:$4 sm:$0xff]  }
 0xc15   : > { %8113 = vmatpush1.bf16.msra.mxu0 %v11849_v36  ;;  %v11918_v36 = vld [vmem:[%s15257_s18 + $0xa0] ss:$16 sps:$4 sm:$0xff]  }
 0xc16   : > { %8114 = vmatprep.subr.bf16.mxu0 %v11857_v40  ;;  %8076 = vmatpush1.bf16.msra.mxu1 %v11858_v47  ;;  %v11924_v40 = vld [vmem:[%s15257_s18 + $0xc0] ss:$16 sps:$4 sm:$0xff]   ;;  %v11944_v47 = vld [vmem:[%s15257_s18 + $0x124] ss:$16 sps:$4 sm:$0xff]  }
 0xc17   : > { %8077 = vmatprep.subr.bf16.mxu1 %v11866_v39  ;;  %v11950_v39 = vld [vmem:[%s15257_s18 + $0x144] ss:$16 sps:$4 sm:$0xff]  }
 0xc19   : > { %8115 = vmatpush1.bf16.msra.mxu0 %v11855_v44  ;;  %v11930_v44 = vld [vmem:[%s15257_s18 + $0xe0] ss:$16 sps:$4 sm:$0xff]  }
 0xc1a   : > { %8116 = vmatprep.subr.bf16.mxu0 %v11863_v63  ;;  %8078 = vmatpush1.bf16.msra.mxu1 %v11864_v43  ;;  %v11936_v63 = vld [vmem:[%s15257_s18 + $0x100] ss:$16 sps:$4 sm:$0xff]   ;;  %v11956_v43 = vld [vmem:[%s15257_s18 + $0x164] ss:$16 sps:$4 sm:$0xff]  }
 0xc1b   : > { %8079 = vmatprep.subr.bf16.mxu1 %v11872_v52  ;;  %v11962_v52 = vld [vmem:[%s15257_s18 + $0x184] ss:$16 sps:$4 sm:$0xff]  }
 0xc1d   : > { %8117 = vmatpush1.bf16.msra.mxu0 %v11861_v38  ;;  %v11942_v38 = vld [vmem:[%s15257_s18 + $0x120] ss:$16 sps:$4 sm:$0xff]  }
 0xc1e   : > { %8118 = vmatprep.subr.bf16.mxu0 %v11869_v42  ;;  %8080 = vmatpush1.bf16.msra.mxu1 %v11870_v54  ;;  %v11948_v42 = vld [vmem:[%s15257_s18 + $0x140] ss:$16 sps:$4 sm:$0xff]   ;;  %v11968_v54 = vld [vmem:[%s15257_s18 + $0x1a4] ss:$16 sps:$4 sm:$0xff]  }
 0xc1f   : > { %8081 = vmatprep.subr.bf16.mxu1 %v11878_v59  ;;  %v11972_v59 = vld [vmem:[%s15257_s18 + $0x1c0] ss:$16 sps:$4 sm:$0xff]  }
 0xc21   : > { %8119 = vmatpush1.bf16.msra.mxu0 %v11867_v51  ;;  %v11954_v51 = vld [vmem:[%s15257_s18 + $0x160] ss:$16 sps:$4 sm:$0xff]  }
 0xc22   : > { %8120 = vmatprep.subr.bf16.mxu0 %v11875_v53  ;;  %8082 = vmatpush1.bf16.msra.mxu1 %v11876_v56  ;;  %v11960_v53 = vld [vmem:[%s15257_s18 + $0x180] ss:$16 sps:$4 sm:$0xff]   ;;  %v11974_v56 = vld [vmem:[%s15257_s18 + $0x1c4] ss:$16 sps:$4 sm:$0xff]  }
 0xc23   : > { %8083 = vmatprep.subr.bf16.mxu1 %v11884_v7 }
 0xc25   : > { %8121 = vmatpush1.bf16.msra.mxu0 %v11873_v55  ;;  %v11966_v55 = vld [vmem:[%s15257_s18 + $0x1a0] ss:$16 sps:$4 sm:$0xff]  }
 0xc26   : > { %8122 = vmatprep.subr.bf16.mxu0 %v11881_v2  ;;  %8084 = vmatpush1.bf16.msra.mxu1 %v11882_v49 }
 0xc29   : > { %8123 = vmatpush1.bf16.msra.mxu0 %v11879_v60  ;;  %v8139_v60 = vld [vmem:[%s15255_s16] sm:$0xf] }
 0xc2a   : > { %8124 = vmatprep.subr.bf16.mxu0 %v11887_v5  ;;  %v8144_v2 = vrot.slane %v8139_v60, %v12485_v46  ;;  %v8152_v7 = vrot.slane %v8139_v60, %v13138_v0 }
 0xc2d   : > { %8125 = vmatpush1.bf16.msra.mxu0 %v11885_v4  ;;  %v8148_v4 = vrot.slane %v8139_v60, %v12491_v48 }
 0xc2e   : > { %8650 = vmatprep.subr.bf16.mxu0 %v11890_v6  ;;  %v11909_v6 = vld [vmem:[%s15257_s18 + $0x68] ss:$16 sps:$4 sm:$0xff]  }
 0xc7b   : > { %v7140_v57 = vpop.f32.mrb[36].mxu0  ;;  %v7181_v58 = vpop.f32.mrb[68].mxu1 }
 0xc7c   : > { %v7142_v61 = vpop.f32.mrb[37].mxu0  ;;  %v7183_v62 = vpop.f32.mrb[69].mxu1 }
 0xc7d   : > { %v7144_v8 = vpop.f32.mrb[38].mxu0  ;;  %v7185_v9 = vpop.f32.mrb[70].mxu1 }
 0xc7e   : > { %v7145_v10 = vpop.f32.mrb[39].mxu0  ;;  %v7186_v11 = vpop.f32.mrb[71].mxu1 }
 0xcbb   : > { %v7542_v15 = vpop.f32.mrb[40].mxu0  ;;  %v7583_v16 = vpop.f32.mrb[72].mxu1 }
 0xcbc   : > { %v14918_v17 = vadd.f32 %v7542_v15, %v7140_v57  ;;  %v14920_v18 = vadd.f32 %v7583_v16, %v7181_v58  ;;  %v7544_v20 = vpop.f32.mrb[41].mxu0  ;;  %v7585_v21 = vpop.f32.mrb[73].mxu1  ;;  %v8156_v57 = vrot.slane %v8139_v60, %v13144_v3 }
 0xcbd   : > { %v14922_v45 = vadd.f32 %v7544_v20, %v7142_v61  ;;  %v14924_v22 = vadd.f32 %v7585_v21, %v7183_v62  ;;  %v7546_v23 = vpop.f32.mrb[42].mxu0  ;;  %v7587_v24 = vpop.f32.mrb[74].mxu1 }
 0xcbe   : > { %v7547_v25 = vpop.f32.mrb[43].mxu0  ;;  %v7588_v26 = vpop.f32.mrb[75].mxu1 }
 0xcc3   : > { %v7661_v27 = vpop.f32.mrb[44].mxu0 }
 0xcc4   : > { %v7663_v1 = vpop.f32.mrb[45].mxu0  ;;  %v7666_v14 = vpack.c.bf16 %v7661_v27, %v7661_v27 }
 0xcc5   : > { %v7667_v28 = vpack.c.bf16 %v7663_v1, %v7663_v1  ;;  %v11897_v1 = vld [vmem:[%s15257_s18 + $0x28] ss:$16 sps:$4 sm:$0xff]  }
 0xcc7   : > { %8085 = vmatprep.mubr.bf16.mxu1 %v7667_v28  ;;  %8126 = vmatprep.mubr.bf16.mxu0 %v7667_v28  ;;  %v11905_v28 = vld [vmem:[%s15257_s18 + $0x4c] ss:$16 sps:$4 sm:$0xff]  }
 0xcc8   : > { %8086 = vmatmul.mubr.bf16.vlgmr.msra.gmra.mrb[76].mxu1 %v7666_v14  ;;  %8127 = vmatmul.mubr.bf16.vlgmr.msra.gmra.mrb[48].mxu0 %v7666_v14  ;;  %v11903_v14 = vld [vmem:[%s15257_s18 + $0x48] ss:$16 sps:$4 sm:$0xff]  }
 0xcc9   : > { %8235 = vmatprep.mubr.f32.mxu1 %v12065_v19  ;;  %8651 = vmatpush1.bf16.msra.mxu0 %v11888_v12  ;;  %v11902_v19 = vld [vmem:[%s15257_s18 + $0x44] ss:$16 sps:$4 sm:$0xff]   ;;  %v11911_v12 = vld [vmem:[%s15257_s18 + $0x6c] ss:$16 sps:$4 sm:$0xff]  }
 0xcca   : > { %8652 = vmatprep.subr.bf16.mxu0 %v11896_v29  ;;  %v11917_v29 = vld [vmem:[%s15257_s18 + $0x8c] ss:$16 sps:$4 sm:$0xff]  }
 0xccd   : > { %8653 = vmatpush1.bf16.msra.mxu0 %v11894_v30  ;;  %v11915_v30 = vld [vmem:[%s15257_s18 + $0x88] ss:$16 sps:$4 sm:$0xff]  }
 0xcce   : > { %8654 = vmatprep.subr.bf16.mxu0 %v11902_v19  ;;  %v11923_v19 = vld [vmem:[%s15257_s18 + $0xac] ss:$16 sps:$4 sm:$0xff]  }
 0xcd1   : > { %8655 = vmatpush1.bf16.msra.mxu0 %v11900_v13  ;;  %v11921_v13 = vld [vmem:[%s15257_s18 + $0xa8] ss:$16 sps:$4 sm:$0xff]  }
 0xcd2   : > { %8656 = vmatprep.subr.bf16.mxu0 %v11908_v31  ;;  %v11929_v31 = vld [vmem:[%s15257_s18 + $0xcc] ss:$16 sps:$4 sm:$0xff]  }
 0xcd5   : > { %8657 = vmatpush1.bf16.msra.mxu0 %v11906_v32  ;;  %v11927_v32 = vld [vmem:[%s15257_s18 + $0xc8] ss:$16 sps:$4 sm:$0xff]  }
 0xcd6   : > { %8658 = vmatprep.subr.bf16.mxu0 %v11914_v33  ;;  %v11935_v33 = vld [vmem:[%s15257_s18 + $0xec] ss:$16 sps:$4 sm:$0xff]  }
 0xcd9   : > { %8659 = vmatpush1.bf16.msra.mxu0 %v11912_v34  ;;  %v11933_v34 = vld [vmem:[%s15257_s18 + $0xe8] ss:$16 sps:$4 sm:$0xff]  }
 0xcda   : > { %8660 = vmatprep.subr.bf16.mxu0 %v11920_v35  ;;  %v11941_v35 = vld [vmem:[%s15257_s18 + $0x10c] ss:$16 sps:$4 sm:$0xff]  }
 0xcdd   : > { %8661 = vmatpush1.bf16.msra.mxu0 %v11918_v36  ;;  %v11939_v36 = vld [vmem:[%s15257_s18 + $0x108] ss:$16 sps:$4 sm:$0xff]  }
 0xcde   : > { %8662 = vmatprep.subr.bf16.mxu0 %v11926_v37  ;;  %v11947_v37 = vld [vmem:[%s15257_s18 + $0x12c] ss:$16 sps:$4 sm:$0xff]  }
 0xce1   : > { %8663 = vmatpush1.bf16.msra.mxu0 %v11924_v40  ;;  %v11945_v40 = vld [vmem:[%s15257_s18 + $0x128] ss:$16 sps:$4 sm:$0xff]  }
 0xce2   : > { %8664 = vmatprep.subr.bf16.mxu0 %v11932_v41  ;;  %v11953_v41 = vld [vmem:[%s15257_s18 + $0x14c] ss:$16 sps:$4 sm:$0xff]  }
 0xce5   : > { %8665 = vmatpush1.bf16.msra.mxu0 %v11930_v44  ;;  %v11951_v44 = vld [vmem:[%s15257_s18 + $0x148] ss:$16 sps:$4 sm:$0xff]  }
 0xce6   : > { %8666 = vmatprep.subr.bf16.mxu0 %v11938_v50  ;;  %v11959_v50 = vld [vmem:[%s15257_s18 + $0x16c] ss:$16 sps:$4 sm:$0xff]  }
 0xce9   : > { %8667 = vmatpush1.bf16.msra.mxu0 %v11936_v63  ;;  %v11957_v63 = vld [vmem:[%s15257_s18 + $0x168] ss:$16 sps:$4 sm:$0xff]  }
 0xcea   : > { %8668 = vmatprep.subr.bf16.mxu0 %v11944_v47  ;;  %v11965_v47 = vld [vmem:[%s15257_s18 + $0x18c] ss:$16 sps:$4 sm:$0xff]  }
 0xced   : > { %8669 = vmatpush1.bf16.msra.mxu0 %v11942_v38  ;;  %v11963_v38 = vld [vmem:[%s15257_s18 + $0x188] ss:$16 sps:$4 sm:$0xff]  }
 0xcee   : > { %8670 = vmatprep.subr.bf16.mxu0 %v11950_v39  ;;  %v11971_v39 = vld [vmem:[%s15257_s18 + $0x1ac] ss:$16 sps:$4 sm:$0xff]  }
 0xcf1   : > { %8671 = vmatpush1.bf16.msra.mxu0 %v11948_v42  ;;  %v11969_v42 = vld [vmem:[%s15257_s18 + $0x1a8] ss:$16 sps:$4 sm:$0xff]  }
 0xcf2   : > { %8672 = vmatprep.subr.bf16.mxu0 %v11956_v43  ;;  %v11977_v43 = vld [vmem:[%s15257_s18 + $0x1cc] ss:$16 sps:$4 sm:$0xff]  }
 0xcf5   : > { %8673 = vmatpush1.bf16.msra.mxu0 %v11954_v51  ;;  %v11975_v51 = vld [vmem:[%s15257_s18 + $0x1c8] ss:$16 sps:$4 sm:$0xff]  }
 0xcf6   : > { %8674 = vmatprep.subr.bf16.mxu0 %v11962_v52  ;;  %v11980_v52 = vld [vmem:[%s15257_s18 + $0x1e4] ss:$16 sps:$4 sm:$0xff]  }
 0xcf9   : > { %8675 = vmatpush1.bf16.msra.mxu0 %v11960_v53  ;;  %v11983_v53 = vld [vmem:[%s15257_s18 + $0x1ec] ss:$16 sps:$4 sm:$0xff]  }
 0xcfa   : > { %8676 = vmatprep.subr.bf16.mxu0 %v11968_v54  ;;  %v11978_v54 = vld [vmem:[%s15257_s18 + $0x1e0] ss:$16 sps:$4 sm:$0xff]  }
 0xcfd   : > { %8677 = vmatpush1.bf16.msra.mxu0 %v11966_v55  ;;  %v11981_v55 = vld [vmem:[%s15257_s18 + $0x1e8] ss:$16 sps:$4 sm:$0xff]  }
 0xcfe   : > { %8678 = vmatprep.subr.bf16.mxu0 %v11974_v56  ;;  %v11984_v56 = vld [vmem:[%s15259_s20 + $0x40] sm:$0xff]  }
 0xd01   : > { %8679 = vmatpush1.bf16.msra.mxu0 %v11972_v59 }
 0xd02   : > { %8680 = vmatprep.subr.bf16.mxu0 %v11980_v52 }
 0xd05   : > { %8681 = vmatpush1.bf16.msra.mxu0 %v11978_v54 }
 0xd06   : > { %10485 = vmatprep.subr.bf16.mxu0 %v11984_v56 }
 0xd9b   : > { %v8087_v5 = vpop.f32.mrb[76].mxu1  ;;  %v8128_v49 = vpop.f32.mrb[48].mxu0 }
 0xd9c   : > { %v8135_v58 = vadd.f32 %v8087_v5, %v14918_v17  ;;  %v8137_v61 = vadd.f32 %v8128_v49, %v14920_v18  ;;  %v8089_v62 = vpop.f32.mrb[77].mxu1  ;;  %v8130_v8 = vpop.f32.mrb[49].mxu0  ;;  %v11893_v17 = vld [vmem:[%s15257_s18 + $0xc] ss:$16 sps:$4 sm:$0xff]   ;;  %v8167_v18 = vld [vmem:[%s15256_s17] sm:$0xff] }
 0xd9d   : > { %v8136_v9 = vadd.f32 %v8089_v62, %v14922_v45  ;;  %v8138_v10 = vadd.f32 %v8130_v8, %v14924_v22  ;;  %v8091_v11 = vpop.f32.mrb[78].mxu1  ;;  %v8132_v15 = vpop.f32.mrb[50].mxu0  ;;  %v11891_v45 = vld [vmem:[%s15257_s18 + $0x8] ss:$16 sps:$4 sm:$0xff]   ;;  %v11899_v22 = vld [vmem:[%s15257_s18 + $0x2c] ss:$16 sps:$4 sm:$0xff]  }
 0xd9e   : > { %v8161_v16 = vadd.f32 %v8144_v2, %v8135_v58  ;;  %v8163_v20 = vadd.f32 %v8152_v7, %v8137_v61  ;;  %v8092_v21 = vpop.f32.mrb[79].mxu1  ;;  %v8133_v23 = vpop.f32.mrb[51].mxu0  ;;  %v11985_v7 = vld [vmem:[%s15259_s20] sm:$0xff]   ;;  %v11986_v49 = vld [vmem:[%s15259_s20 + $0x48] sm:$0xff]   ;;  %v11989_v58 = vld [vmem:[%s15259_s20 + $0x10] sm:$0xff]  }
 0xd9f   : > { %v8162_v24 = vadd.f32 %v8148_v4, %v8136_v9  ;;  %v8164_v25 = vadd.f32 %v8156_v57, %v8138_v10  ;;  %v11987_v4 = vld [vmem:[%s15259_s20 + $0x8] sm:$0xff]   ;;  %v11988_v57 = vld [vmem:[%s15259_s20 + $0x50] sm:$0xff]   ;;  %v11990_v61 = vld [vmem:[%s15259_s20 + $0x58] sm:$0xff]  }
 0xda0   : > { %v8165_v26 = vmax.f32 %v8161_v16, %v8163_v20  ;;  %v11991_v62 = vld [vmem:[%s15259_s20 + $0x18] sm:$0xff]   ;;  %v11992_v8 = vld [vmem:[%s15259_s20 + $0x60] sm:$0xff]   ;;  %v11994_v10 = vld [vmem:[%s15259_s20 + $0x68] sm:$0xff]  }
 0xda1   : > { %v8166_v27 = vmax.f32 %v8162_v24, %v8164_v25  ;;  %v11993_v9 = vld [vmem:[%s15259_s20 + $0x20] sm:$0xff]   ;;  %v11995_v11 = vld [vmem:[%s15259_s20 + $0x28] sm:$0xff]   ;;  %v11996_v15 = vld [vmem:[%s15259_s20 + $0x70] sm:$0xff]  }
 0xda2   : > { %v11997_v16 = vld [vmem:[%s15259_s20 + $0x30] sm:$0xff]   ;;  %v11998_v20 = vld [vmem:[%s15259_s20 + $0x78] sm:$0xff]   ;;  %v8308_v23 = vld [vmem:[%s15309_s0] sm:$0xf]  ;;  %s15314_s0 = sld [smem:[#allocation23_spill]] }
 0xda3   : > { %8171 = vmatprep.subr.mxu1 %v8166_v27  ;;  %v11999_v21 = vld [vmem:[%s15259_s20 + $0x38] sm:$0xff]   ;;  %v8313_v24 = vrot.slane %v8308_v23, %v12485_v46  ;;  %v8321_v25 = vrot.slane %v8308_v23, %v13138_v0  ;;  %v8325_v27 = vrot.slane %v8308_v23, %v13144_v3 }
 0xda4   : > { %8172 = vmatpush1.msra.mxu1 %v8165_v26  ;;  %v8317_v26 = vrot.slane %v8308_v23, %v12491_v48 }
 0xda5   : > { %10376 = vmatmul.mubr.msk.f32.vlgmr.msra.gmra.mrb[80].mxu1 %vm4837_vm3, %v8167_v18  ;;  %8691 = vmatprep.subr.bf16.mxu1 %v11893_v17 }
 0xda6   : > { %8692 = vmatpush1.bf16.msra.mxu1 %v11891_v45 }
 0xda7   : > { %8693 = vmatprep.subr.bf16.mxu1 %v11899_v22 }
 0xda8   : > { %s15197_s2 = scalar_lea.hbm %s15314_s0, %s10457_s21 }
 0xdaa   : > { %8694 = vmatpush1.bf16.msra.mxu1 %v11897_v1 }
 0xdab   : > { %8695 = vmatprep.subr.bf16.mxu1 %v11905_v28 }
 0xdae   : > { %8696 = vmatpush1.bf16.msra.mxu1 %v11903_v14 }
 0xdaf   : > { %8697 = vmatprep.subr.bf16.mxu1 %v11911_v12 }
 0xdb2   : > { %8698 = vmatpush1.bf16.msra.mxu1 %v11909_v6 }
 0xdb3   : > { %8699 = vmatprep.subr.bf16.mxu1 %v11917_v29 }
 0xdb6   : > { %8700 = vmatpush1.bf16.msra.mxu1 %v11915_v30 }
 0xdb7   : > { %8701 = vmatprep.subr.bf16.mxu1 %v11923_v19 }
 0xdba   : > { %8702 = vmatpush1.bf16.msra.mxu1 %v11921_v13 }
 0xdbb   : > { %8703 = vmatprep.subr.bf16.mxu1 %v11929_v31 }
 0xdbe   : > { %8704 = vmatpush1.bf16.msra.mxu1 %v11927_v32  ;;  %v8904_v32 = vld [vmem:[%s15312_s29] sm:$0x1]  ;;  %s12006_s29 = scalar_lea.vmem %s12005_s28, 32 }
 0xdbf   : > { %8705 = vmatprep.subr.bf16.mxu1 %v11935_v33  ;;  %p12008_p1 = scmp.lt.s32.totalorder %s12006_s29, %s12000_s26 }
 0xdc1   : > { %p12009_p2 = por %p12008_p1, %p12007_p0 }
 0xdc2   : > { %8706 = vmatpush1.bf16.msra.mxu1 %v11933_v34 }
 0xdc3   : > { %8707 = vmatprep.subr.bf16.mxu1 %v11941_v35  ;;  %p12010_p3 = pnand %p12009_p2, %p12003_p13 }
 0xdc6   : > { %8708 = vmatpush1.bf16.msra.mxu1 %v11939_v36 }
 0xdc7   : > { %8709 = vmatprep.subr.bf16.mxu1 %v11947_v37 }
 0xdca   : > { %8710 = vmatpush1.bf16.msra.mxu1 %v11945_v40 }
 0xdcb   : > { %8711 = vmatprep.subr.bf16.mxu1 %v11953_v41 }
 0xdce   : > { %8712 = vmatpush1.bf16.msra.mxu1 %v11951_v44 }
 0xdcf   : > { %8713 = vmatprep.subr.bf16.mxu1 %v11959_v50 }
 0xdd2   : > { %8714 = vmatpush1.bf16.msra.mxu1 %v11957_v63 }
 0xdd3   : > { %8715 = vmatprep.subr.bf16.mxu1 %v11965_v47 }
 0xdd6   : > { %8716 = vmatpush1.bf16.msra.mxu1 %v11963_v38 }
 0xdd7   : > { %8717 = vmatprep.subr.bf16.mxu1 %v11971_v39 }
 0xdda   : > { %8718 = vmatpush1.bf16.msra.mxu1 %v11969_v42 }
 0xddb   : > { %8719 = vmatprep.subr.bf16.mxu1 %v11977_v43 }
 0xdde   : > { %8720 = vmatpush1.bf16.msra.mxu1 %v11975_v51 }
 0xddf   : > { %8721 = vmatprep.subr.bf16.mxu1 %v11983_v53 }
 0xde2   : > { %8722 = vmatpush1.bf16.msra.mxu1 %v11981_v55 }
 0xe78   : > { %v8237_v59 = vpop.f32.mrb[80].mxu1 }
 0xe79   : > { %v8239_v60 = vpop.f32.mrb[81].mxu1  ;;  %v8242_v5 = vpack.c.bf16 %v8237_v59, %v8237_v59 }
 0xe7a   : > { %v8243_v2 = vpack.c.bf16 %v8239_v60, %v8239_v60 }
 0xe7c   : > { %8682 = vmatprep.mubr.bf16.mxu0 %v8243_v2  ;;  %8723 = vmatprep.mubr.bf16.mxu1 %v8243_v2 }
 0xe7d   : > { %8683 = vmatmul.mubr.bf16.vlgmr.msra.gmra.mrb[52].mxu0 %v8242_v5  ;;  %8724 = vmatmul.mubr.bf16.vlgmr.msra.gmra.mrb[84].mxu1 %v8242_v5 }
 0xe7e   : > { %10486 = vmatpush3.bf16.msra.mxu0 %v11985_v7 }
 0xe7f   : > { %10487 = vmatprep.subr.bf16.mxu0 %v11986_v49 }
 0xe82   : > { %10488 = vmatpush3.bf16.msra.mxu0 %v11987_v4 }
 0xe83   : > { %10489 = vmatprep.subr.bf16.mxu0 %v11988_v57 }
 0xe86   : > { %10490 = vmatpush3.bf16.msra.mxu0 %v11989_v58 }
 0xe87   : > { %10491 = vmatprep.subr.bf16.mxu0 %v11990_v61 }
 0xe8a   : > { %10492 = vmatpush3.bf16.msra.mxu0 %v11991_v62 }
 0xe8b   : > { %10493 = vmatprep.subr.bf16.mxu0 %v11992_v8 }
 0xe8e   : > { %10494 = vmatpush3.bf16.msra.mxu0 %v11993_v9 }
 0xe8f   : > { %10495 = vmatprep.subr.bf16.mxu0 %v11994_v10 }
 0xe92   : > { %10496 = vmatpush3.bf16.msra.mxu0 %v11995_v11 }
 0xe93   : > { %10497 = vmatprep.subr.bf16.mxu0 %v11996_v15 }
 0xe96   : > { %10498 = vmatpush3.bf16.msra.mxu0 %v11997_v16 }
 0xe97   : > { %10499 = vmatprep.subr.bf16.mxu0 %v11998_v20 }
 0xe9a   : > { %10500 = vmatpush3.bf16.msra.mxu0 %v11999_v21 }
 0xf50   : > { %v8684_v17 = vpop.f32.mrb[52].mxu0  ;;  %v8725_v18 = vpop.f32.mrb[84].mxu1 }
 0xf51   : > { %v8685_v45 = vadd.f32 %v8684_v17, %v8313_v24  ;;  %v8726_v22 = vadd.f32 %v8725_v18, %v8321_v25  ;;  %v8686_v1 = vpop.f32.mrb[53].mxu0  ;;  %v8727_v28 = vpop.f32.mrb[85].mxu1 }
 0xf52   : > { %v8687_v14 = vadd.f32 %v8686_v1, %v8317_v26  ;;  %v8728_v12 = vadd.f32 %v8727_v28, %v8325_v27  ;;  %v8688_v6 = vpop.f32.mrb[54].mxu0  ;;  %v8729_v29 = vpop.f32.mrb[86].mxu1 }
 0xf53   : > { %v8732_v30 = vmax.f32 %v8685_v45, %v8726_v22  ;;  %v8689_v46 = vpop.f32.mrb[55].mxu0  ;;  %v8730_v19 = vpop.f32.mrb[87].mxu1 }
 0xf54   : > { %v8733_v0 = vmax.f32 %v8687_v14, %v8728_v12 }
 0xf55   : > { %v8734_v48 = vpack.c.bf16 %v8732_v30, %v8732_v30 }
 0xf56   : > { %v8735_v13 = vpack.c.bf16 %v8733_v0, %v8733_v0 }
 0xf58   : > { %8896 = vmatprep.mubr.bf16.mxu0 %v8735_v13 }
 0xf59   : > { %8897 = vmatmul.mubr.bf16.vlgmr.msra.gmra.mrb[56].mxu0 %v8734_v48 }
0x102c   : > { %v10501_v3 = vpop.f32.mrb[56].mxu0 }
0x102d   : > { %v10502_v31 = vpop.f32.mrb[57].mxu0 }
0x102e   : > { %v10503_v33 = vadd.f32 %v10502_v31, %v10501_v3  ;;  %v10504_v34 = vpop.f32.mrb[58].mxu0 }
0x102f   : > { %v10505_v35 = vpop.f32.mrb[59].mxu0 }
0x1030   : > { %v8905_v36 = vadd.f32 %v10503_v33, %v8904_v32 }
0x1032   : > { %8907 = vst.msk [vmem:[%s675_s4] sm:$0x1] %vm8906_vm4, %v8905_v36 }
0x1033   : > { %12013 = shalt.err (!%p12010_p3)
}
0x1034   : > { %s12014_s22 = scalar_lea.hbm %s15197_s2, 16  ;;  %s12018_s6 = scalar_lea.hbm %s15314_s0, 32 }
0x1035   : > { %p12015_p4 = scmp.ne.s32.totalorder %s15197_s2, %s12014_s22  ;;  %p12019_p9 = scmp.lt.u32.totalorder %s15197_s2, %s15314_s0 }
0x1036   : > { %p12020_p10 = scmp.lt.u32.totalorder %s12018_s6, %s12014_s22  ;;  %p12022_p12 = scmp.lt.u32.totalorder %s12014_s22, %s15197_s2 }
0x1037   : > { %p12016_p7 = pnand %p12015_p4, %p12220_p5 }
0x1038   : > { %p12021_p11 = por %p12020_p10, %p12019_p9 }
0x1039   : > { %p12017_p8 = pneg %p12016_p7 }
0x103a   : > { %p12023_p13 = por %p12022_p12, %p12021_p11 }
0x103c   : > { %p12024_p0 = pnand %p12023_p13, %p12017_p8 }
0x103e   : > { %12027 = shalt.err (!%p12024_p0)
}
0x103f   : > { %10641 = dma.vmem_to_hbm [thread:$0]  (%p12220_p5), %s15199_s24, 16, %s15197_s2, %s8909_s1  }
0x1040 PF: > { %s15315_s26 = sld [smem:[#allocation8_spill]]  ;;  %s15316_s28 = sld [smem:[#allocation5_spill]] }
0x1046   : > { %p10647_p1 = scmp.ge.s32.totalorder %s15315_s26, 2  ;;  %s8933_s21 = sand.u32 1, %s15316_s28  }
0x1047   : > { %s8934_s4 = scalar_lea.sflag [#allocation3], %s8933_s21 }
0x1048   : > { %p10644_p2 = pnand %p10647_p1, %p12224_p6 }
0x104a   : > { %12045 = dma.done.wait (!%p10644_p2), %s8934_s4, 16  }
0x104b   : > { %12047 = vsyncadd (!%p10644_p2), %s8934_s4, 4294967280  ;;  %s15318_s30 = sld [smem:[#allocation10_spill]]  ;;  %s15319_s3 = sld [smem:[#allocation6_spill]] }
0x104c   : > { %s15320_s28 = sld [smem:[#allocation7_spill]]  ;;  %s15321_s29 = sld [smem:[#allocation11_spill]] }
0x1051   : > { %p32_p3 = scmp.ge.s32.totalorder %s15318_s30, 4  }
0x1053   :  { %34 = sbr.rel (!%p32_p3) target bundleno = 14 (0xe), region = 164 }
0x105a   :  { %8938 = vsyncpa [#allocation3], 1 }
0x105b   :  { %8940 = vsyncpa [#allocation3 + $0x1], 1 }

</bundles_post_ra>
